<compile_context>
chip_gen: v6e
topology: v6e:2x2x1
jax: 0.10.0
libtpu: 0.0.40
codegen_flags: <defaults>
</compile_context>

<pallas_src>
import functools

import jax
import jax.numpy as jnp
from jax.experimental import pallas as pl
from jax.experimental.pallas import tpu as pltpu

_FEAT = 1024  # PointNet global feature width


# ---------------------------------------------------------------------------
# Chip-aware tiling
# ---------------------------------------------------------------------------
def _chip_budgets():
    """(rows_per_grid_step, vmem_limit_bytes) gated by VMEM capacity."""
    cap = 128 * 1024 * 1024
    try:
        info = pltpu.get_tpu_info()
        cap = int(getattr(info, "vmem_capacity_bytes", cap))
    except Exception:
        pass
    if cap <= 64 * 1024 * 1024:            # v7x-class: 64 MiB VMEM per TensorCore
        return 2048, 48 * 1024 * 1024
    return 4096, 96 * 1024 * 1024          # v5e / v6e: 128 MiB physical VMEM


def _choose_tiles(n_batch, n_grasps, rows_budget):
    """Pick (b_tile, padded_B, g_chunk, padded_G).

    rows per grid step = b_tile * g_chunk; the (rows, 1024) f32 layer-3 activation is the
    dominant VMEM temp, so rows is bounded by rows_budget.  g_chunk is a multiple of 16
    (bf16 sublane packing / (8,128) rule for the (bt, gc, C) input block); b_tile is a
    multiple of 8 whenever there is more than one batch tile (output-block sublane rule).
    """
    g_pad = -(-n_grasps // 16) * 16
    gc_cap = max(16, (rows_budget // 8) // 16 * 16)
    gc = min(g_pad, gc_cap)
    g_pad = -(-g_pad // gc) * gc

    bt = max(1, rows_budget // gc)
    if bt >= n_batch:
        bt, b_pad = n_batch, n_batch
    else:
        bt = max(8, (bt // 8) * 8)
        b_pad = -(-n_batch // bt) * bt

    # Prefer >= 2 batch tiles so the "parallel" axis can shard across both TensorCores on
    # v7x; costs at most one extra ~0.35us grid step on single-TC chips.
    if b_pad // bt == 1 and n_batch >= 16:
        bt = max(8, (n_batch // 2) // 8 * 8)
        b_pad = -(-n_batch // bt) * bt
    return bt, b_pad, gc, g_pad


# ---------------------------------------------------------------------------
# Pallas kernel: one (batch tile, grasp chunk) step of PointNet encoder + head
# ---------------------------------------------------------------------------
def gnp_encoder_kernel(x_ref,
                       w1, b1, w2, b2, w3, b3,          # shared per-grasp MLP (1x1 convs)
                       fw1, fb1, fw2, fb2, fw3, fb3,    # FC head (fw3/fb3 lane-padded)
                       out_ref, acc_ref, *,
                       b_tile, g_chunk, n_grasps, mask_grasps):
    j = pl.program_id(1)

    @pl.when(j == 0)
    def _init():
        acc_ref[...] = jnp.full(acc_ref.shape, -jnp.inf, acc_ref.dtype)

    def mm(a, w_ref, b_ref=None):
        # bf16 MXU matmul with f32 accumulation; bias added to the f32 accumulator.
        w = w_ref[...]
        acc = jnp.dot(a.astype(w.dtype), w, preferred_element_type=jnp.float32)
        return acc if b_ref is None else acc + b_ref[...]

    rows = b_tile * g_chunk
    x = x_ref[...].reshape(rows, x_ref.shape[-1])        # (rows, n_in) bf16

    # Shared per-grasp MLP (1x1 Conv1d layers, no batch norm, no STN).
    h = jnp.maximum(mm(x, w1, b1), 0.0)
    h = jnp.maximum(mm(h, w2, b2), 0.0)
    # Layer-3 bias is applied AFTER the max-pool (exact: a per-column constant commutes
    # with max), removing rows*1024 f32 adds per grid step.
    # TODO(synk): no ReLU after conv3 before the pool -- matches the assumed
    #             PointNetRegressor; re-check against the real source if it differs.
    h = mm(h, w3)                                        # (rows, 1024) f32
    h = h.reshape(b_tile, g_chunk, h.shape[-1])

    if mask_grasps:
        # Padded grasp rows must not win the max.
        gidx = j * g_chunk + jax.lax.broadcasted_iota(jnp.int32, h.shape, 1)
        h = jnp.where(gidx < n_grasps, h, -jnp.inf)

    # Running global max-pool over grasp chunks.
    acc_ref[...] = jnp.maximum(acc_ref[...], jnp.max(h, axis=1))

    @pl.when(j == pl.num_programs(1) - 1)
    def _finalize():
        g = acc_ref[...] + b3[...]                       # (b_tile, 1024) pooled feature
        g = jnp.maximum(mm(g, fw1, fb1), 0.0)
        g = jnp.maximum(mm(g, fw2, fb2), 0.0)
        out_ref[...] = mm(g, fw3, fb3)                   # (b_tile, 128*k) = mu || log_sigma || 0pad


def pointnet_regressor_pallas(grasp_input, params, d_latents,
                              weight_dtype=jnp.bfloat16):
    """grasp_input: (B, n_grasps, n_in) float32 (NLC layout, see module comment)."""
    B, G, C = grasp_input.shape
    n_out = 2 * d_latents
    n_out_pad = max(128, -(-n_out // 128) * 128)         # lane-dense output slab

    rows_budget, vmem_limit = _chip_budgets()
    bt, Bp, gc, Gp = _choose_tiles(B, G, rows_budget)
    mask_grasps = (Gp != G)
    grid = (Bp // bt, Gp // gc)

    # Streamed input in bf16 (halves its DMA); pad with jnp.pad (no concatenate copy).
    x = grasp_input.astype(jnp.bfloat16)
    if (Bp, Gp) != (B, G):
        x = jnp.pad(x, ((0, Bp - B), (0, Gp - G), (0, 0)))

    # Weights (even indices) bf16, biases (odd indices) f32; fw3/fb3 lane-padded to 128.
    cast_params = []
    for i, p in enumerate(params):
        if i in (10, 11):                                # fw3 / fb3
            p = jnp.pad(p, ((0, 0), (0, n_out_pad - p.shape[1])))
        cast_params.append(p.astype(weight_dtype) if i % 2 == 0
                           else p.astype(jnp.float32))

    kernel = functools.partial(gnp_encoder_kernel, b_tile=bt, g_chunk=gc,
                               n_grasps=G, mask_grasps=mask_grasps)

    flops = (2 * B * G * (C * 64 + 64 * 128 + 128 * _FEAT)
             + 2 * B * (_FEAT * 512 + 512 * 256 + 256 * n_out_pad))
    bytes_accessed = (int(x.size) * 2
                      + sum(int(p.size) * p.dtype.itemsize for p in cast_params)
                      + Bp * n_out_pad * 4)
    cost = pl.CostEstimate(flops=flops, transcendentals=0,
                           bytes_accessed=bytes_accessed)

    def run(buffered_weights):
        if buffered_weights:
            # Grid-invariant weights: single-buffered (no point double-buffering a block
            # whose index never changes) -> saves ~1.7 MiB VMEM headroom.
            weight_specs = [pl.BlockSpec(p.shape, lambda i, j: (0, 0),
                                         pipeline_mode=pl.Buffered(1))
                            for p in cast_params]
        else:
            weight_specs = [pl.BlockSpec(p.shape, lambda i, j: (0, 0))
                            for p in cast_params]
        return pl.pallas_call(
            kernel,
            out_shape=jax.ShapeDtypeStruct((Bp, n_out_pad), jnp.float32),
            grid_spec=pltpu.PrefetchScalarGridSpec(
                num_scalar_prefetch=0,
                grid=grid,
                in_specs=[pl.BlockSpec((bt, gc, C), lambda i, j: (i, j, 0))]
                         + weight_specs,
                out_specs=pl.BlockSpec((bt, n_out_pad), lambda i, j: (i, 0)),
                scratch_shapes=[pltpu.VMEM((bt, _FEAT), jnp.float32)]),
            compiler_params=pltpu.CompilerParams(
                dimension_semantics=("parallel", "arbitrary"),
                vmem_limit_bytes=vmem_limit),
            cost_estimate=cost,
        )(x, *cast_params)

    try:
        out = run(True)
    except Exception:
        # Fallback for runtimes that reject single-buffered pipeline_mode on weights.
        out = run(False)

    out = out[:B, :n_out]                                # drop batch/lane padding
    mu = out[:, :d_latents]
    sigma = 1e-4 + jnp.exp(out[:, d_latents:])           # same parameterization as PyTorch
    return mu, sigma


# ---------------------------------------------------------------------------
# Glue: replicate the feature concatenation of CustomGNPEncoder.forward
# ---------------------------------------------------------------------------
def build_grasp_input(geoms_enc, context_grasp_points, context_curvatures,
                      context_normals, context_midpoints, context_forces,
                      context_labels, context_sizes, meshes, input_features):
    del context_midpoints  # unused by the PyTorch forward as well
    n_batch, n_grasp = context_labels.shape
    meshes_e = jnp.broadcast_to(meshes[:, None, :],
                                (n_batch, n_grasp, meshes.shape[-1]))
    parts = [context_grasp_points.reshape(n_batch, n_grasp, -1)]
    if input_features['grasp_normals']:
        parts.append(context_normals.reshape(n_batch, n_grasp, -1))
    if input_features['grasp_curvatures']:
        parts.append(context_curvatures.reshape(n_batch, n_grasp, -1))
    if input_features['grasp_mesh']:
        parts.append(geoms_enc)
    parts += [context_forces[:, :, None],
              context_labels[:, :, None],
              context_sizes[:, :, None],
              meshes_e]
    # PyTorch: cat(dim=2).swapaxes(1, 2) -> (B, n_in, n_grasps) (NCL).  The kernel uses
    # NLC, so we keep (B, n_grasps, n_in) and skip the swap.
    return jnp.concatenate(parts, axis=2).astype(jnp.float32)


def init_params(key, n_in, d_latents):
    """Deterministic synthetic PointNetRegressor weights, (C_in, C_out) layout, f32."""
    conv_dims = [n_in, 64, 128, _FEAT]
    fc_dims = [_FEAT, 512, 256, 2 * d_latents]
    layer_dims = list(zip(conv_dims[:-1], conv_dims[1:])) + \
                 list(zip(fc_dims[:-1], fc_dims[1:]))
    keys = jax.random.split(key, len(layer_dims))
    params = []
    for k, (cin, cout) in zip(keys, layer_dims):
        w = jax.random.normal(k, (cin, cout), jnp.float32) * (1.0 / jnp.sqrt(cin))
        b = jnp.zeros((1, cout), jnp.float32)
        params += [w, b]
    return params


def custom_gnp_encoder_forward(params, d_latents, input_features,
                               geoms_enc, context_grasp_points, context_curvatures,
                               context_normals, context_midpoints, context_forces,
                               context_labels, context_sizes, meshes,
                               override_transform=None):
    del override_transform  # use_stn=False -> no transform applied
    grasp_input = build_grasp_input(geoms_enc, context_grasp_points,
                                    context_curvatures, context_normals,
                                    context_midpoints, context_forces,
                                    context_labels, context_sizes, meshes,
                                    input_features)
    return pointnet_regressor_pallas(grasp_input, params, d_latents)


# ---------------------------------------------------------------------------
# Pure-JAX reference (same bf16-input/weight, f32-accumulate math) for validation
# ---------------------------------------------------------------------------
def pointnet_regressor_reference(grasp_input, params, d_latents,
                                 weight_dtype=jnp.bfloat16):
    B, G, C = grasp_input.shape
    cast = [p.astype(weight_dtype) if i % 2 == 0 else p.astype(jnp.float32)
            for i, p in enumerate(params)]
    w1, b1, w2, b2, w3, b3, fw1, fb1, fw2, fb2, fw3, fb3 = cast

    def mm(a, w, b):
        return jnp.dot(a.astype(w.dtype), w, preferred_element_type=jnp.float32) + b

    x = grasp_input.astype(jnp.bfloat16).reshape(B * G, C)
    h = jnp.maximum(mm(x, w1, b1), 0.0)
    h = jnp.maximum(mm(h, w2, b2), 0.0)
    h = mm(h, w3, b3)
    g = jnp.max(h.reshape(B, G, -1), axis=1)
    g = jnp.maximum(mm(g, fw1, fb1), 0.0)
    g = jnp.maximum(mm(g, fw2, fb2), 0.0)
    out = mm(g, fw3, fb3)
    mu = out[:, :d_latents]
    sigma = 1e-4 + jnp.exp(out[:, d_latents:])
    return mu, sigma


if __name__ == "__main__":
    key = jax.random.PRNGKey(0)
    ks = jax.random.split(key, 10)

    B, G = 2, 16            # batch, n_grasps
    d_latents = 16
    d_geom_enc = 8          # per-grasp mesh-encoding width
    d_mesh = 5              # global mesh feature width
    input_features = {'grasp_normals': True,
                      'grasp_curvatures': True,
                      'grasp_mesh': True}

    geoms_enc = jax.random.normal(ks[0], (B, G, d_geom_enc), jnp.float32)
    context_grasp_points = jax.random.normal(ks[1], (B, G, 2, 3), jnp.float32)
    context_curvatures = jax.random.normal(ks[2], (B, G, 2, 2), jnp.float32)
    context_normals = jax.random.normal(ks[3], (B, G, 2, 3), jnp.float32)
    context_midpoints = jax.random.normal(ks[4], (B, G, 3), jnp.float32)
    context_forces = jax.random.uniform(ks[5], (B, G), jnp.float32)
    context_labels = (jax.random.uniform(ks[6], (B, G)) > 0.5).astype(jnp.float32)
    context_sizes = jax.random.uniform(ks[7], (B, G), jnp.float32)
    meshes = jax.random.normal(ks[8], (B, d_mesh), jnp.float32)

    # n_in = 6 (grasp pts) + 6 (normals) + 4 (curvatures) + 8 (geom enc) + 3 + 5 = 32
    n_in = 6 + 6 + 4 + d_geom_enc + 3 + d_mesh
    params = init_params(ks[9], n_in, d_latents)

    mu, sigma = custom_gnp_encoder_forward(
        params, d_latents, input_features,
        geoms_enc, context_grasp_points, context_curvatures, context_normals,
        context_midpoints, context_forces, context_labels, context_sizes, meshes)
    jax.block_until_ready((mu, sigma))

    # Validate against the pure-JAX reference (same bf16 inputs/weights, f32 accumulation).
    grasp_input = build_grasp_input(geoms_enc, context_grasp_points, context_curvatures,
                                    context_normals, context_midpoints, context_forces,
                                    context_labels, context_sizes, meshes, input_features)
    mu_ref, sigma_ref = pointnet_regressor_reference(grasp_input, params, d_latents)

    assert mu.shape == (B, d_latents) and sigma.shape == (B, d_latents)
    assert bool(jnp.all(sigma > 0.0))
    assert bool(jnp.allclose(mu, mu_ref, rtol=2e-2, atol=2e-2))
    assert bool(jnp.allclose(sigma, sigma_ref, rtol=2e-2, atol=2e-2))
    print("KERNEL_OK")
</pallas_src>

<mosaic_0001>
module attributes {stable_mosaic.version = 11 : i64} {
  func.func @gnp_encoder_kernel(%arg0: i32, %arg1: i32, %arg2: memref<2x16x32xbf16, #tpu.memory_space<vmem>>, %arg3: memref<32x64xbf16, #tpu.memory_space<vmem>>, %arg4: memref<1x64xf32, #tpu.memory_space<vmem>>, %arg5: memref<64x128xbf16, #tpu.memory_space<vmem>>, %arg6: memref<1x128xf32, #tpu.memory_space<vmem>>, %arg7: memref<128x1024xbf16, #tpu.memory_space<vmem>>, %arg8: memref<1x1024xf32, #tpu.memory_space<vmem>>, %arg9: memref<1024x512xbf16, #tpu.memory_space<vmem>>, %arg10: memref<1x512xf32, #tpu.memory_space<vmem>>, %arg11: memref<512x256xbf16, #tpu.memory_space<vmem>>, %arg12: memref<1x256xf32, #tpu.memory_space<vmem>>, %arg13: memref<256x128xbf16, #tpu.memory_space<vmem>>, %arg14: memref<1x128xf32, #tpu.memory_space<vmem>>, %arg15: memref<2x128xf32, #tpu.memory_space<vmem>>, %arg16: memref<2x1024xf32, #tpu.memory_space<vmem>>) attributes {dimension_semantics = [#tpu.dimension_semantics<parallel>, #tpu.dimension_semantics<arbitrary>], iteration_bounds = array<i64: 1, 1>, scalar_prefetch = 0 : i64, scratch_operands = 1 : i64, tpu.core_type = #tpu.core_type<tc>, window_params = [{transform_indices = @transform_0, window_bounds = array<i64: 2, 16, 32>}, {pipeline_mode = #tpu.pipeline_mode<synchronous>, transform_indices = @transform_1, window_bounds = array<i64: 32, 64>}, {pipeline_mode = #tpu.pipeline_mode<synchronous>, transform_indices = @transform_2, window_bounds = array<i64: 1, 64>}, {pipeline_mode = #tpu.pipeline_mode<synchronous>, transform_indices = @transform_3, window_bounds = array<i64: 64, 128>}, {pipeline_mode = #tpu.pipeline_mode<synchronous>, transform_indices = @transform_4, window_bounds = array<i64: 1, 128>}, {pipeline_mode = #tpu.pipeline_mode<synchronous>, transform_indices = @transform_5, window_bounds = array<i64: 128, 1024>}, {pipeline_mode = #tpu.pipeline_mode<synchronous>, transform_indices = @transform_6, window_bounds = array<i64: 1, 1024>}, {pipeline_mode = #tpu.pipeline_mode<synchronous>, transform_indices = @transform_7, window_bounds = array<i64: 1024, 512>}, {pipeline_mode = #tpu.pipeline_mode<synchronous>, transform_indices = @transform_8, window_bounds = array<i64: 1, 512>}, {pipeline_mode = #tpu.pipeline_mode<synchronous>, transform_indices = @transform_9, window_bounds = array<i64: 512, 256>}, {pipeline_mode = #tpu.pipeline_mode<synchronous>, transform_indices = @transform_10, window_bounds = array<i64: 1, 256>}, {pipeline_mode = #tpu.pipeline_mode<synchronous>, transform_indices = @transform_11, window_bounds = array<i64: 256, 128>}, {pipeline_mode = #tpu.pipeline_mode<synchronous>, transform_indices = @transform_12, window_bounds = array<i64: 1, 128>}, {transform_indices = @transform_13, window_bounds = array<i64: 2, 128>}]} {
    %c0_i32 = arith.constant 0 : i32
    %0 = arith.cmpi eq, %arg1, %c0_i32 : i32
    %1 = arith.extui %0 : i1 to i32
    %c0_i32_0 = arith.constant 0 : i32
    %2 = arith.cmpi ne, %1, %c0_i32_0 : i32
    scf.if %2 {
      %cst_24 = arith.constant 0xFF800000 : f32
      %31 = vector.broadcast %cst_24 : f32 to vector<2x1024xf32>
      %c0_25 = arith.constant 0 : index
      %c0_26 = arith.constant 0 : index
      %32 = vector.load %arg16[%c0_25, %c0_26] : memref<2x1024xf32, #tpu.memory_space<vmem>>, vector<2x1024xf32>
      tpu.vector_store %arg16[%c0_25, %c0_26], %31 {strides = array<i32>} : memref<2x1024xf32, #tpu.memory_space<vmem>>, vector<2x1024xf32>,
    } else {
    }
    %c0 = arith.constant 0 : index
    %c0_1 = arith.constant 0 : index
    %c0_2 = arith.constant 0 : index
    %3 = vector.load %arg2[%c0, %c0_1, %c0_2] : memref<2x16x32xbf16, #tpu.memory_space<vmem>>, vector<2x16x32xbf16>
    %4 = vector.shape_cast %3 : vector<2x16x32xbf16> to vector<32x32xbf16>
    %c0_3 = arith.constant 0 : index
    %c0_4 = arith.constant 0 : index
    %5 = vector.load %arg3[%c0_3, %c0_4] : memref<32x64xbf16, #tpu.memory_space<vmem>>, vector<32x64xbf16>
    %cst = arith.constant dense<0.000000e+00> : vector<32x64xf32>
    %6 = tpu.matmul %4, %5, %cst {dimension_numbers = #tpu.dot_dimension_numbers<[1], [0], [0], [1], [0, 0, 1, 1], [], []>} : vector<32x32xbf16>, vector<32x64xbf16>, vector<32x64xf32> -> vector<32x64xf32>
    %c0_5 = arith.constant 0 : index
    %c0_6 = arith.constant 0 : index
    %7 = vector.load %arg4[%c0_5, %c0_6] : memref<1x64xf32, #tpu.memory_space<vmem>>, vector<1x64xf32>
    %8 = vector.broadcast %7 : vector<1x64xf32> to vector<32x64xf32>
    %9 = arith.addf %6, %8 : vector<32x64xf32>
    %cst_7 = arith.constant 0.000000e+00 : f32
    %10 = vector.broadcast %cst_7 : f32 to vector<32x64xf32>
    %11 = arith.maximumf %9, %10 : vector<32x64xf32>
    %c0_8 = arith.constant 0 : index
    %c0_9 = arith.constant 0 : index
    %12 = vector.load %arg5[%c0_8, %c0_9] : memref<64x128xbf16, #tpu.memory_space<vmem>>, vector<64x128xbf16>
    %13 = arith.truncf %11 : vector<32x64xf32> to vector<32x64xbf16>
    %cst_10 = arith.constant dense<0.000000e+00> : vector<32x128xf32>
    %14 = tpu.matmul %13, %12, %cst_10 {dimension_numbers = #tpu.dot_dimension_numbers<[1], [0], [0], [1], [0, 0, 1, 1], [], []>} : vector<32x64xbf16>, vector<64x128xbf16>, vector<32x128xf32> -> vector<32x128xf32>
    %c0_11 = arith.constant 0 : index
    %c0_12 = arith.constant 0 : index
    %15 = vector.load %arg6[%c0_11, %c0_12] : memref<1x128xf32, #tpu.memory_space<vmem>>, vector<1x128xf32>
    %16 = vector.broadcast %15 : vector<1x128xf32> to vector<32x128xf32>
    %17 = arith.addf %14, %16 : vector<32x128xf32>
    %cst_13 = arith.constant 0.000000e+00 : f32
    %18 = vector.broadcast %cst_13 : f32 to vector<32x128xf32>
    %19 = arith.maximumf %17, %18 : vector<32x128xf32>
    %c0_14 = arith.constant 0 : index
    %c0_15 = arith.constant 0 : index
    %20 = vector.load %arg7[%c0_14, %c0_15] : memref<128x1024xbf16, #tpu.memory_space<vmem>>, vector<128x1024xbf16>
    %21 = arith.truncf %19 : vector<32x128xf32> to vector<32x128xbf16>
    %cst_16 = arith.constant dense<0.000000e+00> : vector<32x1024xf32>
    %22 = tpu.matmul %21, %20, %cst_16 {dimension_numbers = #tpu.dot_dimension_numbers<[1], [0], [0], [1], [0, 0, 1, 1], [], []>} : vector<32x128xbf16>, vector<128x1024xbf16>, vector<32x1024xf32> -> vector<32x1024xf32>
    %23 = vector.shape_cast %22 : vector<32x1024xf32> to vector<2x16x1024xf32>
    %c0_17 = arith.constant 0 : index
    %c0_18 = arith.constant 0 : index
    %24 = vector.load %arg16[%c0_17, %c0_18] : memref<2x1024xf32, #tpu.memory_space<vmem>>, vector<2x1024xf32>
    %cst_19 = arith.constant dense<0xFF800000> : vector<2x1024xf32>
    %25 = vector.multi_reduction <maximumf>, %23, %cst_19 [1] : vector<2x16x1024xf32> to vector<2x1024xf32>
    %26 = arith.maximumf %24, %25 : vector<2x1024xf32>
    %c0_20 = arith.constant 0 : index
    %c0_21 = arith.constant 0 : index
    %27 = vector.load %arg16[%c0_20, %c0_21] : memref<2x1024xf32, #tpu.memory_space<vmem>>, vector<2x1024xf32>
    tpu.vector_store %arg16[%c0_20, %c0_21], %26 {strides = array<i32>} : memref<2x1024xf32, #tpu.memory_space<vmem>>, vector<2x1024xf32>,
    %c0_i32_22 = arith.constant 0 : i32
    %28 = arith.cmpi eq, %arg1, %c0_i32_22 : i32
    %29 = arith.extui %28 : i1 to i32
    %c0_i32_23 = arith.constant 0 : i32
    %30 = arith.cmpi ne, %29, %c0_i32_23 : i32
    scf.if %30 {
      %c0_24 = arith.constant 0 : index
      %c0_25 = arith.constant 0 : index
      %31 = vector.load %arg16[%c0_24, %c0_25] : memref<2x1024xf32, #tpu.memory_space<vmem>>, vector<2x1024xf32>
      %c0_26 = arith.constant 0 : index
      %c0_27 = arith.constant 0 : index
      %32 = vector.load %arg8[%c0_26, %c0_27] : memref<1x1024xf32, #tpu.memory_space<vmem>>, vector<1x1024xf32>
      %33 = vector.broadcast %32 : vector<1x1024xf32> to vector<2x1024xf32>
      %34 = arith.addf %31, %33 : vector<2x1024xf32>
      %c0_28 = arith.constant 0 : index
      %c0_29 = arith.constant 0 : index
      %35 = vector.load %arg9[%c0_28, %c0_29] : memref<1024x512xbf16, #tpu.memory_space<vmem>>, vector<1024x512xbf16>
      %36 = arith.truncf %34 : vector<2x1024xf32> to vector<2x1024xbf16>
      %cst_30 = arith.constant dense<0.000000e+00> : vector<2x512xf32>
      %37 = tpu.matmul %36, %35, %cst_30 {dimension_numbers = #tpu.dot_dimension_numbers<[1], [0], [0], [1], [0, 0, 1, 1], [], []>} : vector<2x1024xbf16>, vector<1024x512xbf16>, vector<2x512xf32> -> vector<2x512xf32>
      %c0_31 = arith.constant 0 : index
      %c0_32 = arith.constant 0 : index
      %38 = vector.load %arg10[%c0_31, %c0_32] : memref<1x512xf32, #tpu.memory_space<vmem>>, vector<1x512xf32>
      %39 = vector.broadcast %38 : vector<1x512xf32> to vector<2x512xf32>
      %40 = arith.addf %37, %39 : vector<2x512xf32>
      %cst_33 = arith.constant 0.000000e+00 : f32
      %41 = vector.broadcast %cst_33 : f32 to vector<2x512xf32>
      %42 = arith.maximumf %40, %41 : vector<2x512xf32>
      %c0_34 = arith.constant 0 : index
      %c0_35 = arith.constant 0 : index
      %43 = vector.load %arg11[%c0_34, %c0_35] : memref<512x256xbf16, #tpu.memory_space<vmem>>, vector<512x256xbf16>
      %44 = arith.truncf %42 : vector<2x512xf32> to vector<2x512xbf16>
      %cst_36 = arith.constant dense<0.000000e+00> : vector<2x256xf32>
      %45 = tpu.matmul %44, %43, %cst_36 {dimension_numbers = #tpu.dot_dimension_numbers<[1], [0], [0], [1], [0, 0, 1, 1], [], []>} : vector<2x512xbf16>, vector<512x256xbf16>, vector<2x256xf32> -> vector<2x256xf32>
      %c0_37 = arith.constant 0 : index
      %c0_38 = arith.constant 0 : index
      %46 = vector.load %arg12[%c0_37, %c0_38] : memref<1x256xf32, #tpu.memory_space<vmem>>, vector<1x256xf32>
      %47 = vector.broadcast %46 : vector<1x256xf32> to vector<2x256xf32>
      %48 = arith.addf %45, %47 : vector<2x256xf32>
      %cst_39 = arith.constant 0.000000e+00 : f32
      %49 = vector.broadcast %cst_39 : f32 to vector<2x256xf32>
      %50 = arith.maximumf %48, %49 : vector<2x256xf32>
      %c0_40 = arith.constant 0 : index
      %c0_41 = arith.constant 0 : index
      %51 = vector.load %arg13[%c0_40, %c0_41] : memref<256x128xbf16, #tpu.memory_space<vmem>>, vector<256x128xbf16>
      %52 = arith.truncf %50 : vector<2x256xf32> to vector<2x256xbf16>
      %cst_42 = arith.constant dense<0.000000e+00> : vector<2x128xf32>
      %53 = tpu.matmul %52, %51, %cst_42 {dimension_numbers = #tpu.dot_dimension_numbers<[1], [0], [0], [1], [0, 0, 1, 1], [], []>} : vector<2x256xbf16>, vector<256x128xbf16>, vector<2x128xf32> -> vector<2x128xf32>
      %c0_43 = arith.constant 0 : index
      %c0_44 = arith.constant 0 : index
      %54 = vector.load %arg14[%c0_43, %c0_44] : memref<1x128xf32, #tpu.memory_space<vmem>>, vector<1x128xf32>
      %55 = vector.broadcast %54 : vector<1x128xf32> to vector<2x128xf32>
      %56 = arith.addf %53, %55 : vector<2x128xf32>
      %c0_45 = arith.constant 0 : index
      %c0_46 = arith.constant 0 : index
      %57 = vector.load %arg15[%c0_45, %c0_46] : memref<2x128xf32, #tpu.memory_space<vmem>>, vector<2x128xf32>
      tpu.vector_store %arg15[%c0_45, %c0_46], %56 {strides = array<i32>} : memref<2x128xf32, #tpu.memory_space<vmem>>, vector<2x128xf32>,
    } else {
    }
    return
  }
  func.func @transform_0(%arg0: i32, %arg1: i32) -> (i32, i32, i32) {
    %c0_i32 = arith.constant 0 : i32
    %c0_i32_0 = arith.constant 0 : i32
    return %arg0, %arg1, %c0_i32 : i32, i32, i32
  }
  func.func @transform_1(%arg0: i32, %arg1: i32) -> (i32, i32) {
    %c0_i32 = arith.constant 0 : i32
    %c0_i32_0 = arith.constant 0 : i32
    %c0_i32_1 = arith.constant 0 : i32
    return %c0_i32, %c0_i32_0 : i32, i32
  }
  func.func @transform_2(%arg0: i32, %arg1: i32) -> (i32, i32) {
    %c0_i32 = arith.constant 0 : i32
    %c0_i32_0 = arith.constant 0 : i32
    %c0_i32_1 = arith.constant 0 : i32
    return %c0_i32, %c0_i32_0 : i32, i32
  }
  func.func @transform_3(%arg0: i32, %arg1: i32) -> (i32, i32) {
    %c0_i32 = arith.constant 0 : i32
    %c0_i32_0 = arith.constant 0 : i32
    %c0_i32_1 = arith.constant 0 : i32
    return %c0_i32, %c0_i32_0 : i32, i32
  }
  func.func @transform_4(%arg0: i32, %arg1: i32) -> (i32, i32) {
    %c0_i32 = arith.constant 0 : i32
    %c0_i32_0 = arith.constant 0 : i32
    %c0_i32_1 = arith.constant 0 : i32
    return %c0_i32, %c0_i32_0 : i32, i32
  }
  func.func @transform_5(%arg0: i32, %arg1: i32) -> (i32, i32) {
    %c0_i32 = arith.constant 0 : i32
    %c0_i32_0 = arith.constant 0 : i32
    %c0_i32_1 = arith.constant 0 : i32
    return %c0_i32, %c0_i32_0 : i32, i32
  }
  func.func @transform_6(%arg0: i32, %arg1: i32) -> (i32, i32) {
    %c0_i32 = arith.constant 0 : i32
    %c0_i32_0 = arith.constant 0 : i32
    %c0_i32_1 = arith.constant 0 : i32
    return %c0_i32, %c0_i32_0 : i32, i32
  }
  func.func @transform_7(%arg0: i32, %arg1: i32) -> (i32, i32) {
    %c0_i32 = arith.constant 0 : i32
    %c0_i32_0 = arith.constant 0 : i32
    %c0_i32_1 = arith.constant 0 : i32
    return %c0_i32, %c0_i32_0 : i32, i32
  }
  func.func @transform_8(%arg0: i32, %arg1: i32) -> (i32, i32) {
    %c0_i32 = arith.constant 0 : i32
    %c0_i32_0 = arith.constant 0 : i32
    %c0_i32_1 = arith.constant 0 : i32
    return %c0_i32, %c0_i32_0 : i32, i32
  }
  func.func @transform_9(%arg0: i32, %arg1: i32) -> (i32, i32) {
    %c0_i32 = arith.constant 0 : i32
    %c0_i32_0 = arith.constant 0 : i32
    %c0_i32_1 = arith.constant 0 : i32
    return %c0_i32, %c0_i32_0 : i32, i32
  }
  func.func @transform_10(%arg0: i32, %arg1: i32) -> (i32, i32) {
    %c0_i32 = arith.constant 0 : i32
    %c0_i32_0 = arith.constant 0 : i32
    %c0_i32_1 = arith.constant 0 : i32
    return %c0_i32, %c0_i32_0 : i32, i32
  }
  func.func @transform_11(%arg0: i32, %arg1: i32) -> (i32, i32) {
    %c0_i32 = arith.constant 0 : i32
    %c0_i32_0 = arith.constant 0 : i32
    %c0_i32_1 = arith.constant 0 : i32
    return %c0_i32, %c0_i32_0 : i32, i32
  }
  func.func @transform_12(%arg0: i32, %arg1: i32) -> (i32, i32) {
    %c0_i32 = arith.constant 0 : i32
    %c0_i32_0 = arith.constant 0 : i32
    %c0_i32_1 = arith.constant 0 : i32
    return %c0_i32, %c0_i32_0 : i32, i32
  }
  func.func @transform_13(%arg0: i32, %arg1: i32) -> (i32, i32) {
    %c0_i32 = arith.constant 0 : i32
    %c0_i32_0 = arith.constant 0 : i32
    return %arg0, %c0_i32 : i32, i32
  }
}

module attributes {stable_mosaic.version = 11 : i64} {
  func.func @gnp_encoder_kernel(%arg0: i32, %arg1: i32, %arg2: memref<2x16x32xbf16, #tpu.memory_space<vmem>>, %arg3: memref<32x64xbf16, #tpu.memory_space<vmem>>, %arg4: memref<1x64xf32, #tpu.memory_space<vmem>>, %arg5: memref<64x128xbf16, #tpu.memory_space<vmem>>, %arg6: memref<1x128xf32, #tpu.memory_space<vmem>>, %arg7: memref<128x1024xbf16, #tpu.memory_space<vmem>>, %arg8: memref<1x1024xf32, #tpu.memory_space<vmem>>, %arg9: memref<1024x512xbf16, #tpu.memory_space<vmem>>, %arg10: memref<1x512xf32, #tpu.memory_space<vmem>>, %arg11: memref<512x256xbf16, #tpu.memory_space<vmem>>, %arg12: memref<1x256xf32, #tpu.memory_space<vmem>>, %arg13: memref<256x128xbf16, #tpu.memory_space<vmem>>, %arg14: memref<1x128xf32, #tpu.memory_space<vmem>>, %arg15: memref<2x128xf32, #tpu.memory_space<vmem>>, %arg16: memref<2x1024xf32, #tpu.memory_space<vmem>>) attributes {dimension_semantics = [#tpu.dimension_semantics<parallel>, #tpu.dimension_semantics<arbitrary>], iteration_bounds = array<i64: 1, 1>, scalar_prefetch = 0 : i64, scratch_operands = 1 : i64, tpu.core_type = #tpu.core_type<tc>, window_params = [{transform_indices = @transform_0, window_bounds = array<i64: 2, 16, 32>}, {pipeline_mode = #tpu.pipeline_mode<synchronous>, transform_indices = @transform_1, window_bounds = array<i64: 32, 64>}, {pipeline_mode = #tpu.pipeline_mode<synchronous>, transform_indices = @transform_2, window_bounds = array<i64: 1, 64>}, {pipeline_mode = #tpu.pipeline_mode<synchronous>, transform_indices = @transform_3, window_bounds = array<i64: 64, 128>}, {pipeline_mode = #tpu.pipeline_mode<synchronous>, transform_indices = @transform_4, window_bounds = array<i64: 1, 128>}, {pipeline_mode = #tpu.pipeline_mode<synchronous>, transform_indices = @transform_5, window_bounds = array<i64: 128, 1024>}, {pipeline_mode = #tpu.pipeline_mode<synchronous>, transform_indices = @transform_6, window_bounds = array<i64: 1, 1024>}, {pipeline_mode = #tpu.pipeline_mode<synchronous>, transform_indices = @transform_7, window_bounds = array<i64: 1024, 512>}, {pipeline_mode = #tpu.pipeline_mode<synchronous>, transform_indices = @transform_8, window_bounds = array<i64: 1, 512>}, {pipeline_mode = #tpu.pipeline_mode<synchronous>, transform_indices = @transform_9, window_bounds = array<i64: 512, 256>}, {pipeline_mode = #tpu.pipeline_mode<synchronous>, transform_indices = @transform_10, window_bounds = array<i64: 1, 256>}, {pipeline_mode = #tpu.pipeline_mode<synchronous>, transform_indices = @transform_11, window_bounds = array<i64: 256, 128>}, {pipeline_mode = #tpu.pipeline_mode<synchronous>, transform_indices = @transform_12, window_bounds = array<i64: 1, 128>}, {transform_indices = @transform_13, window_bounds = array<i64: 2, 128>}]} {
    %c0_i32 = arith.constant 0 : i32
    %0 = arith.cmpi eq, %arg1, %c0_i32 : i32
    %1 = arith.extui %0 : i1 to i32
    %c0_i32_0 = arith.constant 0 : i32
    %2 = arith.cmpi ne, %1, %c0_i32_0 : i32
    scf.if %2 {
      %cst_24 = arith.constant 0xFF800000 : f32
      %31 = vector.broadcast %cst_24 : f32 to vector<2x1024xf32>
      %c0_25 = arith.constant 0 : index
      %c0_26 = arith.constant 0 : index
      %32 = vector.load %arg16[%c0_25, %c0_26] : memref<2x1024xf32, #tpu.memory_space<vmem>>, vector<2x1024xf32>
      tpu.vector_store %arg16[%c0_25, %c0_26], %31 {strides = array<i32>} : memref<2x1024xf32, #tpu.memory_space<vmem>>, vector<2x1024xf32>,
    } else {
    }
    %c0 = arith.constant 0 : index
    %c0_1 = arith.constant 0 : index
    %c0_2 = arith.constant 0 : index
    %3 = vector.load %arg2[%c0, %c0_1, %c0_2] : memref<2x16x32xbf16, #tpu.memory_space<vmem>>, vector<2x16x32xbf16>
    %4 = vector.shape_cast %3 : vector<2x16x32xbf16> to vector<32x32xbf16>
    %c0_3 = arith.constant 0 : index
    %c0_4 = arith.constant 0 : index
    %5 = vector.load %arg3[%c0_3, %c0_4] : memref<32x64xbf16, #tpu.memory_space<vmem>>, vector<32x64xbf16>
    %cst = arith.constant dense<0.000000e+00> : vector<32x64xf32>
    %6 = tpu.matmul %4, %5, %cst {dimension_numbers = #tpu.dot_dimension_numbers<[1], [0], [0], [1], [0, 0, 1, 1], [], []>} : vector<32x32xbf16>, vector<32x64xbf16>, vector<32x64xf32> -> vector<32x64xf32>
    %c0_5 = arith.constant 0 : index
    %c0_6 = arith.constant 0 : index
    %7 = vector.load %arg4[%c0_5, %c0_6] : memref<1x64xf32, #tpu.memory_space<vmem>>, vector<1x64xf32>
    %8 = vector.broadcast %7 : vector<1x64xf32> to vector<32x64xf32>
    %9 = arith.addf %6, %8 : vector<32x64xf32>
    %cst_7 = arith.constant 0.000000e+00 : f32
    %10 = vector.broadcast %cst_7 : f32 to vector<32x64xf32>
    %11 = arith.maximumf %9, %10 : vector<32x64xf32>
    %c0_8 = arith.constant 0 : index
    %c0_9 = arith.constant 0 : index
    %12 = vector.load %arg5[%c0_8, %c0_9] : memref<64x128xbf16, #tpu.memory_space<vmem>>, vector<64x128xbf16>
    %13 = arith.truncf %11 : vector<32x64xf32> to vector<32x64xbf16>
    %cst_10 = arith.constant dense<0.000000e+00> : vector<32x128xf32>
    %14 = tpu.matmul %13, %12, %cst_10 {dimension_numbers = #tpu.dot_dimension_numbers<[1], [0], [0], [1], [0, 0, 1, 1], [], []>} : vector<32x64xbf16>, vector<64x128xbf16>, vector<32x128xf32> -> vector<32x128xf32>
    %c0_11 = arith.constant 0 : index
    %c0_12 = arith.constant 0 : index
    %15 = vector.load %arg6[%c0_11, %c0_12] : memref<1x128xf32, #tpu.memory_space<vmem>>, vector<1x128xf32>
    %16 = vector.broadcast %15 : vector<1x128xf32> to vector<32x128xf32>
    %17 = arith.addf %14, %16 : vector<32x128xf32>
    %cst_13 = arith.constant 0.000000e+00 : f32
    %18 = vector.broadcast %cst_13 : f32 to vector<32x128xf32>
    %19 = arith.maximumf %17, %18 : vector<32x128xf32>
    %c0_14 = arith.constant 0 : index
    %c0_15 = arith.constant 0 : index
    %20 = vector.load %arg7[%c0_14, %c0_15] : memref<128x1024xbf16, #tpu.memory_space<vmem>>, vector<128x1024xbf16>
    %21 = arith.truncf %19 : vector<32x128xf32> to vector<32x128xbf16>
    %cst_16 = arith.constant dense<0.000000e+00> : vector<32x1024xf32>
    %22 = tpu.matmul %21, %20, %cst_16 {dimension_numbers = #tpu.dot_dimension_numbers<[1], [0], [0], [1], [0, 0, 1, 1], [], []>} : vector<32x128xbf16>, vector<128x1024xbf16>, vector<32x1024xf32> -> vector<32x1024xf32>
    %23 = vector.shape_cast %22 : vector<32x1024xf32> to vector<2x16x1024xf32>
    %c0_17 = arith.constant 0 : index
    %c0_18 = arith.constant 0 : index
    %24 = vector.load %arg16[%c0_17, %c0_18] : memref<2x1024xf32, #tpu.memory_space<vmem>>, vector<2x1024xf32>
    %cst_19 = arith.constant dense<0xFF800000> : vector<2x1024xf32>
    %25 = vector.multi_reduction <maximumf>, %23, %cst_19 [1] : vector<2x16x1024xf32> to vector<2x1024xf32>
    %26 = arith.maximumf %24, %25 : vector<2x1024xf32>
    %c0_20 = arith.constant 0 : index
    %c0_21 = arith.constant 0 : index
    %27 = vector.load %arg16[%c0_20, %c0_21] : memref<2x1024xf32, #tpu.memory_space<vmem>>, vector<2x1024xf32>
    tpu.vector_store %arg16[%c0_20, %c0_21], %26 {strides = array<i32>} : memref<2x1024xf32, #tpu.memory_space<vmem>>, vector<2x1024xf32>,
    %c0_i32_22 = arith.constant 0 : i32
    %28 = arith.cmpi eq, %arg1, %c0_i32_22 : i32
    %29 = arith.extui %28 : i1 to i32
    %c0_i32_23 = arith.constant 0 : i32
    %30 = arith.cmpi ne, %29, %c0_i32_23 : i32
    scf.if %30 {
      %c0_24 = arith.constant 0 : index
      %c0_25 = arith.constant 0 : index
      %31 = vector.load %arg16[%c0_24, %c0_25] : memref<2x1024xf32, #tpu.memory_space<vmem>>, vector<2x1024xf32>
      %c0_26 = arith.constant 0 : index
      %c0_27 = arith.constant 0 : index
      %32 = vector.load %arg8[%c0_26, %c0_27] : memref<1x1024xf32, #tpu.memory_space<vmem>>, vector<1x1024xf32>
      %33 = vector.broadcast %32 : vector<1x1024xf32> to vector<2x1024xf32>
      %34 = arith.addf %31, %33 : vector<2x1024xf32>
      %c0_28 = arith.constant 0 : index
      %c0_29 = arith.constant 0 : index
      %35 = vector.load %arg9[%c0_28, %c0_29] : memref<1024x512xbf16, #tpu.memory_space<vmem>>, vector<1024x512xbf16>
      %36 = arith.truncf %34 : vector<2x1024xf32> to vector<2x1024xbf16>
      %cst_30 = arith.constant dense<0.000000e+00> : vector<2x512xf32>
      %37 = tpu.matmul %36, %35, %cst_30 {dimension_numbers = #tpu.dot_dimension_numbers<[1], [0], [0], [1], [0, 0, 1, 1], [], []>} : vector<2x1024xbf16>, vector<1024x512xbf16>, vector<2x512xf32> -> vector<2x512xf32>
      %c0_31 = arith.constant 0 : index
      %c0_32 = arith.constant 0 : index
      %38 = vector.load %arg10[%c0_31, %c0_32] : memref<1x512xf32, #tpu.memory_space<vmem>>, vector<1x512xf32>
      %39 = vector.broadcast %38 : vector<1x512xf32> to vector<2x512xf32>
      %40 = arith.addf %37, %39 : vector<2x512xf32>
      %cst_33 = arith.constant 0.000000e+00 : f32
      %41 = vector.broadcast %cst_33 : f32 to vector<2x512xf32>
      %42 = arith.maximumf %40, %41 : vector<2x512xf32>
      %c0_34 = arith.constant 0 : index
      %c0_35 = arith.constant 0 : index
      %43 = vector.load %arg11[%c0_34, %c0_35] : memref<512x256xbf16, #tpu.memory_space<vmem>>, vector<512x256xbf16>
      %44 = arith.truncf %42 : vector<2x512xf32> to vector<2x512xbf16>
      %cst_36 = arith.constant dense<0.000000e+00> : vector<2x256xf32>
      %45 = tpu.matmul %44, %43, %cst_36 {dimension_numbers = #tpu.dot_dimension_numbers<[1], [0], [0], [1], [0, 0, 1, 1], [], []>} : vector<2x512xbf16>, vector<512x256xbf16>, vector<2x256xf32> -> vector<2x256xf32>
      %c0_37 = arith.constant 0 : index
      %c0_38 = arith.constant 0 : index
      %46 = vector.load %arg12[%c0_37, %c0_38] : memref<1x256xf32, #tpu.memory_space<vmem>>, vector<1x256xf32>
      %47 = vector.broadcast %46 : vector<1x256xf32> to vector<2x256xf32>
      %48 = arith.addf %45, %47 : vector<2x256xf32>
      %cst_39 = arith.constant 0.000000e+00 : f32
      %49 = vector.broadcast %cst_39 : f32 to vector<2x256xf32>
      %50 = arith.maximumf %48, %49 : vector<2x256xf32>
      %c0_40 = arith.constant 0 : index
      %c0_41 = arith.constant 0 : index
      %51 = vector.load %arg13[%c0_40, %c0_41] : memref<256x128xbf16, #tpu.memory_space<vmem>>, vector<256x128xbf16>
      %52 = arith.truncf %50 : vector<2x256xf32> to vector<2x256xbf16>
      %cst_42 = arith.constant dense<0.000000e+00> : vector<2x128xf32>
      %53 = tpu.matmul %52, %51, %cst_42 {dimension_numbers = #tpu.dot_dimension_numbers<[1], [0], [0], [1], [0, 0, 1, 1], [], []>} : vector<2x256xbf16>, vector<256x128xbf16>, vector<2x128xf32> -> vector<2x128xf32>
      %c0_43 = arith.constant 0 : index
      %c0_44 = arith.constant 0 : index
      %54 = vector.load %arg14[%c0_43, %c0_44] : memref<1x128xf32, #tpu.memory_space<vmem>>, vector<1x128xf32>
      %55 = vector.broadcast %54 : vector<1x128xf32> to vector<2x128xf32>
      %56 = arith.addf %53, %55 : vector<2x128xf32>
      %c0_45 = arith.constant 0 : index
      %c0_46 = arith.constant 0 : index
      %57 = vector.load %arg15[%c0_45, %c0_46] : memref<2x128xf32, #tpu.memory_space<vmem>>, vector<2x128xf32>
      tpu.vector_store %arg15[%c0_45, %c0_46], %56 {strides = array<i32>} : memref<2x128xf32, #tpu.memory_space<vmem>>, vector<2x128xf32>,
    } else {
    }
    return
  }
  func.func @transform_0(%arg0: i32, %arg1: i32) -> (i32, i32, i32) {
    %c0_i32 = arith.constant 0 : i32
    %c0_i32_0 = arith.constant 0 : i32
    return %arg0, %arg1, %c0_i32 : i32, i32, i32
  }
  func.func @transform_1(%arg0: i32, %arg1: i32) -> (i32, i32) {
    %c0_i32 = arith.constant 0 : i32
    %c0_i32_0 = arith.constant 0 : i32
    %c0_i32_1 = arith.constant 0 : i32
    return %c0_i32, %c0_i32_0 : i32, i32
  }
  func.func @transform_2(%arg0: i32, %arg1: i32) -> (i32, i32) {
    %c0_i32 = arith.constant 0 : i32
    %c0_i32_0 = arith.constant 0 : i32
    %c0_i32_1 = arith.constant 0 : i32
    return %c0_i32, %c0_i32_0 : i32, i32
  }
  func.func @transform_3(%arg0: i32, %arg1: i32) -> (i32, i32) {
    %c0_i32 = arith.constant 0 : i32
    %c0_i32_0 = arith.constant 0 : i32
    %c0_i32_1 = arith.constant 0 : i32
    return %c0_i32, %c0_i32_0 : i32, i32
  }
  func.func @transform_4(%arg0: i32, %arg1: i32) -> (i32, i32) {
    %c0_i32 = arith.constant 0 : i32
    %c0_i32_0 = arith.constant 0 : i32
    %c0_i32_1 = arith.constant 0 : i32
    return %c0_i32, %c0_i32_0 : i32, i32
  }
  func.func @transform_5(%arg0: i32, %arg1: i32) -> (i32, i32) {
    %c0_i32 = arith.constant 0 : i32
    %c0_i32_0 = arith.constant 0 : i32
    %c0_i32_1 = arith.constant 0 : i32
    return %c0_i32, %c0_i32_0 : i32, i32
  }
  func.func @transform_6(%arg0: i32, %arg1: i32) -> (i32, i32) {
    %c0_i32 = arith.constant 0 : i32
    %c0_i32_0 = arith.constant 0 : i32
    %c0_i32_1 = arith.constant 0 : i32
    return %c0_i32, %c0_i32_0 : i32, i32
  }
  func.func @transform_7(%arg0: i32, %arg1: i32) -> (i32, i32) {
    %c0_i32 = arith.constant 0 : i32
    %c0_i32_0 = arith.constant 0 : i32
    %c0_i32_1 = arith.constant 0 : i32
    return %c0_i32, %c0_i32_0 : i32, i32
  }
  func.func @transform_8(%arg0: i32, %arg1: i32) -> (i32, i32) {
    %c0_i32 = arith.constant 0 : i32
    %c0_i32_0 = arith.constant 0 : i32
    %c0_i32_1 = arith.constant 0 : i32
    return %c0_i32, %c0_i32_0 : i32, i32
  }
  func.func @transform_9(%arg0: i32, %arg1: i32) -> (i32, i32) {
    %c0_i32 = arith.constant 0 : i32
    %c0_i32_0 = arith.constant 0 : i32
    %c0_i32_1 = arith.constant 0 : i32
    return %c0_i32, %c0_i32_0 : i32, i32
  }
  func.func @transform_10(%arg0: i32, %arg1: i32) -> (i32, i32) {
    %c0_i32 = arith.constant 0 : i32
    %c0_i32_0 = arith.constant 0 : i32
    %c0_i32_1 = arith.constant 0 : i32
    return %c0_i32, %c0_i32_0 : i32, i32
  }
  func.func @transform_11(%arg0: i32, %arg1: i32) -> (i32, i32) {
    %c0_i32 = arith.constant 0 : i32
    %c0_i32_0 = arith.constant 0 : i32
    %c0_i32_1 = arith.constant 0 : i32
    return %c0_i32, %c0_i32_0 : i32, i32
  }
  func.func @transform_12(%arg0: i32, %arg1: i32) -> (i32, i32) {
    %c0_i32 = arith.constant 0 : i32
    %c0_i32_0 = arith.constant 0 : i32
    %c0_i32_1 = arith.constant 0 : i32
    return %c0_i32, %c0_i32_0 : i32, i32
  }
  func.func @transform_13(%arg0: i32, %arg1: i32) -> (i32, i32) {
    %c0_i32 = arith.constant 0 : i32
    %c0_i32_0 = arith.constant 0 : i32
    return %arg0, %c0_i32 : i32, i32
  }
}

</mosaic_0001>

<bundles_post_ra>
// kernel: tpu_custom_call.1
= control target key start
LH: loop header
LB: loop body
LE: loop exit
PB: predicated region body
PF: predicated region fallthrough
CT: control target
= control target key end

     0   :  { %18 = vsyncpa [#allocation4], 0  ;;  %s5387_s0 = inlined_call_operand.hbm [shape: bf16[2,16,32], index: 0, kind: input, shape index: {}]   ;;  %s5388_s1 = inlined_call_operand.hbm [shape: bf16[32,64], index: 1, kind: input, shape index: {}]   ;;  %s5389_s2 = inlined_call_operand.hbm [shape: f32[1,64], index: 2, kind: input, shape index: {}]   ;;  %s5390_s3 = inlined_call_operand.hbm [shape: bf16[64,128], index: 3, kind: input, shape index: {}]   ;;  %s5391_s4 = inlined_call_operand.hbm [shape: f32[1,128], index: 4, kind: input, shape index: {}]   ;;  %s5392_s5 = inlined_call_operand.hbm [shape: bf16[128,1024], index: 5, kind: input, shape index: {}]   ;;  %s5393_s6 = inlined_call_operand.vmem [shape: f32[1,1024], index: 6, kind: input, shape index: {}]   ;;  %s5394_s7 = inlined_call_operand.hbm [shape: bf16[1024,512], index: 7, kind: input, shape index: {}]   ;;  %s5395_s8 = inlined_call_operand.vmem [shape: f32[1,512], index: 8, kind: input, shape index: {}]   ;;  %s5396_s9 = inlined_call_operand.hbm [shape: bf16[512,256], index: 9, kind: input, shape index: {}]   ;;  %s5397_s10 = inlined_call_operand.vmem [shape: f32[1,256], index: 10, kind: input, shape index: {}]   ;;  %s5398_s11 = inlined_call_operand.hbm [shape: bf16[256,128], index: 11, kind: input, shape index: {}]   ;;  %s5399_s12 = inlined_call_operand.vmem [shape: f32[1,128], index: 12, kind: input, shape index: {}]   ;;  %s5400_s13 = inlined_call_operand.hbm [shape: f32[2,128], index: 13, kind: output, shape index: {}]  }
   0x1   :  { %19 = vsyncpa [#allocation7], 0 }
   0x2   :  { %20 = vsyncpa [#allocation10], 0 }
   0x3   :  { %21 = vsyncpa [#allocation13], 0 }
   0x4   :  { %22 = vsyncpa [#allocation16], 0 }
   0x5   :  { %23 = vsyncpa [#allocation5], 0  ;;  %s5093_s25 = smov [#allocation6]   ;;  %s5094_s27 = smov [#allocation9]  }
   0x6   :  { %s41_s26 = sshll.u32 %s5093_s25, 4  ;;  %s63_s28 = sshll.u32 %s5094_s27, 4  ;;  %s42_s26 = int_to_ptr.vmem [resolvable:$true] %s41_s26  ;;  %s64_s28 = int_to_ptr.vmem [resolvable:$true] %s63_s28 }
   0x7   :  { %s4889_s29 = scalar_lea.vmem %s42_s26, 256  ;;  %p4894_p1 = scmp.lt.s32.totalorder %s42_s26, %s42_s26 }
   0x8   :  { %p4890_p0 = scmp.ne.s32.totalorder %s42_s26, %s4889_s29  ;;  %p4895_p2 = scmp.lt.s32.totalorder %s4889_s29, %s4889_s29 }
   0xa   :  { %p4896_p3 = por %p4895_p2, %p4894_p1 }
   0xc   :  { %p4897_p4 = pnand %p4896_p3, %p4890_p0 }
   0xe   :  { %4900 = shalt.err (!%p4897_p4)
}
   0xf   :  { %s5095_s30 = smov 64   ;;  %s5096_s14 = smov 4  }
  0x10   :  { %47 = dma.hbm_to_vmem [thread:$0]  %s5388_s1, 256, %s42_s26, [#allocation7], %s5095_s30, %s5095_s30, %s5096_s14  }
  0x11   :  { %s4909_s17 = scalar_lea.vmem %s64_s28, 512  ;;  %p4914_p6 = scmp.lt.s32.totalorder %s64_s28, %s64_s28 }
  0x12   :  { %p4910_p5 = scmp.ne.s32.totalorder %s64_s28, %s4909_s17  ;;  %p4915_p7 = scmp.lt.s32.totalorder %s4909_s17, %s4909_s17 }
  0x14   :  { %p4916_p8 = por %p4915_p7, %p4914_p6 }
  0x16   :  { %p4917_p9 = pnand %p4916_p8, %p4910_p5 }
  0x18   :  { %4920 = shalt.err (!%p4917_p9)
}
  0x19   :  { %69 = dma.hbm_to_vmem [thread:$0]  %s5390_s3, 512, %s64_s28, [#allocation10], %s5095_s30, %s5095_s30, %s5096_s14  }
  0x1a   :  { %s5097_s20 = smov [#allocation12]  }
  0x1b   :  { %s85_s21 = sshll.u32 %s5097_s20, 4  ;;  %s86_s21 = int_to_ptr.vmem [resolvable:$true] %s85_s21 }
  0x1c   :  { %s4929_s22 = scalar_lea.vmem %s86_s21, 8192  ;;  %p4934_p11 = scmp.lt.s32.totalorder %s86_s21, %s86_s21 }
  0x1d   :  { %p4930_p10 = scmp.ne.s32.totalorder %s86_s21, %s4929_s22  ;;  %p4935_p12 = scmp.lt.s32.totalorder %s4929_s22, %s4929_s22 }
  0x1f   :  { %p4936_p13 = por %p4935_p12, %p4934_p11 }
  0x21   :  { %p4937_p0 = pnand %p4936_p13, %p4930_p10 }
  0x23   :  { %4940 = shalt.err (!%p4937_p0)
}
  0x24   :  { %s5098_s1 = smov 512   ;;  %s5099_s23 = smov 32  }
  0x25   :  { %91 = dma.hbm_to_vmem [thread:$0]  %s5392_s5, 8192, %s86_s21, [#allocation13], %s5098_s1, %s5098_s1, %s5099_s23  }
  0x26   :  { %s5100_s26 = smov [#allocation15]  }
  0x27   :  { %s113_s27 = sshll.u32 %s5100_s26, 4  ;;  %s114_s27 = int_to_ptr.vmem [resolvable:$true] %s113_s27 }
  0x28   :  { %s4949_s3 = scalar_lea.vmem %s114_s27, 8192  ;;  %p4954_p2 = scmp.lt.s32.totalorder %s114_s27, %s114_s27 }
  0x29   :  { %p4950_p1 = scmp.ne.s32.totalorder %s114_s27, %s4949_s3  ;;  %p4955_p3 = scmp.lt.s32.totalorder %s4949_s3, %s4949_s3 }
  0x2b   :  { %p4956_p4 = por %p4955_p3, %p4954_p2 }
  0x2d   :  { %p4957_p5 = pnand %p4956_p4, %p4950_p1 }
  0x2f   :  { %4960 = shalt.err (!%p4957_p5)
}
  0x30   :  { %s5101_s28 = smov 128   ;;  %s5102_s29 = smov 8  }
  0x31   :  { %119 = dma.hbm_to_vmem [thread:$0]  %s5396_s9, 8192, %s114_s27, [#allocation16], %s5101_s28, %s5101_s28, %s5102_s29  }
  0x32   :  { %s5103_s17 = smov [#allocation3]   ;;  %s5104_s19 = smov [#allocation8]  }
  0x33   :  { %s29_s18 = sshll.u32 %s5103_s17, 4  ;;  %s54_s5 = sshll.u32 %s5104_s19, 4  ;;  %s30_s18 = int_to_ptr.vmem [resolvable:$true] %s29_s18  ;;  %s55_s5 = int_to_ptr.vmem [resolvable:$true] %s54_s5 }
  0x34   :  { %s4969_s20 = scalar_lea.vmem %s30_s18, 256  ;;  %p4974_p7 = scmp.lt.s32.totalorder %s30_s18, %s30_s18 }
  0x35   :  { %p4970_p6 = scmp.ne.s32.totalorder %s30_s18, %s4969_s20  ;;  %p4975_p8 = scmp.lt.s32.totalorder %s4969_s20, %s4969_s20 }
  0x37   :  { %p4976_p9 = por %p4975_p8, %p4974_p7 }
  0x39   :  { %p4977_p10 = pnand %p4976_p9, %p4970_p6 }
  0x3b   :  { %4980 = shalt.err (!%p4977_p10)
}
  0x3c   :  { %35 = dma.hbm_to_vmem [thread:$0]  %s5387_s0, 256, %s30_s18, [#allocation4], %s5095_s30, %s5095_s30, %s5096_s14  }
  0x3d   :  { %s4989_s9 = scalar_lea.vmem %s55_s5, 16  ;;  %s4993_s1 = scalar_lea.vmem %s55_s5, 32 }
  0x3e   :  { %p4990_p11 = scmp.ne.s32.totalorder %s55_s5, %s4989_s9  ;;  %p4994_p12 = scmp.lt.s32.totalorder %s55_s5, %s55_s5 }
  0x3f   :  { %p4995_p13 = scmp.lt.s32.totalorder %s4993_s1, %s4989_s9 }
  0x41   :  { %p4996_p0 = por %p4995_p13, %p4994_p12 }
  0x43   :  { %p4997_p1 = pnand %p4996_p0, %p4990_p11 }
  0x45   :  { %5000 = shalt.err (!%p4997_p1)
}
  0x46   :  { %57 = dma.hbm_to_vmem [thread:$0]  %s5389_s2, 16, %s55_s5, [#allocation7]  }
  0x47   :  { %s5105_s25 = smov [#allocation11]   ;;  %s5106_s27 = smov [#allocation14]  }
  0x48   :  { %s76_s26 = sshll.u32 %s5105_s25, 4  ;;  %s99_s3 = sshll.u32 %s5106_s27, 4  ;;  %s77_s26 = int_to_ptr.vmem [resolvable:$true] %s76_s26  ;;  %s100_s3 = int_to_ptr.vmem [resolvable:$true] %s99_s3 }
  0x49   :  { %s5009_s28 = scalar_lea.vmem %s77_s26, 16  ;;  %s5013_s0 = scalar_lea.vmem %s77_s26, 32 }
  0x4a   :  { %p5010_p2 = scmp.ne.s32.totalorder %s77_s26, %s5009_s28  ;;  %p5014_p3 = scmp.lt.s32.totalorder %s77_s26, %s77_s26 }
  0x4b   :  { %p5015_p4 = scmp.lt.s32.totalorder %s5013_s0, %s5009_s28 }
  0x4d   :  { %p5016_p5 = por %p5015_p4, %p5014_p3 }
  0x4f   :  { %p5017_p6 = pnand %p5016_p5, %p5010_p2 }
  0x51   :  { %5020 = shalt.err (!%p5017_p6)
}
  0x52   :  { %79 = dma.hbm_to_vmem [thread:$0]  %s5391_s4, 16, %s77_s26, [#allocation10]  }
  0x53   :  { %s5029_s16 = scalar_lea.vmem %s100_s3, 32768  ;;  %p5034_p8 = scmp.lt.s32.totalorder %s100_s3, %s100_s3 }
  0x54   :  { %p5030_p7 = scmp.ne.s32.totalorder %s100_s3, %s5029_s16  ;;  %p5035_p9 = scmp.lt.s32.totalorder %s5029_s16, %s5029_s16 }
  0x56   :  { %p5036_p10 = por %p5035_p9, %p5034_p8 }
  0x58   :  { %p5037_p11 = pnand %p5036_p10, %p5030_p7 }
  0x5a   :  { %5040 = shalt.err (!%p5037_p11)
}
  0x5b   :  { %s5107_s2 = smov 256   ;;  %s5108_s17 = smov 16  }
  0x5c   :  { %105 = dma.hbm_to_vmem [thread:$0]  %s5394_s7, 32768, %s100_s3, [#allocation13], %s5107_s2, %s5107_s2, %s5108_s17  }
  0x5d   :  { %s5109_s5 = smov [#allocation17]  }
  0x5e   :  { %s127_s20 = sshll.u32 %s5109_s5, 4  ;;  %s128_s20 = int_to_ptr.vmem [resolvable:$true] %s127_s20 }
  0x5f   :  { %s5049_s21 = scalar_lea.vmem %s128_s20, 2048  ;;  %p5054_p13 = scmp.lt.s32.totalorder %s128_s20, %s128_s20 }
  0x60   :  { %p5050_p12 = scmp.ne.s32.totalorder %s128_s20, %s5049_s21  ;;  %p5055_p0 = scmp.lt.s32.totalorder %s5049_s21, %s5049_s21 }
  0x62   :  { %p5056_p1 = por %p5055_p0, %p5054_p13 }
  0x64   :  { %p5057_p2 = pnand %p5056_p1, %p5050_p12 }
  0x66   :  { %5060 = shalt.err (!%p5057_p2)
}
  0x67   :  { %133 = dma.hbm_to_vmem [thread:$0]  %s5398_s11, 2048, %s128_s20, [#allocation16], %s5095_s30, %s5095_s30, %s5096_s14  }
  0x68   :  { %5081 = dma.done.wait [#allocation4], 256  }
  0x69   :  { %5082 = vsyncadd [#allocation4], 4294967040 }
  0x6a   :  { %5083 = dma.done.wait [#allocation7], 272  }
  0x6b   :  { %5084 = vsyncadd [#allocation7], 4294967024 }
  0x6c   :  { %5085 = dma.done.wait [#allocation10], 528  }
  0x6d   :  { %5086 = vsyncadd [#allocation10], 4294966768 }
  0x6e   :  { %5087 = dma.done.wait [#allocation13], 40960  }
  0x6f   :  { %5088 = vsyncadd [#allocation13], 4294926336 }
  0x70   :  { %5089 = dma.done.wait [#allocation16], 10240  }
  0x71   :  { %5090 = vsyncadd [#allocation16], 4294957056  ;;  %v4377_v0 = vld [vmem:[#allocation6 + $0x8] sm:$0xff]   ;;  %v4378_v1 = vld [vmem:[#allocation6] sm:$0xff]   ;;  %vm207_vm0 = vcmask 261120   ;;  %vm308_vm1 = vcmask 523264  }
  0x72   :  { %4337 = vmatprep.subr.bf16.mxu1 %v4377_v0  ;;  %v4379_v2 = vld [vmem:[#allocation3] sm:$0xff]   ;;  %v4380_v3 = vld [vmem:[#allocation3 + $0x8] sm:$0xff]   ;;  %v4382_v5 = vld [vmem:[#allocation9 + $0x10] sm:$0xff]   ;;  %vm1169_vm2 = vcmask 1041409   ;;  %vm1171_vm3 = vcmask 1043459   ;;  %vm1173_vm4 = vcmask 1045509  }
  0x73   :  { %4338 = vmatpush3.bf16.msra.mxu1 %v4377_v0  ;;  %4341 = vmatprep.mubr.msk.bf16.mxu1 %vm207_vm0, %v4379_v2  ;;  %v4381_v4 = vld [vmem:[#allocation9 + $0x18] sm:$0xff]   ;;  %v4383_v6 = vld [vmem:[#allocation9 + $0x8] sm:$0xff]   ;;  %v4384_v7 = vld [vmem:[#allocation9] sm:$0xff]   ;;  %vm1175_vm5 = vcmask 1047559   ;;  %s5112_s1 = smov [#allocation18]  }
  0x74   :  { %4339 = vmatprep.subr.bf16.mxu1 %v4378_v1  ;;  %v424_v8 = vld [vmem:[#allocation12 + $0x1c0] sm:$0xff]  ;;  %v425_v10 = vld [vmem:[#allocation12 + $0x1c8] sm:$0xff]  ;;  %v3890_v34 = vld [vmem:[#allocation8] ss:$0 sm:$0xff]  ;;  %s3877_s23 = sshll.u32 %s5112_s1, 4  ;;  %s3878_s23 = int_to_ptr.vmem [resolvable:$true] %s3877_s23 }
  0x75   :  { %v428_v9 = vld [vmem:[#allocation12 + $0x1e0] sm:$0xff]  ;;  %v429_v12 = vld [vmem:[#allocation12 + $0x1e8] sm:$0xff]  ;;  %s5061_s24 = scalar_lea.vmem %s3878_s23, 32  ;;  %p5066_p4 = scmp.lt.s32.totalorder %s3878_s23, %s3878_s23 }
  0x76   :  { %v3961_v11 = vcombine.high %v424_v8, %v428_v9  ;;  %v3960_v13 = vcombine.low %v424_v8, %v428_v9  ;;  %v416_v14 = vld [vmem:[#allocation12 + $0x180] sm:$0xff]  ;;  %v3962_v16 = vcombine.low %v425_v10, %v429_v12  ;;  %v3963_v17 = vcombine.high %v425_v10, %v429_v12  ;;  %v417_v44 = vld [vmem:[#allocation12 + $0x188] sm:$0xff]  ;;  %p5062_p3 = scmp.ne.s32.totalorder %s3878_s23, %s5061_s24  ;;  %p5067_p5 = scmp.lt.s32.totalorder %s5061_s24, %s5061_s24 }
  0x77   :  { %4340 = vmatpush3.bf16.msra.mxu1 %v4378_v1  ;;  %v420_v15 = vld [vmem:[#allocation12 + $0x1a0] sm:$0xff]  ;;  %v421_v45 = vld [vmem:[#allocation12 + $0x1a8] sm:$0xff] }
  0x78   :  { %4345 = vmatprep.subr.bf16.mxu1 %v4381_v4  ;;  %v3953_v18 = vcombine.high %v416_v14, %v420_v15  ;;  %754 = vmatprep.subr.bf16.mxu0 %v3961_v11  ;;  %v3952_v19 = vcombine.low %v416_v14, %v420_v15  ;;  %v408_v20 = vld [vmem:[#allocation12 + $0x140] sm:$0xff]  ;;  %v3955_v49 = vcombine.high %v417_v44, %v421_v45  ;;  %v409_v50 = vld [vmem:[#allocation12 + $0x148] sm:$0xff]  ;;  %p5068_p6 = por %p5067_p5, %p5066_p4 }
  0x79   :  { %755 = vmatpush1.bf16.msra.mxu0 %v3960_v13  ;;  %v412_v21 = vld [vmem:[#allocation12 + $0x160] sm:$0xff]  ;;  %v413_v51 = vld [vmem:[#allocation12 + $0x168] sm:$0xff]  ;;  %v3954_v52 = vcombine.low %v417_v44, %v421_v45 }
  0x7a   :  { %4342 = vmatmul.mubr.msk.bf16.vlgmr.msra.gmra.mxu1 %vm207_vm0, %v4380_v3  ;;  %756 = vmatprep.subr.bf16.mxu0 %v3953_v18  ;;  %v3945_v22 = vcombine.high %v408_v20, %v412_v21  ;;  %v3944_v23 = vcombine.low %v408_v20, %v412_v21  ;;  %v400_v24 = vld [vmem:[#allocation12 + $0x100] sm:$0xff]  ;;  %v3947_v53 = vcombine.high %v409_v50, %v413_v51  ;;  %v401_v54 = vld [vmem:[#allocation12 + $0x108] sm:$0xff]  ;;  %p5069_p7 = pnand %p5068_p6, %p5062_p3 }
  0x7b   :  { %4346 = vmatpush3.bf16.msra.mxu1 %v4381_v4  ;;  %v404_v25 = vld [vmem:[#allocation12 + $0x120] sm:$0xff]  ;;  %v405_v55 = vld [vmem:[#allocation12 + $0x128] sm:$0xff]  ;;  %v3946_v56 = vcombine.low %v409_v50, %v413_v51  ;;  %v414_v50 = vld [vmem:[#allocation12 + $0x170] sm:$0xff] }
  0x7c   :  { %4347 = vmatprep.subr.bf16.mxu1 %v4382_v5  ;;  %v3937_v26 = vcombine.high %v400_v24, %v404_v25  ;;  %v3936_v27 = vcombine.low %v400_v24, %v404_v25  ;;  %v392_v28 = vld [vmem:[#allocation12 + $0xc0] sm:$0xff]  ;;  %v3939_v57 = vcombine.high %v401_v54, %v405_v55  ;;  %v393_v58 = vld [vmem:[#allocation12 + $0xc8] sm:$0xff]  ;;  %v3938_v60 = vcombine.low %v401_v54, %v405_v55  ;;  %v430_v24 = vld [vmem:[#allocation12 + $0x1f0] sm:$0xff] }
  0x7d   :  { %757 = vmatpush1.bf16.msra.mxu0 %v3952_v19  ;;  %v396_v29 = vld [vmem:[#allocation12 + $0xe0] sm:$0xff]  ;;  %v397_v59 = vld [vmem:[#allocation12 + $0xe8] sm:$0xff]  ;;  %v427_v25 = vld [vmem:[#allocation12 + $0x1d8] sm:$0xff] }
  0x7e   :  { %758 = vmatprep.subr.bf16.mxu0 %v3945_v22  ;;  %v3929_v30 = vcombine.high %v392_v28, %v396_v29  ;;  %v3928_v31 = vcombine.low %v392_v28, %v396_v29  ;;  %v3931_v61 = vcombine.high %v393_v58, %v397_v59  ;;  %v3930_v62 = vcombine.low %v393_v58, %v397_v59  ;;  %v384_v63 = vld [vmem:[#allocation12 + $0x80] sm:$0xff]  ;;  %v385_v1 = vld [vmem:[#allocation12 + $0x88] sm:$0xff]  ;;  %v411_v51 = vld [vmem:[#allocation12 + $0x158] sm:$0xff] }
  0x7f   :  { %4348 = vmatpush3.bf16.msra.mxu1 %v4382_v5  ;;  %v388_v0 = vld [vmem:[#allocation12 + $0xa0] sm:$0xff]  ;;  %v389_v3 = vld [vmem:[#allocation12 + $0xa8] sm:$0xff]  ;;  %v402_v59 = vld [vmem:[#allocation12 + $0x110] sm:$0xff] }
  0x80   :  { %4349 = vmatprep.subr.bf16.mxu1 %v4383_v6  ;;  %v3921_v2 = vcombine.high %v384_v63, %v388_v0  ;;  %v3922_v4 = vcombine.low %v385_v1, %v389_v3  ;;  %v3923_v5 = vcombine.high %v385_v1, %v389_v3  ;;  %v380_v8 = vld [vmem:[#allocation12 + $0x60] sm:$0xff]  ;;  %v377_v9 = vld [vmem:[#allocation12 + $0x48] sm:$0xff] }
  0x81   :  { %759 = vmatpush1.bf16.msra.mxu0 %v3944_v23  ;;  %v381_v11 = vld [vmem:[#allocation12 + $0x68] sm:$0xff]  ;;  %v368_v15 = vld [vmem:[#allocation12] sm:$0xff]  ;;  %v426_v23 = vld [vmem:[#allocation12 + $0x1d0] sm:$0xff] }
  0x82   :  { %760 = vmatprep.subr.bf16.mxu0 %v3937_v26  ;;  %v3914_v12 = vcombine.low %v377_v9, %v381_v11  ;;  %v3915_v13 = vcombine.high %v377_v9, %v381_v11  ;;  %v373_v19 = vld [vmem:[#allocation12 + $0x28] sm:$0xff]  ;;  %v3965_v26 = vcombine.high %v426_v23, %v430_v24  ;;  %v3964_v28 = vcombine.low %v426_v23, %v430_v24  ;;  %v379_v23 = vld [vmem:[#allocation12 + $0x58] sm:$0xff] }
  0x83   :  { %4350 = vmatpush3.bf16.msra.mxu1 %v4383_v6  ;;  %v3920_v6 = vcombine.low %v384_v63, %v388_v0  ;;  %v383_v24 = vld [vmem:[#allocation12 + $0x78] sm:$0xff] }
  0x84   :  { %4351 = vmatprep.subr.bf16.mxu1 %v4384_v7 }
  0x85   :  { %761 = vmatpush1.bf16.msra.mxu0 %v3936_v27  ;;  %v431_v27 = vld [vmem:[#allocation12 + $0x1f8] sm:$0xff] }
  0x86   :  { %762 = vmatprep.subr.bf16.mxu0 %v3929_v30  ;;  %v3966_v29 = vcombine.low %v427_v25, %v431_v27  ;;  %v3967_v30 = vcombine.high %v427_v25, %v431_v27 }
  0x87   :  { %4352 = vmatpush3.bf16.msra.mxu1 %v4384_v7  ;;  %v376_v7 = vld [vmem:[#allocation12 + $0x40] sm:$0xff] }
  0x88   :  { %807 = vmatprep.subr.bf16.mxu1 %v3963_v17  ;;  %v3913_v10 = vcombine.high %v376_v7, %v380_v8  ;;  %v3912_v14 = vcombine.low %v376_v7, %v380_v8  ;;  %v369_v17 = vld [vmem:[#allocation12 + $0x8] sm:$0xff]  ;;  %v395_v7 = vld [vmem:[#allocation12 + $0xd8] sm:$0xff] }
  0x89   :  { %763 = vmatpush1.bf16.msra.mxu0 %v3928_v31  ;;  %v3906_v20 = vcombine.low %v369_v17, %v373_v19  ;;  %v3907_v21 = vcombine.high %v369_v17, %v373_v19  ;;  %v5110_v31 = vmov 0   ;;  %v399_v8 = vld [vmem:[#allocation12 + $0xf8] sm:$0xff] }
  0x8a   :  { %764 = vmatprep.subr.bf16.mxu0 %v3921_v2  ;;  %786 = vmatprep.mubr.bf16.mxu0 %v5110_v31 }
  0x8d   :  { %765 = vmatpush1.bf16.msra.mxu0 %v3920_v6  ;;  %v398_v6 = vld [vmem:[#allocation12 + $0xf0] sm:$0xff] }
  0x8e   :  { %766 = vmatprep.subr.bf16.mxu0 %v3913_v10 }
  0x91   :  { %767 = vmatpush1.bf16.msra.mxu0 %v3912_v14  ;;  %v390_v14 = vld [vmem:[#allocation12 + $0xb0] sm:$0xff] }
 0x13a   :  { %v4343_v32 = vpop.f32.mrf.mxu1 }
 0x13b   :  { %v257_v38 = vadd.f32 %v4343_v32, %v3890_v34 }
 0x13c   :  { %v248_v33 = vpop.f32.mrf.mxu1 }
 0x13d   :  { %v249_v36 = vadd.f32 %v3890_v34, %v248_v33  ;;  %v265_v46 = vmax.f32 %v257_v38, 0.0 }
 0x13e   :  { %v4344_v35 = vpop.f32.mrf.mxu1 }
 0x13f   :  { %v260_v37 = vadd.f32 %v4344_v35, %v3890_v34  ;;  %v263_v42 = vmax.f32 %v249_v36, 0.0 }
 0x140   :  { %v251_v39 = vpop.f32.mrf.mxu1 }
 0x141   :  { %v252_v40 = vadd.f32 %v3890_v34, %v251_v39  ;;  %v266_v41 = vmax.f32 %v260_v37, 0.0  ;;  %v3897_v34 = vld [vmem:[#allocation11] ss:$0 sm:$0xff]  ;;  %v418_v39 = vld [vmem:[#allocation12 + $0x190] sm:$0xff] }
 0x143   :  { %v264_v43 = vmax.f32 %v252_v40, 0.0  ;;  %v276_v48 = vpack.c.bf16 %v266_v41, %v265_v46  ;;  %v422_v40 = vld [vmem:[#allocation12 + $0x1b0] sm:$0xff]  ;;  %v419_v41 = vld [vmem:[#allocation12 + $0x198] sm:$0xff] }
 0x144   :  { %v3956_v54 = vcombine.low %v418_v39, %v422_v40 }
 0x145   :  { %v275_v47 = vpack.c.bf16 %v264_v43, %v263_v42  ;;  %v423_v42 = vld [vmem:[#allocation12 + $0x1b8] sm:$0xff] }
 0x146   :  { %v3958_v55 = vcombine.low %v419_v41, %v423_v42 }
 0x147   :  { %4353 = vmatprep.mubr.msk.bf16.mxu1 %vm308_vm1, %v275_v47  ;;  %v3957_v47 = vcombine.high %v418_v39, %v422_v40  ;;  %v4387_v40 = vld [vmem:[#allocation14 + $0xe4] ss:$16 sps:$4 sm:$0xff]  }
 0x148   :  { %4354 = vmatmul.mubr.msk.bf16.vlgmr.msra.gmra.mxu1 %vm308_vm1, %v276_v48  ;;  %v3959_v48 = vcombine.high %v419_v41, %v423_v42  ;;  %v4390_v41 = vld [vmem:[#allocation14 + $0x2e4] ss:$16 sps:$4 sm:$0xff]   ;;  %v4385_v42 = vld [vmem:[#allocation14 + $0xe0] ss:$16 sps:$4 sm:$0xff]  }
 0x149   :  { %808 = vmatpush1.bf16.msra.mxu1 %v3962_v16  ;;  %v372_v16 = vld [vmem:[#allocation12 + $0x20] sm:$0xff]  ;;  %839 = vmatprep.mubr.bf16.mxu1 %v5110_v31 }
 0x14a   :  { %809 = vmatprep.subr.bf16.mxu1 %v3955_v49  ;;  %v3905_v18 = vcombine.high %v368_v15, %v372_v16  ;;  %v3904_v22 = vcombine.low %v368_v15, %v372_v16  ;;  %v410_v49 = vld [vmem:[#allocation12 + $0x150] sm:$0xff]  ;;  %v387_v15 = vld [vmem:[#allocation12 + $0x98] sm:$0xff] }
 0x14b   :  { %v3948_v0 = vcombine.low %v410_v49, %v414_v50  ;;  %v391_v16 = vld [vmem:[#allocation12 + $0xb8] sm:$0xff] }
 0x14c   :  { %768 = vmatprep.subr.bf16.mxu0 %v3905_v18  ;;  %v3934_v18 = vcombine.low %v395_v7, %v399_v8 }
 0x14d   :  { %810 = vmatpush1.bf16.msra.mxu1 %v3954_v52  ;;  %769 = vmatpush1.bf16.msra.mxu0 %v3904_v22  ;;  %v415_v52 = vld [vmem:[#allocation12 + $0x178] sm:$0xff]  ;;  %v382_v22 = vld [vmem:[#allocation12 + $0x70] sm:$0xff] }
 0x14e   :  { %811 = vmatprep.subr.bf16.mxu1 %v3947_v53  ;;  %860 = vmatprep.subr.bf16.mxu0 %v3965_v26  ;;  %v3951_v58 = vcombine.high %v411_v51, %v415_v52  ;;  %v3950_v1 = vcombine.low %v411_v51, %v415_v52  ;;  %v3926_v26 = vcombine.low %v387_v15, %v391_v16  ;;  %v4397_v51 = vld [vmem:[#allocation14 + $0xa0] ss:$16 sps:$4 sm:$0xff]  }
 0x14f   :  { %v4400_v52 = vld [vmem:[#allocation14 + $0x2a0] ss:$16 sps:$4 sm:$0xff]  }
 0x151   :  { %812 = vmatpush1.bf16.msra.mxu1 %v3946_v56 }
 0x152   :  { %813 = vmatprep.subr.bf16.mxu1 %v3939_v57  ;;  %v3949_v57 = vcombine.high %v410_v49, %v414_v50  ;;  %v4399_v49 = vld [vmem:[#allocation14 + $0xa4] ss:$16 sps:$4 sm:$0xff]  }
 0x153   :  { %v4402_v50 = vld [vmem:[#allocation14 + $0x2a4] ss:$16 sps:$4 sm:$0xff]  }
 0x155   :  { %814 = vmatpush1.bf16.msra.mxu1 %v3938_v60  ;;  %v406_v60 = vld [vmem:[#allocation12 + $0x130] sm:$0xff] }
 0x156   :  { %815 = vmatprep.subr.bf16.mxu1 %v3931_v61  ;;  %v403_v61 = vld [vmem:[#allocation12 + $0x118] sm:$0xff]  ;;  %v3941_v3 = vcombine.high %v402_v59, %v406_v60  ;;  %v3940_v9 = vcombine.low %v402_v59, %v406_v60  ;;  %v4417_v59 = vld [vmem:[#allocation14 + $0x44] ss:$16 sps:$4 sm:$0xff]   ;;  %v4415_v60 = vld [vmem:[#allocation14 + $0x40] ss:$16 sps:$4 sm:$0xff]  }
 0x159   :  { %816 = vmatpush1.bf16.msra.mxu1 %v3930_v62  ;;  %v407_v62 = vld [vmem:[#allocation12 + $0x138] sm:$0xff] }
 0x15a   :  { %817 = vmatprep.subr.bf16.mxu1 %v3923_v5  ;;  %v394_v5 = vld [vmem:[#allocation12 + $0xd0] sm:$0xff]  ;;  %v3942_v10 = vcombine.low %v403_v61, %v407_v62 }
 0x15b   :  { %v3933_v11 = vcombine.high %v394_v5, %v398_v6  ;;  %v3932_v17 = vcombine.low %v394_v5, %v398_v6  ;;  %v4432_v5 = vld [vmem:[#allocation14 + $0x204] ss:$16 sps:$4 sm:$0xff]   ;;  %v4430_v6 = vld [vmem:[#allocation14 + $0x200] ss:$16 sps:$4 sm:$0xff]  }
 0x15d   :  { %818 = vmatpush1.bf16.msra.mxu1 %v3922_v4  ;;  %v3943_v4 = vcombine.high %v403_v61, %v407_v62  ;;  %v4420_v61 = vld [vmem:[#allocation14 + $0x244] ss:$16 sps:$4 sm:$0xff]   ;;  %v4418_v62 = vld [vmem:[#allocation14 + $0x240] ss:$16 sps:$4 sm:$0xff]  }
 0x15e   :  { %819 = vmatprep.subr.bf16.mxu1 %v3915_v13  ;;  %v386_v13 = vld [vmem:[#allocation12 + $0x90] sm:$0xff] }
 0x15f   :  { %v3925_v19 = vcombine.high %v386_v13, %v390_v14  ;;  %v3924_v25 = vcombine.low %v386_v13, %v390_v14  ;;  %v4444_v13 = vld [vmem:[#allocation14 + $0x3c4] ss:$16 sps:$4 sm:$0xff]   ;;  %v4442_v14 = vld [vmem:[#allocation14 + $0x3c0] ss:$16 sps:$4 sm:$0xff]  }
 0x161   :  { %820 = vmatpush1.bf16.msra.mxu1 %v3914_v12  ;;  %v3935_v12 = vcombine.high %v395_v7, %v399_v8  ;;  %v4435_v7 = vld [vmem:[#allocation14 + $0x1e4] ss:$16 sps:$4 sm:$0xff]   ;;  %v4433_v8 = vld [vmem:[#allocation14 + $0x1e0] ss:$16 sps:$4 sm:$0xff]  }
 0x162   :  { %821 = vmatprep.subr.bf16.mxu1 %v3907_v21  ;;  %v378_v21 = vld [vmem:[#allocation12 + $0x50] sm:$0xff] }
 0x163   :  { %v3917_v27 = vcombine.high %v378_v21, %v382_v22 }
 0x165   :  { %822 = vmatpush1.bf16.msra.mxu1 %v3906_v20  ;;  %v3927_v20 = vcombine.high %v387_v15, %v391_v16  ;;  %v4447_v15 = vld [vmem:[#allocation14 + $0x1a4] ss:$16 sps:$4 sm:$0xff]   ;;  %v4445_v16 = vld [vmem:[#allocation14 + $0x1a0] ss:$16 sps:$4 sm:$0xff]  }
 0x166   :  { %913 = vmatprep.subr.bf16.mxu1 %v3967_v30  ;;  %v374_v30 = vld [vmem:[#allocation12 + $0x30] sm:$0xff] }
 0x208   :  { %v4355_v32 = vpop.f32.mrf.mxu1 }
 0x209   :  { %v358_v53 = vadd.f32 %v4355_v32, %v3897_v34  ;;  %v371_v32 = vld [vmem:[#allocation12 + $0x18] sm:$0xff] }
 0x20a   :  { %v349_v33 = vpop.f32.mrf.mxu1 }
 0x20b   :  { %v350_v36 = vadd.f32 %v3897_v34, %v349_v33  ;;  %v366_v63 = vmax.f32 %v358_v53, 0.0  ;;  %v375_v33 = vld [vmem:[#allocation12 + $0x38] sm:$0xff]  ;;  %v4405_v53 = vld [vmem:[#allocation14 + $0x84] ss:$16 sps:$4 sm:$0xff]  }
 0x20c   :  { %v4356_v35 = vpop.f32.mrf.mxu1  ;;  %v3910_v39 = vcombine.low %v371_v32, %v375_v33 }
 0x20d   :  { %v364_v43 = vmax.f32 %v350_v36, 0.0  ;;  %v361_v45 = vadd.f32 %v4356_v35, %v3897_v34  ;;  %v3918_v35 = vcombine.low %v379_v23, %v383_v24 }
 0x20e   :  { %v352_v37 = vpop.f32.mrf.mxu1 }
 0x20f   :  { %v353_v38 = vadd.f32 %v3897_v34, %v352_v37  ;;  %v367_v56 = vmax.f32 %v361_v45, 0.0  ;;  %v3916_v34 = vcombine.low %v378_v21, %v382_v22  ;;  %v3911_v37 = vcombine.high %v371_v32, %v375_v33  ;;  %v4396_v45 = vld [vmem:[#allocation14 + $0x2c4] ss:$16 sps:$4 sm:$0xff]   ;;  %v4454_v22 = vld [vmem:[#allocation14 + $0x380] ss:$16 sps:$4 sm:$0xff]  }
 0x210   :  { %v4456_v21 = vld [vmem:[#allocation14 + $0x384] ss:$16 sps:$4 sm:$0xff]   ;;  %v4469_v33 = vld [vmem:[#allocation14 + $0x120] ss:$16 sps:$4 sm:$0xff]  }
 0x211   :  { %v365_v44 = vmax.f32 %v353_v38, 0.0  ;;  %v5230_v2 = vpack.c.bf16 %v367_v56, %v366_v63  ;;  %v4411_v56 = vld [vmem:[#allocation14 + $0x64] ss:$16 sps:$4 sm:$0xff]  }
 0x212   :  { %v4423_v63 = vld [vmem:[#allocation14 + $0x24] ss:$16 sps:$4 sm:$0xff]  }
 0x213   :  { %v5224_v46 = vpack.c.bf16 %v365_v44, %v364_v43  ;;  %v4388_v43 = vld [vmem:[#allocation14 + $0x2e0] ss:$16 sps:$4 sm:$0xff]   ;;  %v4393_v44 = vld [vmem:[#allocation14 + $0xc4] ss:$16 sps:$4 sm:$0xff]  }
 0x214   :  { %v4471_v32 = vld [vmem:[#allocation14 + $0x124] ss:$16 sps:$4 sm:$0xff]  }
 0x215   :  { %787 = vmatmul.mubr.bf16.vlgmr.msra.gmra.mxu0 %v5224_v46  ;;  %840 = vmatmul.mubr.bf16.vlgmr.msra.gmra.mxu1 %v5224_v46 }
 0x216   :  { %861 = vmatpush1.bf16.msra.mxu0 %v3964_v28  ;;  %914 = vmatpush1.bf16.msra.mxu1 %v3966_v29  ;;  %v3919_v28 = vcombine.high %v379_v23, %v383_v24  ;;  %v370_v29 = vld [vmem:[#allocation12 + $0x10] sm:$0xff] }
 0x217   :  { %862 = vmatprep.subr.bf16.mxu0 %v3957_v47  ;;  %915 = vmatprep.subr.bf16.mxu1 %v3959_v48  ;;  %v3909_v36 = vcombine.high %v370_v29, %v374_v30  ;;  %v3908_v38 = vcombine.low %v370_v29, %v374_v30  ;;  %v4391_v47 = vld [vmem:[#allocation14 + $0xc0] ss:$16 sps:$4 sm:$0xff]   ;;  %v4459_v23 = vld [vmem:[#allocation14 + $0x164] ss:$16 sps:$4 sm:$0xff]  }
 0x218   :  { %796 = vmatprep.mubr.bf16.mxu0 %v5110_v31  ;;  %849 = vmatprep.mubr.bf16.mxu1 %v5110_v31  ;;  %v4394_v48 = vld [vmem:[#allocation14 + $0x2c0] ss:$16 sps:$4 sm:$0xff]   ;;  %v4468_v29 = vld [vmem:[#allocation14 + $0x344] ss:$16 sps:$4 sm:$0xff]  }
 0x219   :  { %v4457_v24 = vld [vmem:[#allocation14 + $0x160] ss:$16 sps:$4 sm:$0xff]  }
 0x21a   :  { %863 = vmatpush1.bf16.msra.mxu0 %v3956_v54  ;;  %916 = vmatpush1.bf16.msra.mxu1 %v3958_v55  ;;  %v4406_v54 = vld [vmem:[#allocation14 + $0x280] ss:$16 sps:$4 sm:$0xff]  }
 0x21b   :  { %864 = vmatprep.subr.bf16.mxu0 %v3949_v57  ;;  %917 = vmatprep.subr.bf16.mxu1 %v3951_v58  ;;  %v4409_v55 = vld [vmem:[#allocation14 + $0x60] ss:$16 sps:$4 sm:$0xff]   ;;  %v4414_v58 = vld [vmem:[#allocation14 + $0x264] ss:$16 sps:$4 sm:$0xff]  }
 0x21c   :  { %v4412_v57 = vld [vmem:[#allocation14 + $0x260] ss:$16 sps:$4 sm:$0xff]  }
 0x21d   :  { %797 = vmatmul.mubr.bf16.gmra.mxu0 %v5230_v2  ;;  %850 = vmatmul.mubr.bf16.gmra.mxu1 %v5230_v2  ;;  %v4466_v30 = vld [vmem:[#allocation14 + $0x340] ss:$16 sps:$4 sm:$0xff]  }
 0x21e   :  { %865 = vmatpush1.bf16.msra.mxu0 %v3948_v0  ;;  %918 = vmatpush1.bf16.msra.mxu1 %v3950_v1  ;;  %v4421_v0 = vld [vmem:[#allocation14 + $0x20] ss:$16 sps:$4 sm:$0xff]   ;;  %v4426_v1 = vld [vmem:[#allocation14 + $0x224] ss:$16 sps:$4 sm:$0xff]  }
 0x21f   :  { %866 = vmatprep.subr.bf16.mxu0 %v3941_v3  ;;  %919 = vmatprep.subr.bf16.mxu1 %v3943_v4  ;;  %v4429_v3 = vld [vmem:[#allocation14 + $0x4] ss:$16 sps:$4 sm:$0xff]   ;;  %v4427_v4 = vld [vmem:[#allocation14] ss:$16 sps:$4 sm:$0xff]  }
 0x220   :  { %892 = vmatprep.mubr.bf16.mxu0 %v5110_v31  ;;  %945 = vmatprep.mubr.bf16.mxu1 %v5110_v31 }
 0x222   :  { %867 = vmatpush1.bf16.msra.mxu0 %v3940_v9  ;;  %920 = vmatpush1.bf16.msra.mxu1 %v3942_v10  ;;  %v4438_v9 = vld [vmem:[#allocation14 + $0x3e4] ss:$16 sps:$4 sm:$0xff]   ;;  %v4436_v10 = vld [vmem:[#allocation14 + $0x3e0] ss:$16 sps:$4 sm:$0xff]  }
 0x223   :  { %868 = vmatprep.subr.bf16.mxu0 %v3933_v11  ;;  %921 = vmatprep.subr.bf16.mxu1 %v3935_v12  ;;  %v4441_v11 = vld [vmem:[#allocation14 + $0x1c4] ss:$16 sps:$4 sm:$0xff]   ;;  %v4439_v12 = vld [vmem:[#allocation14 + $0x1c0] ss:$16 sps:$4 sm:$0xff]  }
 0x226   :  { %869 = vmatpush1.bf16.msra.mxu0 %v3932_v17  ;;  %922 = vmatpush1.bf16.msra.mxu1 %v3934_v18  ;;  %v4450_v17 = vld [vmem:[#allocation14 + $0x3a4] ss:$16 sps:$4 sm:$0xff]   ;;  %v4448_v18 = vld [vmem:[#allocation14 + $0x3a0] ss:$16 sps:$4 sm:$0xff]  }
 0x227   :  { %870 = vmatprep.subr.bf16.mxu0 %v3925_v19  ;;  %923 = vmatprep.subr.bf16.mxu1 %v3927_v20  ;;  %v4453_v19 = vld [vmem:[#allocation14 + $0x184] ss:$16 sps:$4 sm:$0xff]   ;;  %v4451_v20 = vld [vmem:[#allocation14 + $0x180] ss:$16 sps:$4 sm:$0xff]  }
 0x22a   :  { %871 = vmatpush1.bf16.msra.mxu0 %v3924_v25  ;;  %924 = vmatpush1.bf16.msra.mxu1 %v3926_v26  ;;  %v4462_v25 = vld [vmem:[#allocation14 + $0x364] ss:$16 sps:$4 sm:$0xff]   ;;  %v4460_v26 = vld [vmem:[#allocation14 + $0x360] ss:$16 sps:$4 sm:$0xff]  }
 0x22b   :  { %872 = vmatprep.subr.bf16.mxu0 %v3917_v27  ;;  %925 = vmatprep.subr.bf16.mxu1 %v3919_v28  ;;  %v4465_v27 = vld [vmem:[#allocation14 + $0x144] ss:$16 sps:$4 sm:$0xff]   ;;  %v4463_v28 = vld [vmem:[#allocation14 + $0x140] ss:$16 sps:$4 sm:$0xff]  }
 0x22e   :  { %873 = vmatpush1.bf16.msra.mxu0 %v3916_v34  ;;  %926 = vmatpush1.bf16.msra.mxu1 %v3918_v35  ;;  %v4474_v34 = vld [vmem:[#allocation14 + $0x324] ss:$16 sps:$4 sm:$0xff]   ;;  %v4472_v35 = vld [vmem:[#allocation14 + $0x320] ss:$16 sps:$4 sm:$0xff]  }
 0x22f   :  { %874 = vmatprep.subr.bf16.mxu0 %v3909_v36  ;;  %927 = vmatprep.subr.bf16.mxu1 %v3911_v37  ;;  %v4477_v36 = vld [vmem:[#allocation14 + $0x104] ss:$16 sps:$4 sm:$0xff]   ;;  %v4475_v37 = vld [vmem:[#allocation14 + $0x100] ss:$16 sps:$4 sm:$0xff]  }
 0x232   :  { %875 = vmatpush1.bf16.msra.mxu0 %v3908_v38  ;;  %928 = vmatpush1.bf16.msra.mxu1 %v3910_v39  ;;  %v4480_v38 = vld [vmem:[#allocation14 + $0x304] ss:$16 sps:$4 sm:$0xff]   ;;  %v4478_v39 = vld [vmem:[#allocation14 + $0x300] ss:$16 sps:$4 sm:$0xff]  }
 0x233   :  { %2877 = vmatprep.subr.bf16.mxu0 %v4387_v40  ;;  %2918 = vmatprep.subr.bf16.mxu1 %v4390_v41  ;;  %v4483_v40 = vld [vmem:[#allocation14 + $0x4e4] ss:$16 sps:$4 sm:$0xff]  }
 0x234   :  { %v4486_v41 = vld [vmem:[#allocation14 + $0x6e4] ss:$16 sps:$4 sm:$0xff]  }
 0x235   :  { %893 = vmatmul.mubr.bf16.vlgmr.msra.gmra.mxu0 %v5224_v46  ;;  %946 = vmatmul.mubr.bf16.vlgmr.msra.gmra.mxu1 %v5224_v46  ;;  %v4408_v46 = vld [vmem:[#allocation14 + $0x284] ss:$16 sps:$4 sm:$0xff]  }
 0x236   :  { %902 = vmatprep.mubr.bf16.mxu0 %v5110_v31  ;;  %955 = vmatprep.mubr.bf16.mxu1 %v5110_v31  ;;  %v4403_v31 = vld [vmem:[#allocation14 + $0x80] ss:$16 sps:$4 sm:$0xff]  }
 0x237   :  { %2878 = vmatpush1.bf16.msra.mxu0 %v4385_v42  ;;  %2919 = vmatpush1.bf16.msra.mxu1 %v4388_v43 }
 0x238   :  { %2879 = vmatprep.subr.bf16.mxu0 %v4393_v44  ;;  %2920 = vmatprep.subr.bf16.mxu1 %v4396_v45 }
 0x23b   :  { %2880 = vmatpush1.bf16.msra.mxu0 %v4391_v47  ;;  %2921 = vmatpush1.bf16.msra.mxu1 %v4394_v48 }
 0x23c   :  { %2881 = vmatprep.subr.bf16.mxu0 %v4399_v49  ;;  %2922 = vmatprep.subr.bf16.mxu1 %v4402_v50 }
 0x23d   :  { %903 = vmatmul.mubr.bf16.gmra.mxu0 %v5230_v2  ;;  %956 = vmatmul.mubr.bf16.gmra.mxu1 %v5230_v2  ;;  %v4424_v2 = vld [vmem:[#allocation14 + $0x220] ss:$16 sps:$4 sm:$0xff]  }
 0x23f   :  { %2882 = vmatpush1.bf16.msra.mxu0 %v4397_v51  ;;  %2923 = vmatpush1.bf16.msra.mxu1 %v4400_v52 }
 0x240   :  { %2883 = vmatprep.subr.bf16.mxu0 %v4405_v53  ;;  %2924 = vmatprep.subr.bf16.mxu1 %v4408_v46 }
 0x243   :  { %2884 = vmatpush1.bf16.msra.mxu0 %v4403_v31  ;;  %2925 = vmatpush1.bf16.msra.mxu1 %v4406_v54 }
 0x244   :  { %2885 = vmatprep.subr.bf16.mxu0 %v4411_v56  ;;  %2926 = vmatprep.subr.bf16.mxu1 %v4414_v58 }
 0x247   :  { %2886 = vmatpush1.bf16.msra.mxu0 %v4409_v55  ;;  %2927 = vmatpush1.bf16.msra.mxu1 %v4412_v57 }
 0x248   :  { %2887 = vmatprep.subr.bf16.mxu0 %v4417_v59  ;;  %2928 = vmatprep.subr.bf16.mxu1 %v4420_v61 }
 0x24b   :  { %2888 = vmatpush1.bf16.msra.mxu0 %v4415_v60  ;;  %2929 = vmatpush1.bf16.msra.mxu1 %v4418_v62 }
 0x24c   :  { %2889 = vmatprep.subr.bf16.mxu0 %v4423_v63  ;;  %2930 = vmatprep.subr.bf16.mxu1 %v4426_v1 }
 0x24f   :  { %2890 = vmatpush1.bf16.msra.mxu0 %v4421_v0  ;;  %2931 = vmatpush1.bf16.msra.mxu1 %v4424_v2 }
 0x250   :  { %2891 = vmatprep.subr.bf16.mxu0 %v4429_v3  ;;  %2932 = vmatprep.subr.bf16.mxu1 %v4432_v5 }
 0x253   :  { %2892 = vmatpush1.bf16.msra.mxu0 %v4427_v4  ;;  %2933 = vmatpush1.bf16.msra.mxu1 %v4430_v6 }
 0x254   :  { %2893 = vmatprep.subr.bf16.mxu0 %v4435_v7  ;;  %2934 = vmatprep.subr.bf16.mxu1 %v4438_v9 }
 0x257   :  { %2894 = vmatpush2.bf16.msra.mxu0 %v4433_v8  ;;  %2935 = vmatpush2.bf16.msra.mxu1 %v4436_v10 }
 0x258   :  { %2895 = vmatprep.subr.bf16.mxu0 %v4441_v11  ;;  %2936 = vmatprep.subr.bf16.mxu1 %v4444_v13 }
 0x25b   :  { %2896 = vmatpush2.bf16.msra.mxu0 %v4439_v12  ;;  %2937 = vmatpush2.bf16.msra.mxu1 %v4442_v14 }
 0x25c   :  { %2897 = vmatprep.subr.bf16.mxu0 %v4447_v15  ;;  %2938 = vmatprep.subr.bf16.mxu1 %v4450_v17 }
 0x25f   :  { %2898 = vmatpush2.bf16.msra.mxu0 %v4445_v16  ;;  %2939 = vmatpush2.bf16.msra.mxu1 %v4448_v18 }
 0x260   :  { %2899 = vmatprep.subr.bf16.mxu0 %v4453_v19  ;;  %2940 = vmatprep.subr.bf16.mxu1 %v4456_v21 }
 0x263   :  { %2900 = vmatpush2.bf16.msra.mxu0 %v4451_v20  ;;  %2941 = vmatpush2.bf16.msra.mxu1 %v4454_v22 }
 0x264   :  { %2901 = vmatprep.subr.bf16.mxu0 %v4459_v23  ;;  %2942 = vmatprep.subr.bf16.mxu1 %v4462_v25 }
 0x267   :  { %2902 = vmatpush2.bf16.msra.mxu0 %v4457_v24  ;;  %2943 = vmatpush2.bf16.msra.mxu1 %v4460_v26  ;;  %v5111_v24 = vmov 1983009808   ;;  %v1101_v26 = vlaneseq }
 0x268   :  { %2903 = vmatprep.subr.bf16.mxu0 %v4465_v27  ;;  %2944 = vmatprep.subr.bf16.mxu1 %v4468_v29  ;;  %v1099_v25 = vunpack.c.l.s4 %v5111_v24 }
 0x26b   :  { %2904 = vmatpush2.bf16.msra.mxu0 %v4463_v28  ;;  %2945 = vmatpush2.bf16.msra.mxu1 %v4466_v30 }
 0x26c   :  { %2905 = vmatprep.subr.bf16.mxu0 %v4471_v32  ;;  %2946 = vmatprep.subr.bf16.mxu1 %v4474_v34 }
 0x26f   :  { %2906 = vmatpush2.bf16.msra.mxu0 %v4469_v33  ;;  %2947 = vmatpush2.bf16.msra.mxu1 %v4472_v35 }
 0x270   :  { %2907 = vmatprep.subr.bf16.mxu0 %v4477_v36  ;;  %2948 = vmatprep.subr.bf16.mxu1 %v4480_v38 }
 0x273   :  { %2908 = vmatpush2.bf16.msra.mxu0 %v4475_v37  ;;  %2949 = vmatpush2.bf16.msra.mxu1 %v4478_v39 }
 0x274   :  { %2959 = vmatprep.subr.bf16.mxu0 %v4483_v40  ;;  %3000 = vmatprep.subr.bf16.mxu1 %v4486_v41  ;;  %v1100_v40 = vunpack.c.0.s8 %v1099_v25  ;;  %v5242_v41 = vshrl.u32 %v1101_v26, 7 }
 0x2d5   :  { %v788_v42 = vpop.f32.mrf.mxu0  ;;  %v841_v43 = vpop.f32.mrf.mxu1 }
 0x2d7   :  { %v790_v44 = vpop.f32.mrf.mxu0  ;;  %v843_v45 = vpop.f32.mrf.mxu1 }
 0x2d9   :  { %v792_v47 = vpop.f32.mrf.mxu0  ;;  %v845_v48 = vpop.f32.mrf.mxu1 }
 0x2da   :  { %v968_v49 = vmax.f32 %v788_v42, %v792_v47  ;;  %v982_v50 = vmax.f32 %v841_v43, %v845_v48 }
 0x2db   :  { %v794_v51 = vpop.f32.mrf.mxu0  ;;  %v847_v52 = vpop.f32.mrf.mxu1 }
 0x2dc   :  { %v969_v53 = vrot.slane %v968_v49, 4  ;;  %v983_v46 = vrot.slane %v982_v50, 4  ;;  %v975_v31 = vmax.f32 %v790_v44, %v794_v51  ;;  %v989_v54 = vmax.f32 %v843_v45, %v847_v52 }
 0x2dd   :  { %v798_v55 = vpop.f32.mrf.mxu0  ;;  %v851_v56 = vpop.f32.mrf.mxu1  ;;  %v5248_v51 = vsub.s32 1, %v5242_v41 }
 0x2de   :  { %v970_v57 = vmax.f32 %v968_v49, %v969_v53  ;;  %v984_v58 = vmax.f32 %v982_v50, %v983_v46  ;;  %v976_v59 = vrot.slane %v975_v31, 4  ;;  %v990_v60 = vrot.slane %v989_v54, 4  ;;  %v5253_v46 = vld [vmem:[%s5393_s6] sm:$0xff] }
 0x2df   :  { %v800_v61 = vpop.f32.mrf.mxu0  ;;  %v853_v62 = vpop.f32.mrf.mxu1  ;;  %v5245_v50 = vsub.s32 0, %v5242_v41 }
 0x2e0   :  { %v977_v63 = vmax.f32 %v975_v31, %v976_v59  ;;  %v991_v0 = vmax.f32 %v989_v54, %v990_v60  ;;  %v971_v3 = vrot.slane %v970_v57, 2  ;;  %v985_v4 = vrot.slane %v984_v58, 2 }
 0x2e1   :  { %v802_v1 = vpop.f32.mrf.mxu0  ;;  %v855_v2 = vpop.f32.mrf.mxu1  ;;  %v1207_v31 = vsub.s32 2, %v5242_v41  ;;  %v1211_v54 = vsub.s32 3, %v5242_v41 }
 0x2e2   :  { %v978_v5 = vrot.slane %v977_v63, 2  ;;  %v992_v6 = vrot.slane %v991_v0, 2  ;;  %v1024_v7 = vmax.f32 %v798_v55, %v802_v1  ;;  %v1038_v8 = vmax.f32 %v851_v56, %v855_v2 }
 0x2e3   :  { %v804_v9 = vpop.f32.mrf.mxu0  ;;  %v857_v10 = vpop.f32.mrf.mxu1  ;;  %v972_v17 = vmax.f32 %v970_v57, %v971_v3  ;;  %v986_v18 = vmax.f32 %v984_v58, %v985_v4  ;;  %v5258_v56 = vsub.s32 %v1100_v40, %v5242_v41  ;;  %v1208_v2 = vrot.slane %v5253_v46, %v1207_v31 }
 0x2e4   :  { %v979_v11 = vmax.f32 %v977_v63, %v978_v5  ;;  %v993_v12 = vmax.f32 %v991_v0, %v992_v6  ;;  %v1025_v13 = vrot.slane %v1024_v7, 4  ;;  %v1039_v14 = vrot.slane %v1038_v8, 4 }
 0x2e5   :  { %v1031_v15 = vmax.f32 %v800_v61, %v804_v9  ;;  %v1045_v16 = vmax.f32 %v853_v62, %v857_v10  ;;  %v973_v33 = vrot.slane %v972_v17, 1  ;;  %v987_v34 = vrot.slane %v986_v18, 1 }
 0x2e6   :  { %v1026_v19 = vmax.f32 %v1024_v7, %v1025_v13  ;;  %v1040_v20 = vmax.f32 %v1038_v8, %v1039_v14  ;;  %v980_v23 = vrot.slane %v979_v11, 1  ;;  %v994_v27 = vrot.slane %v993_v12, 1 }
 0x2e7   :  { %v1032_v21 = vrot.slane %v1031_v15, 4  ;;  %v1046_v22 = vrot.slane %v1045_v16, 4  ;;  %v974_v48 = vmax.f32 %v972_v17, %v973_v33  ;;  %v988_v49 = vmax.f32 %v986_v18, %v987_v34 }
 0x2e8   :  { %v1027_v28 = vrot.slane %v1026_v19, 2  ;;  %v1041_v29 = vrot.slane %v1040_v20, 2  ;;  %v981_v39 = vmax.f32 %v979_v11, %v980_v23  ;;  %v995_v42 = vmax.f32 %v993_v12, %v994_v27 }
 0x2e9   :  { %v1033_v30 = vmax.f32 %v1031_v15, %v1032_v21  ;;  %v1047_v32 = vmax.f32 %v1045_v16, %v1046_v22  ;;  %v1200_v62 = vrot.slane %v5253_v46, %v5245_v50  ;;  %v1204_v63 = vrot.slane %v5253_v46, %v5248_v51 }
 0x2ea   :  { %v1028_v35 = vmax.f32 %v1026_v19, %v1027_v28  ;;  %v1042_v36 = vmax.f32 %v1040_v20, %v1041_v29  ;;  %v1096_v55 = vcombine.low %v974_v48, %v981_v39  ;;  %v1097_v57 = vcombine.low %v988_v49, %v995_v42 }
 0x2eb   :  { %v1034_v37 = vrot.slane %v1033_v30, 2  ;;  %v1048_v38 = vrot.slane %v1047_v32, 2  ;;  %v1212_v3 = vrot.slane %v5253_v46, %v1211_v54  ;;  %v1229_v13 = vcombine.low %v1200_v62, %v1204_v63 }
 0x2ec   :  { %v1029_v43 = vrot.slane %v1028_v35, 1  ;;  %v1043_v44 = vrot.slane %v1042_v36, 1  ;;  %v1104_v4 = vrot.slane %v1096_v55, %v5258_v56  ;;  %v1111_v5 = vrot.slane %v1097_v57, %v5258_v56 }
 0x2ed   :  { %v1035_v45 = vmax.f32 %v1033_v30, %v1034_v37  ;;  %v1049_v47 = vmax.f32 %v1047_v32, %v1048_v38  ;;  %v1230_v14 = vcombine.low %v1208_v2, %v1212_v3  ;;  %v1237_v24 = vrot.slane %v1229_v13, %v5258_v56 }
 0x2ee   :  { %v1030_v58 = vmax.f32 %v1028_v35, %v1029_v43  ;;  %v1044_v59 = vmax.f32 %v1042_v36, %v1043_v44  ;;  %v1112_v15 = vcombine.low %v1104_v4, %v1111_v5  ;;  %v1219_v62 = vsub.s32 5, %v5242_v41 }
 0x2ef   :  { %v1036_v52 = vrot.slane %v1035_v45, 1  ;;  %v1050_v53 = vrot.slane %v1049_v47, 1  ;;  %v1244_v25 = vrot.slane %v1230_v14, %v5258_v56  ;;  %v1223_v2 = vsub.s32 6, %v5242_v41 }
 0x2f1   :  { %v1037_v60 = vmax.f32 %v1035_v45, %v1036_v52  ;;  %v1051_v61 = vmax.f32 %v1049_v47, %v1050_v53  ;;  %v1245_v44 = vcombine.low %v1237_v24, %v1244_v25 }
 0x2f3   :  { %v1130_v0 = vcombine.low %v1030_v58, %v1037_v60  ;;  %v1131_v1 = vcombine.low %v1044_v59, %v1051_v61  ;;  %v1215_v61 = vsub.s32 4, %v5242_v41 }
 0x2f5   :  { %v1138_v6 = vrot.slane %v1130_v0, %v5258_v56  ;;  %v1145_v7 = vrot.slane %v1131_v1, %v5258_v56  ;;  %v894_v8 = vpop.f32.mrf.mxu0  ;;  %v947_v9 = vpop.f32.mrf.mxu1 }
 0x2f7   :  { %v1146_v10 = vcombine.low %v1138_v6, %v1145_v7  ;;  %v896_v11 = vpop.f32.mrf.mxu0  ;;  %v949_v12 = vpop.f32.mrf.mxu1 }
 0x2f9   :  { %v1168_v16 = vrot.slane %v1146_v10, 7  ;;  %v898_v17 = vpop.f32.mrf.mxu0  ;;  %v951_v18 = vpop.f32.mrf.mxu1  ;;  %v1227_v10 = vsub.s32 7, %v5242_v41 }
 0x2fa   :  { %v996_v19 = vmax.f32 %v894_v8, %v898_v17  ;;  %v1010_v20 = vmax.f32 %v947_v9, %v951_v18  ;;  %v5286_v18 = vrot.slane %v5253_v46, %v1215_v61  ;;  %v4487_v61 = vld [vmem:[#allocation14 + $0x4c0] ss:$16 sps:$4 sm:$0xff]  }
 0x2fb   :  { %v900_v21 = vpop.f32.mrf.mxu0  ;;  %v953_v22 = vpop.f32.mrf.mxu1  ;;  %v1170_v23 = vsel %vm1169_vm2, %v1168_v16, %v1112_v15 }
 0x2fc   :  { %v997_v26 = vrot.slane %v996_v19, 4  ;;  %v1011_v27 = vrot.slane %v1010_v20, 4  ;;  %v1003_v28 = vmax.f32 %v896_v11, %v900_v21  ;;  %v1017_v29 = vmax.f32 %v949_v12, %v953_v22 }
 0x2fd   :  { %v904_v30 = vpop.f32.mrf.mxu0  ;;  %v957_v32 = vpop.f32.mrf.mxu1  ;;  %v1172_v33 = vsel %vm1171_vm3, %v1168_v16, %v1170_v23 }
 0x2fe   :  { %v998_v34 = vmax.f32 %v996_v19, %v997_v26  ;;  %v1012_v35 = vmax.f32 %v1010_v20, %v1011_v27  ;;  %v1004_v36 = vrot.slane %v1003_v28, 4  ;;  %v1018_v37 = vrot.slane %v1017_v29, 4 }
 0x2ff   :  { %v906_v38 = vpop.f32.mrf.mxu0  ;;  %v959_v39 = vpop.f32.mrf.mxu1  ;;  %v1174_v40 = vsel %vm1173_vm4, %v1168_v16, %v1172_v33 }
 0x300   :  { %v1005_v42 = vmax.f32 %v1003_v28, %v1004_v36  ;;  %v1019_v43 = vmax.f32 %v1017_v29, %v1018_v37  ;;  %v1176_v48 = vsel %vm1175_vm5, %v1168_v16, %v1174_v40  ;;  %v999_v49 = vrot.slane %v998_v34, 2 }
 0x301   :  { %v908_v45 = vpop.f32.mrf.mxu0  ;;  %v961_v47 = vpop.f32.mrf.mxu1  ;;  %v1013_v52 = vrot.slane %v1012_v35, 2  ;;  %v1265_v1 = vadd.f32 %v1245_v44, %v1176_v48 }
 0x302   :  { %v1006_v53 = vrot.slane %v1005_v42, 2  ;;  %v1020_v55 = vrot.slane %v1019_v43, 2  ;;  %v1052_v57 = vmax.f32 %v904_v30, %v908_v45  ;;  %v1066_v58 = vmax.f32 %v957_v32, %v961_v47 }
 0x303   :  { %v910_v59 = vpop.f32.mrf.mxu0  ;;  %v963_v60 = vpop.f32.mrf.mxu1  ;;  %v1000_v7 = vmax.f32 %v998_v34, %v999_v49  ;;  %v1014_v8 = vmax.f32 %v1012_v35, %v1013_v52  ;;  %v1532_v16 = vrot.slane %v1265_v1, %v5258_v56  ;;  %v1525_v17 = vcombine.high %v1265_v1, %v1265_v1  ;;  %v4481_v35 = vld [vmem:[#allocation14 + $0x4e0] ss:$16 sps:$4 sm:$0xff]  }
 0x304   :  { %v1007_v63 = vmax.f32 %v1005_v42, %v1006_v53  ;;  %v1021_v0 = vmax.f32 %v1019_v43, %v1020_v55  ;;  %v1053_v3 = vrot.slane %v1052_v57, 4  ;;  %v1067_v4 = vrot.slane %v1066_v58, 4  ;;  %v4489_v42 = vld [vmem:[#allocation14 + $0x4c4] ss:$16 sps:$4 sm:$0xff]  }
 0x305   :  { %v1059_v5 = vmax.f32 %v906_v38, %v910_v59  ;;  %v1073_v6 = vmax.f32 %v959_v39, %v963_v60  ;;  %v1001_v23 = vrot.slane %v1000_v7, 1  ;;  %v1015_v24 = vrot.slane %v1014_v8, 1  ;;  %v4484_v60 = vld [vmem:[#allocation14 + $0x6e0] ss:$16 sps:$4 sm:$0xff]  }
 0x306   :  { %v1008_v9 = vrot.slane %v1007_v63, 1  ;;  %v1054_v11 = vmax.f32 %v1052_v57, %v1053_v3  ;;  %v1068_v12 = vmax.f32 %v1066_v58, %v1067_v4  ;;  %v1022_v15 = vrot.slane %v1021_v0, 1  ;;  %v4492_v3 = vld [vmem:[#allocation14 + $0x6c4] ss:$16 sps:$4 sm:$0xff]  }
 0x307   :  { %v1060_v13 = vrot.slane %v1059_v5, 4  ;;  %v1074_v14 = vrot.slane %v1073_v6, 4  ;;  %v1540_v26 = vcombine.high %v1532_v16, %v1532_v16  ;;  %v5288_v33 = vpack.c.bf16 %v1532_v16, %v1532_v16  ;;  %v4495_v4 = vld [vmem:[#allocation14 + $0x4a4] ss:$16 sps:$4 sm:$0xff]  }
 0x308   :  { %v1055_v19 = vrot.slane %v1054_v11, 2  ;;  %v1069_v20 = vrot.slane %v1068_v12, 2  ;;  %v1009_v25 = vmax.f32 %v1007_v63, %v1008_v9  ;;  %v1023_v32 = vmax.f32 %v1021_v0, %v1022_v15  ;;  %v4493_v9 = vld [vmem:[#allocation14 + $0x4a0] ss:$16 sps:$4 sm:$0xff]  }
 0x309   :  { %v1061_v21 = vmax.f32 %v1059_v5, %v1060_v13  ;;  %v1075_v22 = vmax.f32 %v1073_v6, %v1074_v14  ;;  %v5290_v34 = vpack.c.bf16 %v1540_v26, %v1540_v26  ;;  %v1539_v36 = vrot.slane %v1525_v17, %v5258_v56  ;;  %v4498_v13 = vld [vmem:[#allocation14 + $0x6a4] ss:$16 sps:$4 sm:$0xff]   ;;  %v4502_v26 = vld [vmem:[#allocation14 + $0x680] ss:$16 sps:$4 sm:$0xff]  }
 0x30a   :  { %v1056_v27 = vmax.f32 %v1054_v11, %v1055_v19  ;;  %v1070_v28 = vmax.f32 %v1068_v12, %v1069_v20  ;;  %v1002_v43 = vmax.f32 %v1000_v7, %v1001_v23  ;;  %v1016_v44 = vmax.f32 %v1014_v8, %v1015_v24  ;;  %v4490_v8 = vld [vmem:[#allocation14 + $0x6c0] ss:$16 sps:$4 sm:$0xff]   ;;  %v4501_v14 = vld [vmem:[#allocation14 + $0x484] ss:$16 sps:$4 sm:$0xff]  }
 0x30b   :  { %v1062_v29 = vrot.slane %v1061_v21, 2  ;;  %v1076_v30 = vrot.slane %v1075_v22, 2  ;;  %2909 = vmatprep.mubr.bf16.mxu0 %v5290_v34  ;;  %v1541_v45 = vcombine.high %v1539_v36, %v1539_v36  ;;  %v1220_v47 = vrot.slane %v5253_v46, %v1219_v62  ;;  %v4499_v19 = vld [vmem:[#allocation14 + $0x480] ss:$16 sps:$4 sm:$0xff]   ;;  %v4507_v23 = vld [vmem:[#allocation14 + $0x464] ss:$16 sps:$4 sm:$0xff]  }
 0x30c   :  { %v1057_v37 = vrot.slane %v1056_v27, 1  ;;  %v1071_v38 = vrot.slane %v1070_v28, 1  ;;  %2910 = vmatmul.mubr.bf16.vlgmr.msra.gmra.mxu0 %v5288_v33  ;;  %v1224_v52 = vrot.slane %v5253_v46, %v1223_v2  ;;  %v1228_v53 = vrot.slane %v5253_v46, %v1227_v10 }
 0x30d   :  { %v1063_v39 = vmax.f32 %v1061_v21, %v1062_v29  ;;  %v1077_v40 = vmax.f32 %v1075_v22, %v1076_v30  ;;  %v1113_v55 = vcombine.low %v1002_v43, %v1009_v25  ;;  %v1114_v57 = vcombine.low %v1016_v44, %v1023_v32  ;;  %2960 = vmatpush1.bf16.msra.mxu0 %v4481_v35  ;;  %v4504_v22 = vld [vmem:[#allocation14 + $0x684] ss:$16 sps:$4 sm:$0xff]  }
 0x30e   :  { %v5298_v58 = vpack.c.bf16 %v1539_v36, %v1539_v36  ;;  %v5300_v59 = vpack.c.bf16 %v1541_v45, %v1541_v45  ;;  %v1058_v63 = vmax.f32 %v1056_v27, %v1057_v37  ;;  %v1072_v0 = vmax.f32 %v1070_v28, %v1071_v38  ;;  %2961 = vmatprep.subr.bf16.mxu0 %v4489_v42  ;;  %v4505_v27 = vld [vmem:[#allocation14 + $0x460] ss:$16 sps:$4 sm:$0xff]   ;;  %v4510_v29 = vld [vmem:[#allocation14 + $0x664] ss:$16 sps:$4 sm:$0xff]  }
 0x30f   :  { %v1064_v48 = vrot.slane %v1063_v39, 1  ;;  %v1078_v49 = vrot.slane %v1077_v40, 1  ;;  %v1246_v5 = vcombine.low %v5286_v18, %v1220_v47  ;;  %v1247_v6 = vcombine.low %v1224_v52, %v1228_v53  ;;  %v4496_v18 = vld [vmem:[#allocation14 + $0x6a0] ss:$16 sps:$4 sm:$0xff]   ;;  %v4513_v30 = vld [vmem:[#allocation14 + $0x444] ss:$16 sps:$4 sm:$0xff]  }
 0x310   :  { %2950 = vmatprep.mubr.bf16.mxu1 %v5300_v59  ;;  %v1121_v7 = vrot.slane %v1113_v55, %v5258_v56  ;;  %v1128_v10 = vrot.slane %v1114_v57, %v5258_v56  ;;  %v4508_v37 = vld [vmem:[#allocation14 + $0x660] ss:$16 sps:$4 sm:$0xff]   ;;  %v4525_v52 = vld [vmem:[#allocation14 + $0x404] ss:$16 sps:$4 sm:$0xff]  }
 0x311   :  { %v1065_v62 = vmax.f32 %v1063_v39, %v1064_v48  ;;  %v1079_v1 = vmax.f32 %v1077_v40, %v1078_v49  ;;  %2951 = vmatmul.mubr.bf16.vlgmr.msra.gmra.mxu1 %v5298_v58  ;;  %2962 = vmatpush1.bf16.msra.mxu0 %v4487_v61  ;;  %v1254_v16 = vrot.slane %v1246_v5, %v5258_v56  ;;  %v4511_v38 = vld [vmem:[#allocation14 + $0x440] ss:$16 sps:$4 sm:$0xff]   ;;  %v4516_v39 = vld [vmem:[#allocation14 + $0x644] ss:$16 sps:$4 sm:$0xff]  }
 0x312   :  { %3001 = vmatpush1.bf16.msra.mxu1 %v4484_v60  ;;  %2963 = vmatprep.subr.bf16.mxu0 %v4495_v4  ;;  %v1261_v17 = vrot.slane %v1247_v6, %v5258_v56  ;;  %v1129_v20 = vcombine.low %v1121_v7, %v1128_v10  ;;  %v4519_v40 = vld [vmem:[#allocation14 + $0x424] ss:$16 sps:$4 sm:$0xff]   ;;  %v4514_v47 = vld [vmem:[#allocation14 + $0x640] ss:$16 sps:$4 sm:$0xff]  }
 0x313   :  { %v1147_v2 = vcombine.low %v1058_v63, %v1065_v62  ;;  %v1148_v46 = vcombine.low %v1072_v0, %v1079_v1  ;;  %3002 = vmatprep.subr.bf16.mxu1 %v4492_v3  ;;  %v4517_v48 = vld [vmem:[#allocation14 + $0x420] ss:$16 sps:$4 sm:$0xff]   ;;  %v4522_v49 = vld [vmem:[#allocation14 + $0x624] ss:$16 sps:$4 sm:$0xff]  }
 0x314   :  { %v1262_v25 = vcombine.low %v1254_v16, %v1261_v17  ;;  %v4523_v60 = vld [vmem:[#allocation14 + $0x400] ss:$16 sps:$4 sm:$0xff]   ;;  %v4528_v61 = vld [vmem:[#allocation14 + $0x604] ss:$16 sps:$4 sm:$0xff]  }
 0x315   :  { %v1155_v11 = vrot.slane %v1147_v2, %v5258_v56  ;;  %v1162_v12 = vrot.slane %v1148_v46, %v5258_v56  ;;  %2964 = vmatpush1.bf16.msra.mxu0 %v4493_v9  ;;  %v4531_v63 = vld [vmem:[#allocation14 + $0x5e4] ss:$16 sps:$4 sm:$0xff]   ;;  %v4526_v0 = vld [vmem:[#allocation14 + $0x600] ss:$16 sps:$4 sm:$0xff]  }
 0x316   :  { %3003 = vmatpush1.bf16.msra.mxu1 %v4490_v8  ;;  %2965 = vmatprep.subr.bf16.mxu0 %v4501_v14  ;;  %v4529_v62 = vld [vmem:[#allocation14 + $0x5e0] ss:$16 sps:$4 sm:$0xff]   ;;  %v4534_v1 = vld [vmem:[#allocation14 + $0x7e4] ss:$16 sps:$4 sm:$0xff]  }
 0x317   :  { %v1163_v15 = vcombine.low %v1155_v11, %v1162_v12  ;;  %3004 = vmatprep.subr.bf16.mxu1 %v4498_v13  ;;  %v4537_v3 = vld [vmem:[#allocation14 + $0x5c4] ss:$16 sps:$4 sm:$0xff]   ;;  %v4532_v4 = vld [vmem:[#allocation14 + $0x7e0] ss:$16 sps:$4 sm:$0xff]  }
 0x318   :  { %v4535_v2 = vld [vmem:[#allocation14 + $0x5c0] ss:$16 sps:$4 sm:$0xff]   ;;  %v4540_v46 = vld [vmem:[#allocation14 + $0x7c4] ss:$16 sps:$4 sm:$0xff]  }
 0x319   :  { %v1179_v21 = vrot.slane %v1163_v15, 7  ;;  %2966 = vmatpush1.bf16.msra.mxu0 %v4499_v19  ;;  %v4543_v5 = vld [vmem:[#allocation14 + $0x5a4] ss:$16 sps:$4 sm:$0xff]   ;;  %v4538_v6 = vld [vmem:[#allocation14 + $0x7c0] ss:$16 sps:$4 sm:$0xff]  }
 0x31a   :  { %3005 = vmatpush1.bf16.msra.mxu1 %v4496_v18  ;;  %2967 = vmatprep.subr.bf16.mxu0 %v4507_v23  ;;  %v4541_v7 = vld [vmem:[#allocation14 + $0x5a0] ss:$16 sps:$4 sm:$0xff]   ;;  %v4546_v8 = vld [vmem:[#allocation14 + $0x7a4] ss:$16 sps:$4 sm:$0xff]  }
 0x31b   :  { %v1180_v24 = vsel %vm1169_vm2, %v1179_v21, %v1129_v20  ;;  %3006 = vmatprep.subr.bf16.mxu1 %v4504_v22  ;;  %v4549_v9 = vld [vmem:[#allocation14 + $0x584] ss:$16 sps:$4 sm:$0xff]   ;;  %v4544_v10 = vld [vmem:[#allocation14 + $0x7a0] ss:$16 sps:$4 sm:$0xff]  }
 0x31c   :  { %v1181_v28 = vsel %vm1171_vm3, %v1179_v21, %v1180_v24  ;;  %v4547_v11 = vld [vmem:[#allocation14 + $0x580] ss:$16 sps:$4 sm:$0xff]   ;;  %v4552_v12 = vld [vmem:[#allocation14 + $0x784] ss:$16 sps:$4 sm:$0xff]  }
 0x31d   :  { %v1182_v32 = vsel %vm1173_vm4, %v1179_v21, %v1181_v28  ;;  %2968 = vmatpush1.bf16.msra.mxu0 %v4505_v27  ;;  %v4555_v13 = vld [vmem:[#allocation14 + $0x564] ss:$16 sps:$4 sm:$0xff]   ;;  %v4550_v14 = vld [vmem:[#allocation14 + $0x780] ss:$16 sps:$4 sm:$0xff]  }
 0x31e   :  { %v1183_v35 = vsel %vm1175_vm5, %v1179_v21, %v1182_v32  ;;  %3007 = vmatpush1.bf16.msra.mxu1 %v4502_v26  ;;  %2969 = vmatprep.subr.bf16.mxu0 %v4513_v30  ;;  %v4553_v15 = vld [vmem:[#allocation14 + $0x560] ss:$16 sps:$4 sm:$0xff]   ;;  %v4558_v16 = vld [vmem:[#allocation14 + $0x764] ss:$16 sps:$4 sm:$0xff]   ;;  %v4577_v32 = vld [vmem:[#allocation14 + $0xe8] ss:$16 sps:$4 sm:$0xff]  }
 0x31f   :  { %v1266_v36 = vadd.f32 %v1262_v25, %v1183_v35  ;;  %3008 = vmatprep.subr.bf16.mxu1 %v4510_v29  ;;  %v4561_v17 = vld [vmem:[#allocation14 + $0x544] ss:$16 sps:$4 sm:$0xff]   ;;  %v4556_v18 = vld [vmem:[#allocation14 + $0x760] ss:$16 sps:$4 sm:$0xff]   ;;  %v4579_v29 = vld [vmem:[#allocation14 + $0xec] ss:$16 sps:$4 sm:$0xff]  }
 0x320   :  { %v4559_v19 = vld [vmem:[#allocation14 + $0x540] ss:$16 sps:$4 sm:$0xff]   ;;  %v4564_v20 = vld [vmem:[#allocation14 + $0x744] ss:$16 sps:$4 sm:$0xff]  }
 0x321   :  { %v5316_v42 = vrot.slane %v1266_v36, %v5258_v56  ;;  %v1542_v43 = vcombine.high %v1266_v36, %v1266_v36  ;;  %2970 = vmatpush1.bf16.msra.mxu0 %v4511_v38  ;;  %v4567_v21 = vld [vmem:[#allocation14 + $0x524] ss:$16 sps:$4 sm:$0xff]   ;;  %v4562_v22 = vld [vmem:[#allocation14 + $0x740] ss:$16 sps:$4 sm:$0xff]   ;;  %v4582_v36 = vld [vmem:[#allocation14 + $0x2ec] ss:$16 sps:$4 sm:$0xff]  }
 0x322   :  { %3009 = vmatpush1.bf16.msra.mxu1 %v4508_v37  ;;  %2971 = vmatprep.subr.bf16.mxu0 %v4519_v40  ;;  %v4565_v23 = vld [vmem:[#allocation14 + $0x520] ss:$16 sps:$4 sm:$0xff]   ;;  %v4570_v24 = vld [vmem:[#allocation14 + $0x724] ss:$16 sps:$4 sm:$0xff]   ;;  %v4585_v37 = vld [vmem:[#allocation14 + $0xcc] ss:$16 sps:$4 sm:$0xff]  }
 0x323   :  { %v1557_v44 = vcombine.high %v5316_v42, %v5316_v42  ;;  %v5321_v45 = vrot.slane %v1542_v43, %v5258_v56  ;;  %3010 = vmatprep.subr.bf16.mxu1 %v4516_v39  ;;  %v4520_v56 = vld [vmem:[#allocation14 + $0x620] ss:$16 sps:$4 sm:$0xff]   ;;  %v4573_v25 = vld [vmem:[#allocation14 + $0x504] ss:$16 sps:$4 sm:$0xff]   ;;  %v5333_v35 = vpack.c.bf16 %v5316_v42, %v5316_v42  ;;  %v4580_v38 = vld [vmem:[#allocation14 + $0x2e8] ss:$16 sps:$4 sm:$0xff]  }
 0x324   :  { %v4568_v26 = vld [vmem:[#allocation14 + $0x720] ss:$16 sps:$4 sm:$0xff]   ;;  %v4576_v28 = vld [vmem:[#allocation14 + $0x704] ss:$16 sps:$4 sm:$0xff]   ;;  %v4583_v40 = vld [vmem:[#allocation14 + $0xc8] ss:$16 sps:$4 sm:$0xff]  }
 0x325   :  { %v5323_v53 = vpack.c.bf16 %v1557_v44, %v1557_v44  ;;  %v1558_v55 = vcombine.high %v5321_v45, %v5321_v45  ;;  %2972 = vmatpush1.bf16.msra.mxu0 %v4517_v48  ;;  %v4571_v27 = vld [vmem:[#allocation14 + $0x500] ss:$16 sps:$4 sm:$0xff]   ;;  %v5339_v39 = vpack.c.bf16 %v5321_v45, %v5321_v45  ;;  %v4588_v43 = vld [vmem:[#allocation14 + $0x2cc] ss:$16 sps:$4 sm:$0xff]   ;;  %v4586_v44 = vld [vmem:[#allocation14 + $0x2c8] ss:$16 sps:$4 sm:$0xff]  }
 0x326   :  { %3011 = vmatpush1.bf16.msra.mxu1 %v4514_v47  ;;  %2973 = vmatprep.subr.bf16.mxu0 %v4525_v52  ;;  %v4574_v30 = vld [vmem:[#allocation14 + $0x700] ss:$16 sps:$4 sm:$0xff]   ;;  %v4591_v42 = vld [vmem:[#allocation14 + $0xac] ss:$16 sps:$4 sm:$0xff]   ;;  %v4589_v47 = vld [vmem:[#allocation14 + $0xa8] ss:$16 sps:$4 sm:$0xff]  }
 0x327   :  { %2991 = vmatprep.mubr.bf16.mxu0 %v5323_v53  ;;  %v5328_v57 = vpack.c.bf16 %v1558_v55, %v1558_v55  ;;  %3012 = vmatprep.subr.bf16.mxu1 %v4522_v49  ;;  %v4594_v48 = vld [vmem:[#allocation14 + $0x2ac] ss:$16 sps:$4 sm:$0xff]   ;;  %v4592_v45 = vld [vmem:[#allocation14 + $0x2a8] ss:$16 sps:$4 sm:$0xff]  }
 0x328   :  { %v4595_v49 = vld [vmem:[#allocation14 + $0x88] ss:$16 sps:$4 sm:$0xff]   ;;  %v4600_v52 = vld [vmem:[#allocation14 + $0x28c] ss:$16 sps:$4 sm:$0xff]  }
 0x329   :  { %3032 = vmatprep.mubr.bf16.mxu1 %v5328_v57  ;;  %2974 = vmatpush1.bf16.msra.mxu0 %v4523_v60  ;;  %v4603_v55 = vld [vmem:[#allocation14 + $0x6c] ss:$16 sps:$4 sm:$0xff]  }
 0x32a   :  { %3013 = vmatpush1.bf16.msra.mxu1 %v4520_v56  ;;  %2975 = vmatprep.subr.bf16.mxu0 %v4531_v63  ;;  %v4598_v56 = vld [vmem:[#allocation14 + $0x288] ss:$16 sps:$4 sm:$0xff]   ;;  %v4606_v60 = vld [vmem:[#allocation14 + $0x26c] ss:$16 sps:$4 sm:$0xff]  }
 0x32b   :  { %3014 = vmatprep.subr.bf16.mxu1 %v4528_v61  ;;  %v4609_v61 = vld [vmem:[#allocation14 + $0x4c] ss:$16 sps:$4 sm:$0xff]   ;;  %v4604_v63 = vld [vmem:[#allocation14 + $0x268] ss:$16 sps:$4 sm:$0xff]  }
 0x32d   :  { %2976 = vmatpush2.bf16.msra.mxu0 %v4529_v62  ;;  %v4612_v62 = vld [vmem:[#allocation14 + $0x24c] ss:$16 sps:$4 sm:$0xff]  }
 0x32e   :  { %3015 = vmatpush1.bf16.msra.mxu1 %v4526_v0  ;;  %2977 = vmatprep.subr.bf16.mxu0 %v4537_v3  ;;  %v4607_v0 = vld [vmem:[#allocation14 + $0x48] ss:$16 sps:$4 sm:$0xff]  }
 0x32f   :  { %3016 = vmatprep.subr.bf16.mxu1 %v4534_v1  ;;  %v4615_v1 = vld [vmem:[#allocation14 + $0x2c] ss:$16 sps:$4 sm:$0xff]   ;;  %v4610_v3 = vld [vmem:[#allocation14 + $0x248] ss:$16 sps:$4 sm:$0xff]  }
 0x331   :  { %2978 = vmatpush2.bf16.msra.mxu0 %v4535_v2  ;;  %v4618_v2 = vld [vmem:[#allocation14 + $0x22c] ss:$16 sps:$4 sm:$0xff]  }
 0x332   :  { %3017 = vmatpush2.bf16.msra.mxu1 %v4532_v4  ;;  %2979 = vmatprep.subr.bf16.mxu0 %v4543_v5  ;;  %v4613_v4 = vld [vmem:[#allocation14 + $0x28] ss:$16 sps:$4 sm:$0xff]  }
 0x333   :  { %3018 = vmatprep.subr.bf16.mxu1 %v4540_v46  ;;  %v4621_v46 = vld [vmem:[#allocation14 + $0xc] ss:$16 sps:$4 sm:$0xff]   ;;  %v4616_v5 = vld [vmem:[#allocation14 + $0x228] ss:$16 sps:$4 sm:$0xff]  }
 0x335   :  { %2980 = vmatpush2.bf16.msra.mxu0 %v4541_v7  ;;  %v4624_v7 = vld [vmem:[#allocation14 + $0x20c] ss:$16 sps:$4 sm:$0xff]  }
 0x336   :  { %3019 = vmatpush2.bf16.msra.mxu1 %v4538_v6  ;;  %2981 = vmatprep.subr.bf16.mxu0 %v4549_v9  ;;  %v4619_v6 = vld [vmem:[#allocation14 + $0x8] ss:$16 sps:$4 sm:$0xff]  }
 0x337   :  { %3020 = vmatprep.subr.bf16.mxu1 %v4546_v8  ;;  %v4627_v8 = vld [vmem:[#allocation14 + $0x1ec] ss:$16 sps:$4 sm:$0xff]   ;;  %v4622_v9 = vld [vmem:[#allocation14 + $0x208] ss:$16 sps:$4 sm:$0xff]  }
 0x339   :  { %2982 = vmatpush2.bf16.msra.mxu0 %v4547_v11  ;;  %v4630_v11 = vld [vmem:[#allocation14 + $0x3ec] ss:$16 sps:$4 sm:$0xff]  }
 0x33a   :  { %3021 = vmatpush2.bf16.msra.mxu1 %v4544_v10  ;;  %2983 = vmatprep.subr.bf16.mxu0 %v4555_v13  ;;  %v4625_v10 = vld [vmem:[#allocation14 + $0x1e8] ss:$16 sps:$4 sm:$0xff]  }
 0x33b   :  { %3022 = vmatprep.subr.bf16.mxu1 %v4552_v12  ;;  %v4633_v12 = vld [vmem:[#allocation14 + $0x1cc] ss:$16 sps:$4 sm:$0xff]   ;;  %v4628_v13 = vld [vmem:[#allocation14 + $0x3e8] ss:$16 sps:$4 sm:$0xff]  }
 0x33d   :  { %2984 = vmatpush2.bf16.msra.mxu0 %v4553_v15  ;;  %v4636_v15 = vld [vmem:[#allocation14 + $0x3cc] ss:$16 sps:$4 sm:$0xff]  }
 0x33e   :  { %3023 = vmatpush2.bf16.msra.mxu1 %v4550_v14  ;;  %2985 = vmatprep.subr.bf16.mxu0 %v4561_v17  ;;  %v4631_v14 = vld [vmem:[#allocation14 + $0x1c8] ss:$16 sps:$4 sm:$0xff]  }
 0x33f   :  { %3024 = vmatprep.subr.bf16.mxu1 %v4558_v16  ;;  %v4639_v16 = vld [vmem:[#allocation14 + $0x1ac] ss:$16 sps:$4 sm:$0xff]   ;;  %v4634_v17 = vld [vmem:[#allocation14 + $0x3c8] ss:$16 sps:$4 sm:$0xff]  }
 0x341   :  { %2986 = vmatpush2.bf16.msra.mxu0 %v4559_v19  ;;  %v4642_v19 = vld [vmem:[#allocation14 + $0x3ac] ss:$16 sps:$4 sm:$0xff]  }
 0x342   :  { %3025 = vmatpush2.bf16.msra.mxu1 %v4556_v18  ;;  %2987 = vmatprep.subr.bf16.mxu0 %v4567_v21  ;;  %v4637_v18 = vld [vmem:[#allocation14 + $0x1a8] ss:$16 sps:$4 sm:$0xff]  }
 0x343   :  { %3026 = vmatprep.subr.bf16.mxu1 %v4564_v20  ;;  %v4645_v20 = vld [vmem:[#allocation14 + $0x18c] ss:$16 sps:$4 sm:$0xff]   ;;  %v4640_v21 = vld [vmem:[#allocation14 + $0x3a8] ss:$16 sps:$4 sm:$0xff]  }
 0x345   :  { %2988 = vmatpush2.bf16.msra.mxu0 %v4565_v23  ;;  %v4648_v23 = vld [vmem:[#allocation14 + $0x38c] ss:$16 sps:$4 sm:$0xff]  }
 0x346   :  { %3027 = vmatpush2.bf16.msra.mxu1 %v4562_v22  ;;  %2989 = vmatprep.subr.bf16.mxu0 %v4573_v25  ;;  %v4643_v22 = vld [vmem:[#allocation14 + $0x188] ss:$16 sps:$4 sm:$0xff]  }
 0x347   :  { %3028 = vmatprep.subr.bf16.mxu1 %v4570_v24  ;;  %v4651_v24 = vld [vmem:[#allocation14 + $0x16c] ss:$16 sps:$4 sm:$0xff]   ;;  %v4646_v25 = vld [vmem:[#allocation14 + $0x388] ss:$16 sps:$4 sm:$0xff]  }
 0x349   :  { %2990 = vmatpush2.bf16.msra.mxu0 %v4571_v27  ;;  %v4654_v27 = vld [vmem:[#allocation14 + $0x36c] ss:$16 sps:$4 sm:$0xff]  }
 0x34a   :  { %3029 = vmatpush2.bf16.msra.mxu1 %v4568_v26  ;;  %3041 = vmatprep.subr.bf16.mxu0 %v4579_v29  ;;  %v4649_v26 = vld [vmem:[#allocation14 + $0x168] ss:$16 sps:$4 sm:$0xff]  }
 0x34b   :  { %3030 = vmatprep.subr.bf16.mxu1 %v4576_v28  ;;  %v4657_v28 = vld [vmem:[#allocation14 + $0x14c] ss:$16 sps:$4 sm:$0xff]   ;;  %v4652_v29 = vld [vmem:[#allocation14 + $0x368] ss:$16 sps:$4 sm:$0xff]  }
 0x34c   :  { %2992 = vmatmul.mubr.bf16.vlgmr.msra.gmra.mxu0 %v5333_v35 }
 0x34d   :  { %3042 = vmatpush1.bf16.msra.mxu0 %v4577_v32  ;;  %3073 = vmatprep.mubr.bf16.mxu0 %v5290_v34  ;;  %v4597_v34 = vld [vmem:[#allocation14 + $0x8c] ss:$16 sps:$4 sm:$0xff]  }
 0x34e   :  { %3031 = vmatpush2.bf16.msra.mxu1 %v4574_v30  ;;  %3043 = vmatprep.subr.bf16.mxu0 %v4585_v37  ;;  %v4655_v30 = vld [vmem:[#allocation14 + $0x148] ss:$16 sps:$4 sm:$0xff]   ;;  %v4660_v32 = vld [vmem:[#allocation14 + $0x34c] ss:$16 sps:$4 sm:$0xff]  }
 0x34f   :  { %3082 = vmatprep.subr.bf16.mxu1 %v4582_v36  ;;  %v4663_v36 = vld [vmem:[#allocation14 + $0x12c] ss:$16 sps:$4 sm:$0xff]   ;;  %v4658_v37 = vld [vmem:[#allocation14 + $0x348] ss:$16 sps:$4 sm:$0xff]  }
 0x351   :  { %3033 = vmatmul.mubr.bf16.vlgmr.msra.gmra.mxu1 %v5339_v39  ;;  %3044 = vmatpush1.bf16.msra.mxu0 %v4583_v40  ;;  %v4666_v40 = vld [vmem:[#allocation14 + $0x32c] ss:$16 sps:$4 sm:$0xff]  }
 0x352   :  { %3083 = vmatpush1.bf16.msra.mxu1 %v4580_v38  ;;  %3114 = vmatprep.mubr.bf16.mxu1 %v5300_v59  ;;  %v4601_v59 = vld [vmem:[#allocation14 + $0x68] ss:$16 sps:$4 sm:$0xff]  }
 0x353   :  { %3084 = vmatprep.subr.bf16.mxu1 %v4588_v43  ;;  %3045 = vmatprep.subr.bf16.mxu0 %v4591_v42  ;;  %v4661_v38 = vld [vmem:[#allocation14 + $0x128] ss:$16 sps:$4 sm:$0xff]   ;;  %v4669_v43 = vld [vmem:[#allocation14 + $0x10c] ss:$16 sps:$4 sm:$0xff]  }
 0x354   :  { %v4664_v42 = vld [vmem:[#allocation14 + $0x328] ss:$16 sps:$4 sm:$0xff]  }
 0x355   :  { %3046 = vmatpush1.bf16.msra.mxu0 %v4589_v47  ;;  %v4672_v47 = vld [vmem:[#allocation14 + $0x30c] ss:$16 sps:$4 sm:$0xff]  }
 0x356   :  { %3085 = vmatpush1.bf16.msra.mxu1 %v4586_v44  ;;  %3047 = vmatprep.subr.bf16.mxu0 %v4597_v34  ;;  %v4667_v44 = vld [vmem:[#allocation14 + $0x108] ss:$16 sps:$4 sm:$0xff]  }
 0x357   :  { %3086 = vmatprep.subr.bf16.mxu1 %v4594_v48  ;;  %v4675_v48 = vld [vmem:[#allocation14 + $0x4ec] ss:$16 sps:$4 sm:$0xff]   ;;  %v4670_v34 = vld [vmem:[#allocation14 + $0x308] ss:$16 sps:$4 sm:$0xff]  }
 0x359   :  { %3048 = vmatpush1.bf16.msra.mxu0 %v4595_v49  ;;  %v4678_v49 = vld [vmem:[#allocation14 + $0x6ec] ss:$16 sps:$4 sm:$0xff]  }
 0x35a   :  { %3087 = vmatpush1.bf16.msra.mxu1 %v4592_v45  ;;  %3049 = vmatprep.subr.bf16.mxu0 %v4603_v55  ;;  %v4673_v45 = vld [vmem:[#allocation14 + $0x4e8] ss:$16 sps:$4 sm:$0xff]  }
 0x35b   :  { %3088 = vmatprep.subr.bf16.mxu1 %v4600_v52  ;;  %v4681_v52 = vld [vmem:[#allocation14 + $0x4cc] ss:$16 sps:$4 sm:$0xff]   ;;  %v4676_v55 = vld [vmem:[#allocation14 + $0x6e8] ss:$16 sps:$4 sm:$0xff]  }
 0x35d   :  { %3050 = vmatpush1.bf16.msra.mxu0 %v4601_v59  ;;  %v4684_v59 = vld [vmem:[#allocation14 + $0x6cc] ss:$16 sps:$4 sm:$0xff]  }
 0x35e   :  { %3089 = vmatpush1.bf16.msra.mxu1 %v4598_v56  ;;  %3051 = vmatprep.subr.bf16.mxu0 %v4609_v61  ;;  %v4679_v56 = vld [vmem:[#allocation14 + $0x4c8] ss:$16 sps:$4 sm:$0xff]  }
 0x35f   :  { %3090 = vmatprep.subr.bf16.mxu1 %v4606_v60  ;;  %v4687_v60 = vld [vmem:[#allocation14 + $0x4ac] ss:$16 sps:$4 sm:$0xff]   ;;  %v4682_v61 = vld [vmem:[#allocation14 + $0x6c8] ss:$16 sps:$4 sm:$0xff]  }
 0x361   :  { %3052 = vmatpush1.bf16.msra.mxu0 %v4607_v0  ;;  %v4690_v0 = vld [vmem:[#allocation14 + $0x6ac] ss:$16 sps:$4 sm:$0xff]  }
 0x362   :  { %3091 = vmatpush1.bf16.msra.mxu1 %v4604_v63  ;;  %3053 = vmatprep.subr.bf16.mxu0 %v4615_v1  ;;  %v4685_v63 = vld [vmem:[#allocation14 + $0x4a8] ss:$16 sps:$4 sm:$0xff]   ;;  %v4696_v1 = vld [vmem:[#allocation14 + $0x68c] ss:$16 sps:$4 sm:$0xff]  }
 0x363   :  { %3092 = vmatprep.subr.bf16.mxu1 %v4612_v62  ;;  %v4688_v62 = vld [vmem:[#allocation14 + $0x6a8] ss:$16 sps:$4 sm:$0xff]  }
 0x365   :  { %3054 = vmatpush1.bf16.msra.mxu0 %v4613_v4  ;;  %v4702_v4 = vld [vmem:[#allocation14 + $0x66c] ss:$16 sps:$4 sm:$0xff]  }
 0x366   :  { %3093 = vmatpush1.bf16.msra.mxu1 %v4610_v3  ;;  %3055 = vmatprep.subr.bf16.mxu0 %v4621_v46  ;;  %v4699_v3 = vld [vmem:[#allocation14 + $0x46c] ss:$16 sps:$4 sm:$0xff]   ;;  %v4700_v46 = vld [vmem:[#allocation14 + $0x668] ss:$16 sps:$4 sm:$0xff]  }
 0x367   :  { %3094 = vmatprep.subr.bf16.mxu1 %v4618_v2  ;;  %v4705_v2 = vld [vmem:[#allocation14 + $0x44c] ss:$16 sps:$4 sm:$0xff]  }
 0x369   :  { %3056 = vmatpush1.bf16.msra.mxu0 %v4619_v6  ;;  %v4708_v6 = vld [vmem:[#allocation14 + $0x64c] ss:$16 sps:$4 sm:$0xff]  }
 0x36a   :  { %3095 = vmatpush1.bf16.msra.mxu1 %v4616_v5  ;;  %3057 = vmatprep.subr.bf16.mxu0 %v4627_v8  ;;  %v4703_v5 = vld [vmem:[#allocation14 + $0x448] ss:$16 sps:$4 sm:$0xff]  }
 0x36b   :  { %3096 = vmatprep.subr.bf16.mxu1 %v4624_v7  ;;  %v4711_v7 = vld [vmem:[#allocation14 + $0x42c] ss:$16 sps:$4 sm:$0xff]   ;;  %v4706_v8 = vld [vmem:[#allocation14 + $0x648] ss:$16 sps:$4 sm:$0xff]  }
 0x36d   :  { %3058 = vmatpush2.bf16.msra.mxu0 %v4625_v10  ;;  %v4714_v10 = vld [vmem:[#allocation14 + $0x62c] ss:$16 sps:$4 sm:$0xff]  }
 0x36e   :  { %3097 = vmatpush1.bf16.msra.mxu1 %v4622_v9  ;;  %3059 = vmatprep.subr.bf16.mxu0 %v4633_v12  ;;  %v4709_v9 = vld [vmem:[#allocation14 + $0x428] ss:$16 sps:$4 sm:$0xff]  }
 0x36f   :  { %3098 = vmatprep.subr.bf16.mxu1 %v4630_v11  ;;  %v4717_v11 = vld [vmem:[#allocation14 + $0x40c] ss:$16 sps:$4 sm:$0xff]   ;;  %v4712_v12 = vld [vmem:[#allocation14 + $0x628] ss:$16 sps:$4 sm:$0xff]  }
 0x371   :  { %3060 = vmatpush2.bf16.msra.mxu0 %v4631_v14  ;;  %v4720_v14 = vld [vmem:[#allocation14 + $0x60c] ss:$16 sps:$4 sm:$0xff]  }
 0x372   :  { %3099 = vmatpush2.bf16.msra.mxu1 %v4628_v13  ;;  %3061 = vmatprep.subr.bf16.mxu0 %v4639_v16  ;;  %v4715_v13 = vld [vmem:[#allocation14 + $0x408] ss:$16 sps:$4 sm:$0xff]  }
 0x373   :  { %3100 = vmatprep.subr.bf16.mxu1 %v4636_v15  ;;  %v4723_v15 = vld [vmem:[#allocation14 + $0x5ec] ss:$16 sps:$4 sm:$0xff]   ;;  %v4718_v16 = vld [vmem:[#allocation14 + $0x608] ss:$16 sps:$4 sm:$0xff]  }
 0x375   :  { %3062 = vmatpush2.bf16.msra.mxu0 %v4637_v18  ;;  %v4726_v18 = vld [vmem:[#allocation14 + $0x7ec] ss:$16 sps:$4 sm:$0xff]  }
 0x376   :  { %3101 = vmatpush2.bf16.msra.mxu1 %v4634_v17  ;;  %3063 = vmatprep.subr.bf16.mxu0 %v4645_v20  ;;  %v4721_v17 = vld [vmem:[#allocation14 + $0x5e8] ss:$16 sps:$4 sm:$0xff]  }
 0x377   :  { %3102 = vmatprep.subr.bf16.mxu1 %v4642_v19  ;;  %v4729_v19 = vld [vmem:[#allocation14 + $0x5cc] ss:$16 sps:$4 sm:$0xff]   ;;  %v4724_v20 = vld [vmem:[#allocation14 + $0x7e8] ss:$16 sps:$4 sm:$0xff]  }
 0x379   :  { %3064 = vmatpush2.bf16.msra.mxu0 %v4643_v22  ;;  %v4732_v22 = vld [vmem:[#allocation14 + $0x7cc] ss:$16 sps:$4 sm:$0xff]  }
 0x37a   :  { %3103 = vmatpush2.bf16.msra.mxu1 %v4640_v21  ;;  %3065 = vmatprep.subr.bf16.mxu0 %v4651_v24  ;;  %v4727_v21 = vld [vmem:[#allocation14 + $0x5c8] ss:$16 sps:$4 sm:$0xff]  }
 0x37b   :  { %3104 = vmatprep.subr.bf16.mxu1 %v4648_v23  ;;  %v4735_v23 = vld [vmem:[#allocation14 + $0x5ac] ss:$16 sps:$4 sm:$0xff]   ;;  %v4730_v24 = vld [vmem:[#allocation14 + $0x7c8] ss:$16 sps:$4 sm:$0xff]  }
 0x37d   :  { %3066 = vmatpush2.bf16.msra.mxu0 %v4649_v26  ;;  %v4738_v26 = vld [vmem:[#allocation14 + $0x7ac] ss:$16 sps:$4 sm:$0xff]  }
 0x37e   :  { %3105 = vmatpush2.bf16.msra.mxu1 %v4646_v25  ;;  %3067 = vmatprep.subr.bf16.mxu0 %v4657_v28  ;;  %v4733_v25 = vld [vmem:[#allocation14 + $0x5a8] ss:$16 sps:$4 sm:$0xff]  }
 0x37f   :  { %3106 = vmatprep.subr.bf16.mxu1 %v4654_v27  ;;  %v4741_v27 = vld [vmem:[#allocation14 + $0x58c] ss:$16 sps:$4 sm:$0xff]   ;;  %v4736_v28 = vld [vmem:[#allocation14 + $0x7a8] ss:$16 sps:$4 sm:$0xff]  }
 0x381   :  { %3068 = vmatpush2.bf16.msra.mxu0 %v4655_v30  ;;  %v4744_v30 = vld [vmem:[#allocation14 + $0x78c] ss:$16 sps:$4 sm:$0xff]  }
 0x382   :  { %3107 = vmatpush2.bf16.msra.mxu1 %v4652_v29  ;;  %3069 = vmatprep.subr.bf16.mxu0 %v4663_v36  ;;  %v4739_v29 = vld [vmem:[#allocation14 + $0x588] ss:$16 sps:$4 sm:$0xff]  }
 0x383   :  { %3108 = vmatprep.subr.bf16.mxu1 %v4660_v32  ;;  %v4747_v32 = vld [vmem:[#allocation14 + $0x56c] ss:$16 sps:$4 sm:$0xff]   ;;  %v4742_v36 = vld [vmem:[#allocation14 + $0x788] ss:$16 sps:$4 sm:$0xff]  }
 0x385   :  { %3070 = vmatpush2.bf16.msra.mxu0 %v4661_v38  ;;  %v4750_v38 = vld [vmem:[#allocation14 + $0x76c] ss:$16 sps:$4 sm:$0xff]  }
 0x386   :  { %3109 = vmatpush2.bf16.msra.mxu1 %v4658_v37  ;;  %3071 = vmatprep.subr.bf16.mxu0 %v4669_v43  ;;  %v4745_v37 = vld [vmem:[#allocation14 + $0x568] ss:$16 sps:$4 sm:$0xff]  }
 0x387   :  { %3110 = vmatprep.subr.bf16.mxu1 %v4666_v40  ;;  %v4753_v40 = vld [vmem:[#allocation14 + $0x54c] ss:$16 sps:$4 sm:$0xff]   ;;  %v4748_v43 = vld [vmem:[#allocation14 + $0x768] ss:$16 sps:$4 sm:$0xff]  }
 0x389   :  { %3072 = vmatpush2.bf16.msra.mxu0 %v4667_v44  ;;  %v4756_v44 = vld [vmem:[#allocation14 + $0x74c] ss:$16 sps:$4 sm:$0xff]  }
 0x38a   :  { %3111 = vmatpush2.bf16.msra.mxu1 %v4664_v42  ;;  %3123 = vmatprep.subr.bf16.mxu0 %v4675_v48  ;;  %v4751_v42 = vld [vmem:[#allocation14 + $0x548] ss:$16 sps:$4 sm:$0xff]  }
 0x38b   :  { %3112 = vmatprep.subr.bf16.mxu1 %v4672_v47  ;;  %v4759_v47 = vld [vmem:[#allocation14 + $0x52c] ss:$16 sps:$4 sm:$0xff]   ;;  %v4754_v48 = vld [vmem:[#allocation14 + $0x748] ss:$16 sps:$4 sm:$0xff]  }
 0x38c   :  { %3074 = vmatmul.mubr.bf16.vlgmr.msra.gmra.mxu0 %v5288_v33  ;;  %v4693_v33 = vld [vmem:[#allocation14 + $0x48c] ss:$16 sps:$4 sm:$0xff]  }
 0x38d   :  { %3124 = vmatpush1.bf16.msra.mxu0 %v4673_v45  ;;  %3155 = vmatprep.mubr.bf16.mxu0 %v5323_v53  ;;  %v4691_v53 = vld [vmem:[#allocation14 + $0x488] ss:$16 sps:$4 sm:$0xff]   ;;  %v4762_v45 = vld [vmem:[#allocation14 + $0x72c] ss:$16 sps:$4 sm:$0xff]  }
 0x38e   :  { %3113 = vmatpush2.bf16.msra.mxu1 %v4670_v34  ;;  %3125 = vmatprep.subr.bf16.mxu0 %v4681_v52  ;;  %v4757_v34 = vld [vmem:[#allocation14 + $0x528] ss:$16 sps:$4 sm:$0xff]  }
 0x38f   :  { %3164 = vmatprep.subr.bf16.mxu1 %v4678_v49  ;;  %v4765_v49 = vld [vmem:[#allocation14 + $0x50c] ss:$16 sps:$4 sm:$0xff]   ;;  %v4760_v52 = vld [vmem:[#allocation14 + $0x728] ss:$16 sps:$4 sm:$0xff]  }
 0x391   :  { %3115 = vmatmul.mubr.bf16.vlgmr.msra.gmra.mxu1 %v5298_v58  ;;  %3126 = vmatpush1.bf16.msra.mxu0 %v4679_v56  ;;  %v4694_v58 = vld [vmem:[#allocation14 + $0x688] ss:$16 sps:$4 sm:$0xff]   ;;  %v4768_v56 = vld [vmem:[#allocation14 + $0x70c] ss:$16 sps:$4 sm:$0xff]  }
 0x392   :  { %3165 = vmatpush1.bf16.msra.mxu1 %v4676_v55  ;;  %3196 = vmatprep.mubr.bf16.mxu1 %v5328_v57  ;;  %v4697_v57 = vld [vmem:[#allocation14 + $0x468] ss:$16 sps:$4 sm:$0xff]  }
 0x393   :  { %3166 = vmatprep.subr.bf16.mxu1 %v4684_v59  ;;  %3127 = vmatprep.subr.bf16.mxu0 %v4687_v60  ;;  %v4763_v55 = vld [vmem:[#allocation14 + $0x508] ss:$16 sps:$4 sm:$0xff]   ;;  %v4771_v59 = vld [vmem:[#allocation15 + $0x74] ss:$8 sps:$4 sm:$0xff]  }
 0x394   :  { %v4766_v60 = vld [vmem:[#allocation14 + $0x708] ss:$16 sps:$4 sm:$0xff]  }
 0x395   :  { %3128 = vmatpush1.bf16.msra.mxu0 %v4685_v63  ;;  %v4774_v63 = vld [vmem:[#allocation15 + $0x64] ss:$8 sps:$4 sm:$0xff]  }
 0x396   :  { %3167 = vmatpush1.bf16.msra.mxu1 %v4682_v61  ;;  %3129 = vmatprep.subr.bf16.mxu0 %v4693_v33  ;;  %v4769_v61 = vld [vmem:[#allocation15 + $0x70] ss:$8 sps:$4 sm:$0xff]  }
 0x397   :  { %3168 = vmatprep.subr.bf16.mxu1 %v4690_v0 }
 0x399   :  { %3130 = vmatpush1.bf16.msra.mxu0 %v4691_v53  ;;  %v4777_v53 = vld [vmem:[#allocation15 + $0x54] ss:$8 sps:$4 sm:$0xff]  }
 0x39a   :  { %3169 = vmatpush1.bf16.msra.mxu1 %v4688_v62  ;;  %3131 = vmatprep.subr.bf16.mxu0 %v4699_v3  ;;  %v4772_v62 = vld [vmem:[#allocation15 + $0x60] ss:$8 sps:$4 sm:$0xff]  }
 0x39b   :  { %3170 = vmatprep.subr.bf16.mxu1 %v4696_v1 }
 0x39d   :  { %3132 = vmatpush1.bf16.msra.mxu0 %v4697_v57 }
 0x39e   :  { %3171 = vmatpush1.bf16.msra.mxu1 %v4694_v58  ;;  %3133 = vmatprep.subr.bf16.mxu0 %v4705_v2  ;;  %v4780_v2 = vld [vmem:[#allocation15 + $0x44] ss:$8 sps:$4 sm:$0xff]  }
 0x39f   :  { %3172 = vmatprep.subr.bf16.mxu1 %v4702_v4  ;;  %v4775_v4 = vld [vmem:[#allocation15 + $0x50] ss:$8 sps:$4 sm:$0xff]  }
 0x3a1   :  { %3134 = vmatpush1.bf16.msra.mxu0 %v4703_v5  ;;  %v4778_v5 = vld [vmem:[#allocation15 + $0x40] ss:$8 sps:$4 sm:$0xff]  }
 0x3a2   :  { %3173 = vmatpush1.bf16.msra.mxu1 %v4700_v46  ;;  %3135 = vmatprep.subr.bf16.mxu0 %v4711_v7  ;;  %v4819_v7 = vld [vmem:[#allocation15 + $0x174] ss:$8 sps:$4 sm:$0xff]  }
 0x3a3   :  { %3174 = vmatprep.subr.bf16.mxu1 %v4708_v6  ;;  %v4817_v6 = vld [vmem:[#allocation15 + $0x170] ss:$8 sps:$4 sm:$0xff]  }
 0x3a5   :  { %3136 = vmatpush1.bf16.msra.mxu0 %v4709_v9  ;;  %v4822_v9 = vld [vmem:[#allocation15 + $0x164] ss:$8 sps:$4 sm:$0xff]  }
 0x3a6   :  { %3175 = vmatpush1.bf16.msra.mxu1 %v4706_v8  ;;  %3137 = vmatprep.subr.bf16.mxu0 %v4717_v11  ;;  %v4783_v8 = vld [vmem:[#allocation15 + $0x34] ss:$8 sps:$4 sm:$0xff]  }
 0x3a7   :  { %3176 = vmatprep.subr.bf16.mxu1 %v4714_v10  ;;  %v4781_v10 = vld [vmem:[#allocation15 + $0x30] ss:$8 sps:$4 sm:$0xff]   ;;  %v4825_v11 = vld [vmem:[#allocation15 + $0x154] ss:$8 sps:$4 sm:$0xff]  }
 0x3a9   :  { %3138 = vmatpush1.bf16.msra.mxu0 %v4715_v13  ;;  %v4823_v13 = vld [vmem:[#allocation15 + $0x150] ss:$8 sps:$4 sm:$0xff]  }
 0x3aa   :  { %3177 = vmatpush1.bf16.msra.mxu1 %v4712_v12  ;;  %3139 = vmatprep.subr.bf16.mxu0 %v4723_v15  ;;  %v4786_v12 = vld [vmem:[#allocation15 + $0x24] ss:$8 sps:$4 sm:$0xff]  }
 0x3ab   :  { %3178 = vmatprep.subr.bf16.mxu1 %v4720_v14  ;;  %v4784_v14 = vld [vmem:[#allocation15 + $0x20] ss:$8 sps:$4 sm:$0xff]   ;;  %v4828_v15 = vld [vmem:[#allocation15 + $0x144] ss:$8 sps:$4 sm:$0xff]  }
 0x3ad   :  { %3140 = vmatpush2.bf16.msra.mxu0 %v4721_v17  ;;  %v4826_v17 = vld [vmem:[#allocation15 + $0x140] ss:$8 sps:$4 sm:$0xff]  }
 0x3ae   :  { %3179 = vmatpush1.bf16.msra.mxu1 %v4718_v16  ;;  %3141 = vmatprep.subr.bf16.mxu0 %v4729_v19  ;;  %v4789_v16 = vld [vmem:[#allocation15 + $0x14] ss:$8 sps:$4 sm:$0xff]  }
 0x3af   :  { %3180 = vmatprep.subr.bf16.mxu1 %v4726_v18  ;;  %v4787_v18 = vld [vmem:[#allocation15 + $0x10] ss:$8 sps:$4 sm:$0xff]   ;;  %v4831_v19 = vld [vmem:[#allocation15 + $0x134] ss:$8 sps:$4 sm:$0xff]  }
 0x3b1   :  { %3142 = vmatpush2.bf16.msra.mxu0 %v4727_v21  ;;  %v4829_v21 = vld [vmem:[#allocation15 + $0x130] ss:$8 sps:$4 sm:$0xff]  }
 0x3b2   :  { %3181 = vmatpush2.bf16.msra.mxu1 %v4724_v20  ;;  %3143 = vmatprep.subr.bf16.mxu0 %v4735_v23  ;;  %v4792_v20 = vld [vmem:[#allocation15 + $0x4] ss:$8 sps:$4 sm:$0xff]  }
 0x3b3   :  { %3182 = vmatprep.subr.bf16.mxu1 %v4732_v22  ;;  %v4790_v22 = vld [vmem:[#allocation15] ss:$8 sps:$4 sm:$0xff]   ;;  %v4834_v23 = vld [vmem:[#allocation15 + $0x124] ss:$8 sps:$4 sm:$0xff]  }
 0x3b5   :  { %3144 = vmatpush2.bf16.msra.mxu0 %v4733_v25  ;;  %v4832_v25 = vld [vmem:[#allocation15 + $0x120] ss:$8 sps:$4 sm:$0xff]  }
 0x3b6   :  { %3183 = vmatpush2.bf16.msra.mxu1 %v4730_v24  ;;  %3145 = vmatprep.subr.bf16.mxu0 %v4741_v27  ;;  %v4795_v24 = vld [vmem:[#allocation15 + $0xf4] ss:$8 sps:$4 sm:$0xff]  }
 0x3b7   :  { %3184 = vmatprep.subr.bf16.mxu1 %v4738_v26  ;;  %v4793_v26 = vld [vmem:[#allocation15 + $0xf0] ss:$8 sps:$4 sm:$0xff]   ;;  %v4837_v27 = vld [vmem:[#allocation15 + $0x114] ss:$8 sps:$4 sm:$0xff]  }
 0x3b9   :  { %3146 = vmatpush2.bf16.msra.mxu0 %v4739_v29  ;;  %v4835_v29 = vld [vmem:[#allocation15 + $0x110] ss:$8 sps:$4 sm:$0xff]  }
 0x3ba   :  { %3185 = vmatpush2.bf16.msra.mxu1 %v4736_v28  ;;  %3147 = vmatprep.subr.bf16.mxu0 %v4747_v32  ;;  %v4798_v28 = vld [vmem:[#allocation15 + $0xe4] ss:$8 sps:$4 sm:$0xff]  }
 0x3bb   :  { %3186 = vmatprep.subr.bf16.mxu1 %v4744_v30  ;;  %v4796_v30 = vld [vmem:[#allocation15 + $0xe0] ss:$8 sps:$4 sm:$0xff]   ;;  %v4840_v32 = vld [vmem:[#allocation15 + $0x104] ss:$8 sps:$4 sm:$0xff]  }
 0x3bd   :  { %3148 = vmatpush2.bf16.msra.mxu0 %v4745_v37  ;;  %v4838_v37 = vld [vmem:[#allocation15 + $0x100] ss:$8 sps:$4 sm:$0xff]  }
 0x3be   :  { %3187 = vmatpush2.bf16.msra.mxu1 %v4742_v36  ;;  %3149 = vmatprep.subr.bf16.mxu0 %v4753_v40  ;;  %v4801_v36 = vld [vmem:[#allocation15 + $0xd4] ss:$8 sps:$4 sm:$0xff]  }
 0x3bf   :  { %3188 = vmatprep.subr.bf16.mxu1 %v4750_v38  ;;  %v4799_v38 = vld [vmem:[#allocation15 + $0xd0] ss:$8 sps:$4 sm:$0xff]   ;;  %v4843_v40 = vld [vmem:[#allocation15 + $0x1f4] ss:$8 sps:$4 sm:$0xff]  }
 0x3c1   :  { %3150 = vmatpush2.bf16.msra.mxu0 %v4751_v42  ;;  %v4841_v42 = vld [vmem:[#allocation15 + $0x1f0] ss:$8 sps:$4 sm:$0xff]  }
 0x3c2   :  { %3189 = vmatpush2.bf16.msra.mxu1 %v4748_v43  ;;  %3151 = vmatprep.subr.bf16.mxu0 %v4759_v47  ;;  %v4804_v43 = vld [vmem:[#allocation15 + $0xc4] ss:$8 sps:$4 sm:$0xff]  }
 0x3c3   :  { %3190 = vmatprep.subr.bf16.mxu1 %v4756_v44  ;;  %v4802_v44 = vld [vmem:[#allocation15 + $0xc0] ss:$8 sps:$4 sm:$0xff]   ;;  %v4846_v47 = vld [vmem:[#allocation15 + $0x1e4] ss:$8 sps:$4 sm:$0xff]  }
 0x3c5   :  { %3152 = vmatpush2.bf16.msra.mxu0 %v4757_v34  ;;  %v4844_v34 = vld [vmem:[#allocation15 + $0x1e0] ss:$8 sps:$4 sm:$0xff]  }
 0x3c6   :  { %3191 = vmatpush2.bf16.msra.mxu1 %v4754_v48  ;;  %3153 = vmatprep.subr.bf16.mxu0 %v4765_v49  ;;  %v4807_v48 = vld [vmem:[#allocation15 + $0xb4] ss:$8 sps:$4 sm:$0xff]  }
 0x3c7   :  { %3192 = vmatprep.subr.bf16.mxu1 %v4762_v45  ;;  %v4805_v45 = vld [vmem:[#allocation15 + $0xb0] ss:$8 sps:$4 sm:$0xff]   ;;  %v4849_v49 = vld [vmem:[#allocation15 + $0x1d4] ss:$8 sps:$4 sm:$0xff]  }
 0x3c9   :  { %3154 = vmatpush2.bf16.msra.mxu0 %v4763_v55  ;;  %v4847_v55 = vld [vmem:[#allocation15 + $0x1d0] ss:$8 sps:$4 sm:$0xff]  }
 0x3ca   :  { %3193 = vmatpush2.bf16.msra.mxu1 %v4760_v52  ;;  %3609 = vmatprep.subr.bf16.mxu0 %v4771_v59  ;;  %v4810_v52 = vld [vmem:[#allocation15 + $0xa4] ss:$8 sps:$4 sm:$0xff]  }
 0x3cb   :  { %3194 = vmatprep.subr.bf16.mxu1 %v4768_v56  ;;  %v4808_v56 = vld [vmem:[#allocation15 + $0xa0] ss:$8 sps:$4 sm:$0xff]   ;;  %v4852_v59 = vld [vmem:[#allocation15 + $0x1c4] ss:$8 sps:$4 sm:$0xff]  }
 0x3cc   :  { %v5347_v0 = vpop.f32.mrf.mxu0  ;;  %3156 = vmatmul.mubr.bf16.vlgmr.msra.gmra.mxu0 %v5333_v35 }
 0x3cd   :  { %3610 = vmatpush1.bf16.msra.mxu0 %v4769_v61  ;;  %v5360_v61 = vld [vmem:[%s5395_s8] sm:$0xf] }
 0x3ce   :  { %3195 = vmatpush2.bf16.msra.mxu1 %v4766_v60  ;;  %v5350_v33 = vpop.f32.mrf.mxu0  ;;  %3611 = vmatprep.subr.bf16.mxu0 %v4774_v63  ;;  %v4813_v60 = vld [vmem:[#allocation15 + $0x94] ss:$8 sps:$4 sm:$0xff]   ;;  %v4850_v63 = vld [vmem:[#allocation15 + $0x1c0] ss:$8 sps:$4 sm:$0xff]  }
 0x3cf   :  { %3650 = vmatprep.subr.bf16.mxu1 %v4819_v7 }
 0x3d0   :  { %v2915_v3 = vpop.f32.mrf.mxu0 }
 0x3d1   :  { %3197 = vmatmul.mubr.bf16.vlgmr.msra.gmra.mxu1 %v5339_v39  ;;  %v5353_v1 = vpop.f32.mrf.mxu1  ;;  %3612 = vmatpush1.bf16.msra.mxu0 %v4772_v62  ;;  %v4820_v39 = vld [vmem:[#allocation15 + $0x160] ss:$8 sps:$4 sm:$0xff]   ;;  %v4811_v62 = vld [vmem:[#allocation15 + $0x90] ss:$8 sps:$4 sm:$0xff]   ;;  %v1580_v3 = vrot.slane %v5360_v61, %v5245_v50 }
 0x3d2   :  { %v2916_v57 = vpop.f32.mrf.mxu0  ;;  %3613 = vmatprep.subr.bf16.mxu0 %v4777_v53  ;;  %3651 = vmatpush1.bf16.msra.mxu1 %v4817_v6  ;;  %v4855_v53 = vld [vmem:[#allocation15 + $0x1b4] ss:$8 sps:$4 sm:$0xff]  }
 0x3d3   :  { %v5355_v58 = vpop.f32.mrf.mxu1  ;;  %3652 = vmatprep.subr.bf16.mxu1 %v4822_v9  ;;  %v4816_v57 = vld [vmem:[#allocation15 + $0x84] ss:$8 sps:$4 sm:$0xff]  }
 0x3d5   :  { %v2956_v46 = vpop.f32.mrf.mxu1  ;;  %3614 = vmatpush1.bf16.msra.mxu0 %v4775_v4  ;;  %v1584_v4 = vrot.slane %v5360_v61, %v5248_v51 }
 0x3d6   :  { %3615 = vmatprep.subr.bf16.mxu0 %v4780_v2  ;;  %3653 = vmatpush1.bf16.msra.mxu1 %v4820_v39  ;;  %v4853_v2 = vld [vmem:[#allocation15 + $0x1b0] ss:$8 sps:$4 sm:$0xff]   ;;  %v4814_v46 = vld [vmem:[#allocation15 + $0x80] ss:$8 sps:$4 sm:$0xff]  }
 0x3d7   :  { %v2957_v35 = vpop.f32.mrf.mxu1  ;;  %3654 = vmatprep.subr.bf16.mxu1 %v4825_v11 }
 0x3d8   :  { %v2912_v35 = vadd.f32 %v5347_v0, %v1580_v3  ;;  %v4861_v0 = vld [vmem:[#allocation15 + $0x194] ss:$8 sps:$4 sm:$0xff]  }
 0x3d9   :  { %3616 = vmatpush1.bf16.msra.mxu0 %v4778_v5  ;;  %v2914_v5 = vadd.f32 %v5350_v33, %v1584_v4 }
 0x3da   :  { %3617 = vmatprep.subr.bf16.mxu0 %v4783_v8  ;;  %3655 = vmatpush1.bf16.msra.mxu1 %v4823_v13  ;;  %v2953_v6 = vadd.f32 %v5353_v1, %v2912_v35  ;;  %v4858_v8 = vld [vmem:[#allocation15 + $0x1a4] ss:$8 sps:$4 sm:$0xff]  }
 0x3db   :  { %3656 = vmatprep.subr.bf16.mxu1 %v4828_v15  ;;  %v2955_v9 = vadd.f32 %v5355_v58, %v2914_v5 }
 0x3dd   :  { %3618 = vmatpush1.bf16.msra.mxu0 %v4781_v10  ;;  %v4856_v10 = vld [vmem:[#allocation15 + $0x1a0] ss:$8 sps:$4 sm:$0xff]  }
 0x3de   :  { %3619 = vmatprep.subr.bf16.mxu0 %v4786_v12  ;;  %3657 = vmatpush1.bf16.msra.mxu1 %v4826_v17 }
 0x3df   :  { %3658 = vmatprep.subr.bf16.mxu1 %v4831_v19 }
 0x3e1   :  { %3620 = vmatpush1.bf16.msra.mxu0 %v4784_v14 }
 0x3e2   :  { %3621 = vmatprep.subr.bf16.mxu0 %v4789_v16  ;;  %3659 = vmatpush1.bf16.msra.mxu1 %v4829_v21  ;;  %v4859_v16 = vld [vmem:[#allocation15 + $0x190] ss:$8 sps:$4 sm:$0xff]   ;;  %v4862_v21 = vld [vmem:[#allocation15 + $0x180] ss:$8 sps:$4 sm:$0xff]  }
 0x3e3   :  { %3660 = vmatprep.subr.bf16.mxu1 %v4834_v23 }
 0x3e5   :  { %3622 = vmatpush1.bf16.msra.mxu0 %v4787_v18 }
 0x3e6   :  { %3623 = vmatprep.subr.bf16.mxu0 %v4792_v20  ;;  %3661 = vmatpush1.bf16.msra.mxu1 %v4832_v25  ;;  %v4864_v20 = vld [vmem:[#allocation15 + $0x184] ss:$8 sps:$4 sm:$0xff]  }
 0x3e7   :  { %3662 = vmatprep.subr.bf16.mxu1 %v4837_v27 }
 0x3e9   :  { %3624 = vmatpush1.bf16.msra.mxu0 %v4790_v22 }
 0x3ea   :  { %3625 = vmatprep.subr.bf16.mxu0 %v4795_v24  ;;  %3663 = vmatpush1.bf16.msra.mxu1 %v4835_v29 }
 0x3eb   :  { %3664 = vmatprep.subr.bf16.mxu1 %v4840_v32 }
 0x3ed   :  { %3626 = vmatpush2.bf16.msra.mxu0 %v4793_v26 }
 0x3ee   :  { %3627 = vmatprep.subr.bf16.mxu0 %v4798_v28  ;;  %3665 = vmatpush1.bf16.msra.mxu1 %v4838_v37  ;;  %v4865_v37 = vld [vmem:[#allocation17 + $0x78] sm:$0xff]  }
 0x3ef   :  { %3666 = vmatprep.subr.bf16.mxu1 %v4843_v40  ;;  %v4867_v40 = vld [vmem:[#allocation17 + $0x70] sm:$0xff]  }
 0x3f1   :  { %3628 = vmatpush2.bf16.msra.mxu0 %v4796_v30 }
 0x3f2   :  { %3629 = vmatprep.subr.bf16.mxu0 %v4801_v36  ;;  %3667 = vmatpush2.bf16.msra.mxu1 %v4841_v42  ;;  %v4869_v42 = vld [vmem:[#allocation17 + $0x68] sm:$0xff]  }
 0x3f3   :  { %3668 = vmatprep.subr.bf16.mxu1 %v4846_v47  ;;  %v4871_v47 = vld [vmem:[#allocation17 + $0x60] sm:$0xff]  }
 0x3f5   :  { %3630 = vmatpush2.bf16.msra.mxu0 %v4799_v38  ;;  %v4866_v38 = vld [vmem:[#allocation17 + $0x38] sm:$0xff]  }
 0x3f6   :  { %3631 = vmatprep.subr.bf16.mxu0 %v4804_v43  ;;  %3669 = vmatpush2.bf16.msra.mxu1 %v4844_v34  ;;  %v4868_v43 = vld [vmem:[#allocation17 + $0x30] sm:$0xff]   ;;  %v4873_v34 = vld [vmem:[#allocation17 + $0x58] sm:$0xff]  }
 0x3f7   :  { %3670 = vmatprep.subr.bf16.mxu1 %v4849_v49  ;;  %v4875_v49 = vld [vmem:[#allocation17 + $0x50] sm:$0xff]  }
 0x3f9   :  { %3632 = vmatpush2.bf16.msra.mxu0 %v4802_v44  ;;  %v4870_v44 = vld [vmem:[#allocation17 + $0x28] sm:$0xff]  }
 0x3fa   :  { %3633 = vmatprep.subr.bf16.mxu0 %v4807_v48  ;;  %3671 = vmatpush2.bf16.msra.mxu1 %v4847_v55  ;;  %v4872_v48 = vld [vmem:[#allocation17 + $0x20] sm:$0xff]   ;;  %v1588_v55 = vrot.slane %v5360_v61, %v1207_v31 }
 0x3fb   :  { %3672 = vmatprep.subr.bf16.mxu1 %v4852_v59 }
 0x3fd   :  { %3634 = vmatpush2.bf16.msra.mxu0 %v4805_v45  ;;  %v4874_v45 = vld [vmem:[#allocation17 + $0x18] sm:$0xff]  }
 0x3fe   :  { %3635 = vmatprep.subr.bf16.mxu0 %v4810_v52  ;;  %3673 = vmatpush2.bf16.msra.mxu1 %v4850_v63  ;;  %v4876_v52 = vld [vmem:[#allocation17 + $0x10] sm:$0xff]  }
 0x3ff   :  { %3674 = vmatprep.subr.bf16.mxu1 %v4855_v53 }
 0x401   :  { %3636 = vmatpush2.bf16.msra.mxu0 %v4808_v56  ;;  %v1592_v56 = vrot.slane %v5360_v61, %v1211_v54 }
 0x402   :  { %3637 = vmatprep.subr.bf16.mxu0 %v4813_v60  ;;  %3675 = vmatpush2.bf16.msra.mxu1 %v4853_v2 }
 0x403   :  { %3676 = vmatprep.subr.bf16.mxu1 %v4858_v8 }
 0x405   :  { %3638 = vmatpush2.bf16.msra.mxu0 %v4811_v62 }
 0x406   :  { %3639 = vmatprep.subr.bf16.mxu0 %v4816_v57  ;;  %3677 = vmatpush2.bf16.msra.mxu1 %v4856_v10  ;;  %v4877_v10 = vld [vmem:[#allocation17 + $0x48] sm:$0xff]  }
 0x407   :  { %3678 = vmatprep.subr.bf16.mxu1 %v4861_v0  ;;  %v4880_v0 = vld [vmem:[#allocation17] sm:$0xff]  }
 0x409   :  { %3640 = vmatpush2.bf16.msra.mxu0 %v4814_v46 }
 0x40a   :  { %3679 = vmatpush2.bf16.msra.mxu1 %v4859_v16  ;;  %4315 = vmatprep.subr.bf16.mxu0 %v4865_v37  ;;  %v3277_v16 = vld [vmem:[%s5397_s10] sm:$0x3] }
 0x40b   :  { %3680 = vmatprep.subr.bf16.mxu1 %v4864_v20 }
 0x40c   :  { %v2993_v7 = vpop.f32.mrf.mxu0 }
 0x40d   :  { %v2994_v39 = vadd.f32 %v2993_v7, %v2953_v6 }
 0x40e   :  { %v2995_v11 = vpop.f32.mrf.mxu0  ;;  %3681 = vmatpush2.bf16.msra.mxu1 %v4862_v21 }
 0x40f   :  { %v2996_v12 = vadd.f32 %v2995_v11, %v2955_v9  ;;  %v4878_v11 = vld [vmem:[#allocation17 + $0x8] sm:$0xff]  }
 0x410   :  { %v2997_v14 = vpop.f32.mrf.mxu0 }
 0x411   :  { %v3034_v13 = vpop.f32.mrf.mxu1  ;;  %v4879_v14 = vld [vmem:[#allocation17 + $0x40] sm:$0xff]  }
 0x412   :  { %v3035_v15 = vadd.f32 %v3034_v13, %v2994_v39  ;;  %v2998_v17 = vpop.f32.mrf.mxu0 }
 0x413   :  { %v3036_v33 = vpop.f32.mrf.mxu1  ;;  %v3286_v17 = vrot.slane %v3277_v16, %v5248_v51 }
 0x414   :  { %v3037_v18 = vadd.f32 %v3036_v33, %v2996_v12  ;;  %v3205_v1 = vmax.f32 %v3035_v15, 0.0  ;;  %v3282_v33 = vrot.slane %v3277_v16, %v5245_v50  ;;  %v4288_v50 = vld [vmem:[%s5399_s12] ss:$0 sm:$0xff] }
 0x415   :  { %v3038_v19 = vpop.f32.mrf.mxu1 }
 0x416   :  { %v3206_v58 = vmax.f32 %v3037_v18, 0.0  ;;  %v3273_v24 = vpack.c.bf16 %v3205_v1, %v3205_v1 }
 0x417   :  { %v3039_v22 = vpop.f32.mrf.mxu1 }
 0x418   :  { %v3274_v23 = vpack.c.bf16 %v3206_v58, %v3206_v58 }
 0x41a   :  { %3641 = vmatprep.mubr.bf16.mxu0 %v3274_v23 }
 0x41b   :  { %3642 = vmatmul.mubr.bf16.vlgmr.msra.gmra.mxu0 %v3273_v24 }
 0x41c   :  { %4316 = vmatpush3.bf16.msra.mxu0 %v4866_v38 }
 0x41d   :  { %4317 = vmatprep.subr.bf16.mxu0 %v4867_v40 }
 0x420   :  { %4318 = vmatpush3.bf16.msra.mxu0 %v4868_v43 }
 0x421   :  { %4319 = vmatprep.subr.bf16.mxu0 %v4869_v42 }
 0x424   :  { %4320 = vmatpush3.bf16.msra.mxu0 %v4870_v44 }
 0x425   :  { %4321 = vmatprep.subr.bf16.mxu0 %v4871_v47 }
 0x428   :  { %4322 = vmatpush3.bf16.msra.mxu0 %v4872_v48 }
 0x429   :  { %4323 = vmatprep.subr.bf16.mxu0 %v4873_v34 }
 0x42c   :  { %4324 = vmatpush3.bf16.msra.mxu0 %v4874_v45 }
 0x42d   :  { %4325 = vmatprep.subr.bf16.mxu0 %v4875_v49 }
 0x430   :  { %4326 = vmatpush3.bf16.msra.mxu0 %v4876_v52 }
 0x431   :  { %4327 = vmatprep.subr.bf16.mxu0 %v4877_v10 }
 0x434   :  { %4328 = vmatpush3.bf16.msra.mxu0 %v4878_v11 }
 0x435   :  { %4329 = vmatprep.subr.bf16.mxu0 %v4879_v14 }
 0x438   :  { %4330 = vmatpush3.bf16.msra.mxu0 %v4880_v0 }
 0x44c   :  { %v3075_v25 = vpop.f32.mrf.mxu0 }
 0x44d   :  { %v3076_v59 = vadd.f32 %v3075_v25, %v1588_v55 }
 0x44e   :  { %v3077_v26 = vpop.f32.mrf.mxu0 }
 0x44f   :  { %v3078_v60 = vadd.f32 %v3077_v26, %v1592_v56 }
 0x450   :  { %v3079_v28 = vpop.f32.mrf.mxu0 }
 0x451   :  { %v3116_v27 = vpop.f32.mrf.mxu1 }
 0x452   :  { %v3080_v30 = vpop.f32.mrf.mxu0  ;;  %v3117_v63 = vadd.f32 %v3116_v27, %v3076_v59 }
 0x453   :  { %v3118_v29 = vpop.f32.mrf.mxu1 }
 0x454   :  { %v3119_v53 = vadd.f32 %v3118_v29, %v3078_v60 }
 0x455   :  { %v3120_v32 = vpop.f32.mrf.mxu1 }
 0x457   :  { %v3121_v36 = vpop.f32.mrf.mxu1 }
 0x48c   :  { %v3157_v62 = vpop.f32.mrf.mxu0 }
 0x48d   :  { %v3158_v3 = vadd.f32 %v3157_v62, %v3117_v63 }
 0x48e   :  { %v3159_v57 = vpop.f32.mrf.mxu0 }
 0x48f   :  { %v3160_v4 = vadd.f32 %v3159_v57, %v3119_v53 }
 0x490   :  { %v3161_v35 = vpop.f32.mrf.mxu0 }
 0x491   :  { %v3198_v2 = vpop.f32.mrf.mxu1 }
 0x492   :  { %v3199_v46 = vadd.f32 %v3198_v2, %v3158_v3  ;;  %v3162_v7 = vpop.f32.mrf.mxu0 }
 0x493   :  { %v3200_v5 = vpop.f32.mrf.mxu1 }
 0x494   :  { %v3201_v6 = vadd.f32 %v3200_v5, %v3160_v4  ;;  %v3207_v8 = vmax.f32 %v3199_v46, 0.0 }
 0x495   :  { %v3202_v31 = vpop.f32.mrf.mxu1 }
 0x496   :  { %v3208_v9 = vmax.f32 %v3201_v6, 0.0  ;;  %v3275_v54 = vpack.c.bf16 %v3207_v8, %v3207_v8 }
 0x497   :  { %v3203_v41 = vpop.f32.mrf.mxu1 }
 0x498   :  { %v3276_v39 = vpack.c.bf16 %v3208_v9, %v3208_v9 }
 0x49a   :  { %3682 = vmatprep.mubr.bf16.mxu1 %v3276_v39 }
 0x49b   :  { %3683 = vmatmul.mubr.bf16.vlgmr.msra.gmra.mxu1 %v3275_v54 }
 0x4db   :  { %v3643_v61 = vpop.f32.mrf.mxu0 }
 0x4dc   :  { %v3644_v18 = vadd.f32 %v3643_v61, %v3282_v33 }
 0x4dd   :  { %v3645_v12 = vpop.f32.mrf.mxu0 }
 0x4de   :  { %v3646_v19 = vadd.f32 %v3645_v12, %v3286_v17 }
 0x4df   :  { %v3647_v13 = vpop.f32.mrf.mxu0 }
 0x4e1   :  { %v3648_v15 = vpop.f32.mrf.mxu0 }
 0x55b   :  { %v3684_v1 = vpop.f32.mrf.mxu1 }
 0x55c   :  { %v3685_v20 = vadd.f32 %v3684_v1, %v3644_v18 }
 0x55d   :  { %v3686_v58 = vpop.f32.mrf.mxu1 }
 0x55e   :  { %v3687_v21 = vadd.f32 %v3686_v58, %v3646_v19  ;;  %v3691_v22 = vmax.f32 %v3685_v20, 0.0 }
 0x55f   :  { %v3688_v23 = vpop.f32.mrf.mxu1 }
 0x560   :  { %v3692_v24 = vmax.f32 %v3687_v21, 0.0  ;;  %v3725_v27 = vpack.c.bf16 %v3691_v22, %v3691_v22 }
 0x561   :  { %v3689_v25 = vpop.f32.mrf.mxu1 }
 0x562   :  { %v3726_v26 = vpack.c.bf16 %v3692_v24, %v3692_v24 }
 0x564   :  { %3862 = vmatprep.mubr.bf16.mxu0 %v3726_v26 }
 0x565   :  { %3863 = vmatmul.mubr.bf16.vlgmr.msra.gmra.mxu0 %v3725_v27 }
 0x625   :  { %v4331_v28 = vpop.f32.mrf.mxu0 }
 0x627   :  { %v4332_v51 = vpop.f32.mrf.mxu0 }
 0x628   :  { %v4333_v29 = vadd.f32 %v4332_v51, %v4331_v28 }
 0x629   :  { %v4334_v30 = vpop.f32.mrf.mxu0 }
 0x62a   :  { %v3865_v32 = vadd.f32 %v4333_v29, %v4288_v50 }
 0x62b   :  { %v4335_v36 = vpop.f32.mrf.mxu0 }
 0x62c   :  { %3870 = vst [vmem:[#allocation18] sm:$0x3] %v3865_v32 }
 0x62d   :  { %5072 = shalt.err (!%p5069_p7)
}
 0x62e   :  { %3880 = dma.vmem_to_hbm [thread:$0]  %s3878_s23, 32, %s5400_s13, [#allocation5]  }
 0x62f   :  { %5091 = dma.done.wait [#allocation5], 32  }
 0x630   :  { %5092 = vsyncadd [#allocation5], 4294967264 }
 0x631   :  { %3884 = vsyncpa [#allocation4], 1 }
 0x632   :  { %3885 = vsyncpa [#allocation7], 1 }
 0x633   :  { %3886 = vsyncpa [#allocation10], 1 }
 0x634   :  { %3887 = vsyncpa [#allocation13], 1 }
 0x635   :  { %3888 = vsyncpa [#allocation16], 1 }
 0x636   :  { %3889 = vsyncpa [#allocation5], 1 }

// kernel: tpu_custom_call.1
= control target key start
LH: loop header
LB: loop body
LE: loop exit
PB: predicated region body
PF: predicated region fallthrough
CT: control target
= control target key end

     0   :  { %18 = vsyncpa [#allocation4], 0  ;;  %s5387_s0 = inlined_call_operand.hbm [shape: bf16[2,16,32], index: 0, kind: input, shape index: {}]   ;;  %s5388_s1 = inlined_call_operand.hbm [shape: bf16[32,64], index: 1, kind: input, shape index: {}]   ;;  %s5389_s2 = inlined_call_operand.hbm [shape: f32[1,64], index: 2, kind: input, shape index: {}]   ;;  %s5390_s3 = inlined_call_operand.hbm [shape: bf16[64,128], index: 3, kind: input, shape index: {}]   ;;  %s5391_s4 = inlined_call_operand.hbm [shape: f32[1,128], index: 4, kind: input, shape index: {}]   ;;  %s5392_s5 = inlined_call_operand.hbm [shape: bf16[128,1024], index: 5, kind: input, shape index: {}]   ;;  %s5393_s6 = inlined_call_operand.vmem [shape: f32[1,1024], index: 6, kind: input, shape index: {}]   ;;  %s5394_s7 = inlined_call_operand.hbm [shape: bf16[1024,512], index: 7, kind: input, shape index: {}]   ;;  %s5395_s8 = inlined_call_operand.vmem [shape: f32[1,512], index: 8, kind: input, shape index: {}]   ;;  %s5396_s9 = inlined_call_operand.hbm [shape: bf16[512,256], index: 9, kind: input, shape index: {}]   ;;  %s5397_s10 = inlined_call_operand.vmem [shape: f32[1,256], index: 10, kind: input, shape index: {}]   ;;  %s5398_s11 = inlined_call_operand.hbm [shape: bf16[256,128], index: 11, kind: input, shape index: {}]   ;;  %s5399_s12 = inlined_call_operand.vmem [shape: f32[1,128], index: 12, kind: input, shape index: {}]   ;;  %s5400_s13 = inlined_call_operand.hbm [shape: f32[2,128], index: 13, kind: output, shape index: {}]  }
   0x1   :  { %19 = vsyncpa [#allocation7], 0 }
   0x2   :  { %20 = vsyncpa [#allocation10], 0 }
   0x3   :  { %21 = vsyncpa [#allocation13], 0 }
   0x4   :  { %22 = vsyncpa [#allocation16], 0 }
   0x5   :  { %23 = vsyncpa [#allocation5], 0  ;;  %s5093_s25 = smov [#allocation6]   ;;  %s5094_s27 = smov [#allocation9]  }
   0x6   :  { %s41_s26 = sshll.u32 %s5093_s25, 4  ;;  %s63_s28 = sshll.u32 %s5094_s27, 4  ;;  %s42_s26 = int_to_ptr.vmem [resolvable:$true] %s41_s26  ;;  %s64_s28 = int_to_ptr.vmem [resolvable:$true] %s63_s28 }
   0x7   :  { %s4889_s29 = scalar_lea.vmem %s42_s26, 256  ;;  %p4894_p1 = scmp.lt.s32.totalorder %s42_s26, %s42_s26 }
   0x8   :  { %p4890_p0 = scmp.ne.s32.totalorder %s42_s26, %s4889_s29  ;;  %p4895_p2 = scmp.lt.s32.totalorder %s4889_s29, %s4889_s29 }
   0xa   :  { %p4896_p3 = por %p4895_p2, %p4894_p1 }
   0xc   :  { %p4897_p4 = pnand %p4896_p3, %p4890_p0 }
   0xe   :  { %4900 = shalt.err (!%p4897_p4)
}
   0xf   :  { %s5095_s30 = smov 64   ;;  %s5096_s14 = smov 4  }
  0x10   :  { %47 = dma.hbm_to_vmem [thread:$0]  %s5388_s1, 256, %s42_s26, [#allocation7], %s5095_s30, %s5095_s30, %s5096_s14  }
  0x11   :  { %s4909_s17 = scalar_lea.vmem %s64_s28, 512  ;;  %p4914_p6 = scmp.lt.s32.totalorder %s64_s28, %s64_s28 }
  0x12   :  { %p4910_p5 = scmp.ne.s32.totalorder %s64_s28, %s4909_s17  ;;  %p4915_p7 = scmp.lt.s32.totalorder %s4909_s17, %s4909_s17 }
  0x14   :  { %p4916_p8 = por %p4915_p7, %p4914_p6 }
  0x16   :  { %p4917_p9 = pnand %p4916_p8, %p4910_p5 }
  0x18   :  { %4920 = shalt.err (!%p4917_p9)
}
  0x19   :  { %69 = dma.hbm_to_vmem [thread:$0]  %s5390_s3, 512, %s64_s28, [#allocation10], %s5095_s30, %s5095_s30, %s5096_s14  }
  0x1a   :  { %s5097_s20 = smov [#allocation12]  }
  0x1b   :  { %s85_s21 = sshll.u32 %s5097_s20, 4  ;;  %s86_s21 = int_to_ptr.vmem [resolvable:$true] %s85_s21 }
  0x1c   :  { %s4929_s22 = scalar_lea.vmem %s86_s21, 8192  ;;  %p4934_p11 = scmp.lt.s32.totalorder %s86_s21, %s86_s21 }
  0x1d   :  { %p4930_p10 = scmp.ne.s32.totalorder %s86_s21, %s4929_s22  ;;  %p4935_p12 = scmp.lt.s32.totalorder %s4929_s22, %s4929_s22 }
  0x1f   :  { %p4936_p13 = por %p4935_p12, %p4934_p11 }
  0x21   :  { %p4937_p0 = pnand %p4936_p13, %p4930_p10 }
  0x23   :  { %4940 = shalt.err (!%p4937_p0)
}
  0x24   :  { %s5098_s1 = smov 512   ;;  %s5099_s23 = smov 32  }
  0x25   :  { %91 = dma.hbm_to_vmem [thread:$0]  %s5392_s5, 8192, %s86_s21, [#allocation13], %s5098_s1, %s5098_s1, %s5099_s23  }
  0x26   :  { %s5100_s26 = smov [#allocation15]  }
  0x27   :  { %s113_s27 = sshll.u32 %s5100_s26, 4  ;;  %s114_s27 = int_to_ptr.vmem [resolvable:$true] %s113_s27 }
  0x28   :  { %s4949_s3 = scalar_lea.vmem %s114_s27, 8192  ;;  %p4954_p2 = scmp.lt.s32.totalorder %s114_s27, %s114_s27 }
  0x29   :  { %p4950_p1 = scmp.ne.s32.totalorder %s114_s27, %s4949_s3  ;;  %p4955_p3 = scmp.lt.s32.totalorder %s4949_s3, %s4949_s3 }
  0x2b   :  { %p4956_p4 = por %p4955_p3, %p4954_p2 }
  0x2d   :  { %p4957_p5 = pnand %p4956_p4, %p4950_p1 }
  0x2f   :  { %4960 = shalt.err (!%p4957_p5)
}
  0x30   :  { %s5101_s28 = smov 128   ;;  %s5102_s29 = smov 8  }
  0x31   :  { %119 = dma.hbm_to_vmem [thread:$0]  %s5396_s9, 8192, %s114_s27, [#allocation16], %s5101_s28, %s5101_s28, %s5102_s29  }
  0x32   :  { %s5103_s17 = smov [#allocation3]   ;;  %s5104_s19 = smov [#allocation8]  }
  0x33   :  { %s29_s18 = sshll.u32 %s5103_s17, 4  ;;  %s54_s5 = sshll.u32 %s5104_s19, 4  ;;  %s30_s18 = int_to_ptr.vmem [resolvable:$true] %s29_s18  ;;  %s55_s5 = int_to_ptr.vmem [resolvable:$true] %s54_s5 }
  0x34   :  { %s4969_s20 = scalar_lea.vmem %s30_s18, 256  ;;  %p4974_p7 = scmp.lt.s32.totalorder %s30_s18, %s30_s18 }
  0x35   :  { %p4970_p6 = scmp.ne.s32.totalorder %s30_s18, %s4969_s20  ;;  %p4975_p8 = scmp.lt.s32.totalorder %s4969_s20, %s4969_s20 }
  0x37   :  { %p4976_p9 = por %p4975_p8, %p4974_p7 }
  0x39   :  { %p4977_p10 = pnand %p4976_p9, %p4970_p6 }
  0x3b   :  { %4980 = shalt.err (!%p4977_p10)
}
  0x3c   :  { %35 = dma.hbm_to_vmem [thread:$0]  %s5387_s0, 256, %s30_s18, [#allocation4], %s5095_s30, %s5095_s30, %s5096_s14  }
  0x3d   :  { %s4989_s9 = scalar_lea.vmem %s55_s5, 16  ;;  %s4993_s1 = scalar_lea.vmem %s55_s5, 32 }
  0x3e   :  { %p4990_p11 = scmp.ne.s32.totalorder %s55_s5, %s4989_s9  ;;  %p4994_p12 = scmp.lt.s32.totalorder %s55_s5, %s55_s5 }
  0x3f   :  { %p4995_p13 = scmp.lt.s32.totalorder %s4993_s1, %s4989_s9 }
  0x41   :  { %p4996_p0 = por %p4995_p13, %p4994_p12 }
  0x43   :  { %p4997_p1 = pnand %p4996_p0, %p4990_p11 }
  0x45   :  { %5000 = shalt.err (!%p4997_p1)
}
  0x46   :  { %57 = dma.hbm_to_vmem [thread:$0]  %s5389_s2, 16, %s55_s5, [#allocation7]  }
  0x47   :  { %s5105_s25 = smov [#allocation11]   ;;  %s5106_s27 = smov [#allocation14]  }
  0x48   :  { %s76_s26 = sshll.u32 %s5105_s25, 4  ;;  %s99_s3 = sshll.u32 %s5106_s27, 4  ;;  %s77_s26 = int_to_ptr.vmem [resolvable:$true] %s76_s26  ;;  %s100_s3 = int_to_ptr.vmem [resolvable:$true] %s99_s3 }
  0x49   :  { %s5009_s28 = scalar_lea.vmem %s77_s26, 16  ;;  %s5013_s0 = scalar_lea.vmem %s77_s26, 32 }
  0x4a   :  { %p5010_p2 = scmp.ne.s32.totalorder %s77_s26, %s5009_s28  ;;  %p5014_p3 = scmp.lt.s32.totalorder %s77_s26, %s77_s26 }
  0x4b   :  { %p5015_p4 = scmp.lt.s32.totalorder %s5013_s0, %s5009_s28 }
  0x4d   :  { %p5016_p5 = por %p5015_p4, %p5014_p3 }
  0x4f   :  { %p5017_p6 = pnand %p5016_p5, %p5010_p2 }
  0x51   :  { %5020 = shalt.err (!%p5017_p6)
}
  0x52   :  { %79 = dma.hbm_to_vmem [thread:$0]  %s5391_s4, 16, %s77_s26, [#allocation10]  }
  0x53   :  { %s5029_s16 = scalar_lea.vmem %s100_s3, 32768  ;;  %p5034_p8 = scmp.lt.s32.totalorder %s100_s3, %s100_s3 }
  0x54   :  { %p5030_p7 = scmp.ne.s32.totalorder %s100_s3, %s5029_s16  ;;  %p5035_p9 = scmp.lt.s32.totalorder %s5029_s16, %s5029_s16 }
  0x56   :  { %p5036_p10 = por %p5035_p9, %p5034_p8 }
  0x58   :  { %p5037_p11 = pnand %p5036_p10, %p5030_p7 }
  0x5a   :  { %5040 = shalt.err (!%p5037_p11)
}
  0x5b   :  { %s5107_s2 = smov 256   ;;  %s5108_s17 = smov 16  }
  0x5c   :  { %105 = dma.hbm_to_vmem [thread:$0]  %s5394_s7, 32768, %s100_s3, [#allocation13], %s5107_s2, %s5107_s2, %s5108_s17  }
  0x5d   :  { %s5109_s5 = smov [#allocation17]  }
  0x5e   :  { %s127_s20 = sshll.u32 %s5109_s5, 4  ;;  %s128_s20 = int_to_ptr.vmem [resolvable:$true] %s127_s20 }
  0x5f   :  { %s5049_s21 = scalar_lea.vmem %s128_s20, 2048  ;;  %p5054_p13 = scmp.lt.s32.totalorder %s128_s20, %s128_s20 }
  0x60   :  { %p5050_p12 = scmp.ne.s32.totalorder %s128_s20, %s5049_s21  ;;  %p5055_p0 = scmp.lt.s32.totalorder %s5049_s21, %s5049_s21 }
  0x62   :  { %p5056_p1 = por %p5055_p0, %p5054_p13 }
  0x64   :  { %p5057_p2 = pnand %p5056_p1, %p5050_p12 }
  0x66   :  { %5060 = shalt.err (!%p5057_p2)
}
  0x67   :  { %133 = dma.hbm_to_vmem [thread:$0]  %s5398_s11, 2048, %s128_s20, [#allocation16], %s5095_s30, %s5095_s30, %s5096_s14  }
  0x68   :  { %5081 = dma.done.wait [#allocation4], 256  }
  0x69   :  { %5082 = vsyncadd [#allocation4], 4294967040 }
  0x6a   :  { %5083 = dma.done.wait [#allocation7], 272  }
  0x6b   :  { %5084 = vsyncadd [#allocation7], 4294967024 }
  0x6c   :  { %5085 = dma.done.wait [#allocation10], 528  }
  0x6d   :  { %5086 = vsyncadd [#allocation10], 4294966768 }
  0x6e   :  { %5087 = dma.done.wait [#allocation13], 40960  }
  0x6f   :  { %5088 = vsyncadd [#allocation13], 4294926336 }
  0x70   :  { %5089 = dma.done.wait [#allocation16], 10240  }
  0x71   :  { %5090 = vsyncadd [#allocation16], 4294957056  ;;  %v4377_v0 = vld [vmem:[#allocation6 + $0x8] sm:$0xff]   ;;  %v4378_v1 = vld [vmem:[#allocation6] sm:$0xff]   ;;  %vm207_vm0 = vcmask 261120   ;;  %vm308_vm1 = vcmask 523264  }
  0x72   :  { %4337 = vmatprep.subr.bf16.mxu1 %v4377_v0  ;;  %v4379_v2 = vld [vmem:[#allocation3] sm:$0xff]   ;;  %v4380_v3 = vld [vmem:[#allocation3 + $0x8] sm:$0xff]   ;;  %v4382_v5 = vld [vmem:[#allocation9 + $0x10] sm:$0xff]   ;;  %vm1169_vm2 = vcmask 1041409   ;;  %vm1171_vm3 = vcmask 1043459   ;;  %vm1173_vm4 = vcmask 1045509  }
  0x73   :  { %4338 = vmatpush3.bf16.msra.mxu1 %v4377_v0  ;;  %4341 = vmatprep.mubr.msk.bf16.mxu1 %vm207_vm0, %v4379_v2  ;;  %v4381_v4 = vld [vmem:[#allocation9 + $0x18] sm:$0xff]   ;;  %v4383_v6 = vld [vmem:[#allocation9 + $0x8] sm:$0xff]   ;;  %v4384_v7 = vld [vmem:[#allocation9] sm:$0xff]   ;;  %vm1175_vm5 = vcmask 1047559   ;;  %s5112_s1 = smov [#allocation18]  }
  0x74   :  { %4339 = vmatprep.subr.bf16.mxu1 %v4378_v1  ;;  %v424_v8 = vld [vmem:[#allocation12 + $0x1c0] sm:$0xff]  ;;  %v425_v10 = vld [vmem:[#allocation12 + $0x1c8] sm:$0xff]  ;;  %v3890_v34 = vld [vmem:[#allocation8] ss:$0 sm:$0xff]  ;;  %s3877_s23 = sshll.u32 %s5112_s1, 4  ;;  %s3878_s23 = int_to_ptr.vmem [resolvable:$true] %s3877_s23 }
  0x75   :  { %v428_v9 = vld [vmem:[#allocation12 + $0x1e0] sm:$0xff]  ;;  %v429_v12 = vld [vmem:[#allocation12 + $0x1e8] sm:$0xff]  ;;  %s5061_s24 = scalar_lea.vmem %s3878_s23, 32  ;;  %p5066_p4 = scmp.lt.s32.totalorder %s3878_s23, %s3878_s23 }
  0x76   :  { %v3961_v11 = vcombine.high %v424_v8, %v428_v9  ;;  %v3960_v13 = vcombine.low %v424_v8, %v428_v9  ;;  %v416_v14 = vld [vmem:[#allocation12 + $0x180] sm:$0xff]  ;;  %v3962_v16 = vcombine.low %v425_v10, %v429_v12  ;;  %v3963_v17 = vcombine.high %v425_v10, %v429_v12  ;;  %v417_v44 = vld [vmem:[#allocation12 + $0x188] sm:$0xff]  ;;  %p5062_p3 = scmp.ne.s32.totalorder %s3878_s23, %s5061_s24  ;;  %p5067_p5 = scmp.lt.s32.totalorder %s5061_s24, %s5061_s24 }
  0x77   :  { %4340 = vmatpush3.bf16.msra.mxu1 %v4378_v1  ;;  %v420_v15 = vld [vmem:[#allocation12 + $0x1a0] sm:$0xff]  ;;  %v421_v45 = vld [vmem:[#allocation12 + $0x1a8] sm:$0xff] }
  0x78   :  { %4345 = vmatprep.subr.bf16.mxu1 %v4381_v4  ;;  %v3953_v18 = vcombine.high %v416_v14, %v420_v15  ;;  %754 = vmatprep.subr.bf16.mxu0 %v3961_v11  ;;  %v3952_v19 = vcombine.low %v416_v14, %v420_v15  ;;  %v408_v20 = vld [vmem:[#allocation12 + $0x140] sm:$0xff]  ;;  %v3955_v49 = vcombine.high %v417_v44, %v421_v45  ;;  %v409_v50 = vld [vmem:[#allocation12 + $0x148] sm:$0xff]  ;;  %p5068_p6 = por %p5067_p5, %p5066_p4 }
  0x79   :  { %755 = vmatpush1.bf16.msra.mxu0 %v3960_v13  ;;  %v412_v21 = vld [vmem:[#allocation12 + $0x160] sm:$0xff]  ;;  %v413_v51 = vld [vmem:[#allocation12 + $0x168] sm:$0xff]  ;;  %v3954_v52 = vcombine.low %v417_v44, %v421_v45 }
  0x7a   :  { %4342 = vmatmul.mubr.msk.bf16.vlgmr.msra.gmra.mxu1 %vm207_vm0, %v4380_v3  ;;  %756 = vmatprep.subr.bf16.mxu0 %v3953_v18  ;;  %v3945_v22 = vcombine.high %v408_v20, %v412_v21  ;;  %v3944_v23 = vcombine.low %v408_v20, %v412_v21  ;;  %v400_v24 = vld [vmem:[#allocation12 + $0x100] sm:$0xff]  ;;  %v3947_v53 = vcombine.high %v409_v50, %v413_v51  ;;  %v401_v54 = vld [vmem:[#allocation12 + $0x108] sm:$0xff]  ;;  %p5069_p7 = pnand %p5068_p6, %p5062_p3 }
  0x7b   :  { %4346 = vmatpush3.bf16.msra.mxu1 %v4381_v4  ;;  %v404_v25 = vld [vmem:[#allocation12 + $0x120] sm:$0xff]  ;;  %v405_v55 = vld [vmem:[#allocation12 + $0x128] sm:$0xff]  ;;  %v3946_v56 = vcombine.low %v409_v50, %v413_v51  ;;  %v414_v50 = vld [vmem:[#allocation12 + $0x170] sm:$0xff] }
  0x7c   :  { %4347 = vmatprep.subr.bf16.mxu1 %v4382_v5  ;;  %v3937_v26 = vcombine.high %v400_v24, %v404_v25  ;;  %v3936_v27 = vcombine.low %v400_v24, %v404_v25  ;;  %v392_v28 = vld [vmem:[#allocation12 + $0xc0] sm:$0xff]  ;;  %v3939_v57 = vcombine.high %v401_v54, %v405_v55  ;;  %v393_v58 = vld [vmem:[#allocation12 + $0xc8] sm:$0xff]  ;;  %v3938_v60 = vcombine.low %v401_v54, %v405_v55  ;;  %v430_v24 = vld [vmem:[#allocation12 + $0x1f0] sm:$0xff] }
  0x7d   :  { %757 = vmatpush1.bf16.msra.mxu0 %v3952_v19  ;;  %v396_v29 = vld [vmem:[#allocation12 + $0xe0] sm:$0xff]  ;;  %v397_v59 = vld [vmem:[#allocation12 + $0xe8] sm:$0xff]  ;;  %v427_v25 = vld [vmem:[#allocation12 + $0x1d8] sm:$0xff] }
  0x7e   :  { %758 = vmatprep.subr.bf16.mxu0 %v3945_v22  ;;  %v3929_v30 = vcombine.high %v392_v28, %v396_v29  ;;  %v3928_v31 = vcombine.low %v392_v28, %v396_v29  ;;  %v3931_v61 = vcombine.high %v393_v58, %v397_v59  ;;  %v3930_v62 = vcombine.low %v393_v58, %v397_v59  ;;  %v384_v63 = vld [vmem:[#allocation12 + $0x80] sm:$0xff]  ;;  %v385_v1 = vld [vmem:[#allocation12 + $0x88] sm:$0xff]  ;;  %v411_v51 = vld [vmem:[#allocation12 + $0x158] sm:$0xff] }
  0x7f   :  { %4348 = vmatpush3.bf16.msra.mxu1 %v4382_v5  ;;  %v388_v0 = vld [vmem:[#allocation12 + $0xa0] sm:$0xff]  ;;  %v389_v3 = vld [vmem:[#allocation12 + $0xa8] sm:$0xff]  ;;  %v402_v59 = vld [vmem:[#allocation12 + $0x110] sm:$0xff] }
  0x80   :  { %4349 = vmatprep.subr.bf16.mxu1 %v4383_v6  ;;  %v3921_v2 = vcombine.high %v384_v63, %v388_v0  ;;  %v3922_v4 = vcombine.low %v385_v1, %v389_v3  ;;  %v3923_v5 = vcombine.high %v385_v1, %v389_v3  ;;  %v380_v8 = vld [vmem:[#allocation12 + $0x60] sm:$0xff]  ;;  %v377_v9 = vld [vmem:[#allocation12 + $0x48] sm:$0xff] }
  0x81   :  { %759 = vmatpush1.bf16.msra.mxu0 %v3944_v23  ;;  %v381_v11 = vld [vmem:[#allocation12 + $0x68] sm:$0xff]  ;;  %v368_v15 = vld [vmem:[#allocation12] sm:$0xff]  ;;  %v426_v23 = vld [vmem:[#allocation12 + $0x1d0] sm:$0xff] }
  0x82   :  { %760 = vmatprep.subr.bf16.mxu0 %v3937_v26  ;;  %v3914_v12 = vcombine.low %v377_v9, %v381_v11  ;;  %v3915_v13 = vcombine.high %v377_v9, %v381_v11  ;;  %v373_v19 = vld [vmem:[#allocation12 + $0x28] sm:$0xff]  ;;  %v3965_v26 = vcombine.high %v426_v23, %v430_v24  ;;  %v3964_v28 = vcombine.low %v426_v23, %v430_v24  ;;  %v379_v23 = vld [vmem:[#allocation12 + $0x58] sm:$0xff] }
  0x83   :  { %4350 = vmatpush3.bf16.msra.mxu1 %v4383_v6  ;;  %v3920_v6 = vcombine.low %v384_v63, %v388_v0  ;;  %v383_v24 = vld [vmem:[#allocation12 + $0x78] sm:$0xff] }
  0x84   :  { %4351 = vmatprep.subr.bf16.mxu1 %v4384_v7 }
  0x85   :  { %761 = vmatpush1.bf16.msra.mxu0 %v3936_v27  ;;  %v431_v27 = vld [vmem:[#allocation12 + $0x1f8] sm:$0xff] }
  0x86   :  { %762 = vmatprep.subr.bf16.mxu0 %v3929_v30  ;;  %v3966_v29 = vcombine.low %v427_v25, %v431_v27  ;;  %v3967_v30 = vcombine.high %v427_v25, %v431_v27 }
  0x87   :  { %4352 = vmatpush3.bf16.msra.mxu1 %v4384_v7  ;;  %v376_v7 = vld [vmem:[#allocation12 + $0x40] sm:$0xff] }
  0x88   :  { %807 = vmatprep.subr.bf16.mxu1 %v3963_v17  ;;  %v3913_v10 = vcombine.high %v376_v7, %v380_v8  ;;  %v3912_v14 = vcombine.low %v376_v7, %v380_v8  ;;  %v369_v17 = vld [vmem:[#allocation12 + $0x8] sm:$0xff]  ;;  %v395_v7 = vld [vmem:[#allocation12 + $0xd8] sm:$0xff] }
  0x89   :  { %763 = vmatpush1.bf16.msra.mxu0 %v3928_v31  ;;  %v3906_v20 = vcombine.low %v369_v17, %v373_v19  ;;  %v3907_v21 = vcombine.high %v369_v17, %v373_v19  ;;  %v5110_v31 = vmov 0   ;;  %v399_v8 = vld [vmem:[#allocation12 + $0xf8] sm:$0xff] }
  0x8a   :  { %764 = vmatprep.subr.bf16.mxu0 %v3921_v2  ;;  %786 = vmatprep.mubr.bf16.mxu0 %v5110_v31 }
  0x8d   :  { %765 = vmatpush1.bf16.msra.mxu0 %v3920_v6  ;;  %v398_v6 = vld [vmem:[#allocation12 + $0xf0] sm:$0xff] }
  0x8e   :  { %766 = vmatprep.subr.bf16.mxu0 %v3913_v10 }
  0x91   :  { %767 = vmatpush1.bf16.msra.mxu0 %v3912_v14  ;;  %v390_v14 = vld [vmem:[#allocation12 + $0xb0] sm:$0xff] }
 0x13a   :  { %v4343_v32 = vpop.f32.mrf.mxu1 }
 0x13b   :  { %v257_v38 = vadd.f32 %v4343_v32, %v3890_v34 }
 0x13c   :  { %v248_v33 = vpop.f32.mrf.mxu1 }
 0x13d   :  { %v249_v36 = vadd.f32 %v3890_v34, %v248_v33  ;;  %v265_v46 = vmax.f32 %v257_v38, 0.0 }
 0x13e   :  { %v4344_v35 = vpop.f32.mrf.mxu1 }
 0x13f   :  { %v260_v37 = vadd.f32 %v4344_v35, %v3890_v34  ;;  %v263_v42 = vmax.f32 %v249_v36, 0.0 }
 0x140   :  { %v251_v39 = vpop.f32.mrf.mxu1 }
 0x141   :  { %v252_v40 = vadd.f32 %v3890_v34, %v251_v39  ;;  %v266_v41 = vmax.f32 %v260_v37, 0.0  ;;  %v3897_v34 = vld [vmem:[#allocation11] ss:$0 sm:$0xff]  ;;  %v418_v39 = vld [vmem:[#allocation12 + $0x190] sm:$0xff] }
 0x143   :  { %v264_v43 = vmax.f32 %v252_v40, 0.0  ;;  %v276_v48 = vpack.c.bf16 %v266_v41, %v265_v46  ;;  %v422_v40 = vld [vmem:[#allocation12 + $0x1b0] sm:$0xff]  ;;  %v419_v41 = vld [vmem:[#allocation12 + $0x198] sm:$0xff] }
 0x144   :  { %v3956_v54 = vcombine.low %v418_v39, %v422_v40 }
 0x145   :  { %v275_v47 = vpack.c.bf16 %v264_v43, %v263_v42  ;;  %v423_v42 = vld [vmem:[#allocation12 + $0x1b8] sm:$0xff] }
 0x146   :  { %v3958_v55 = vcombine.low %v419_v41, %v423_v42 }
 0x147   :  { %4353 = vmatprep.mubr.msk.bf16.mxu1 %vm308_vm1, %v275_v47  ;;  %v3957_v47 = vcombine.high %v418_v39, %v422_v40  ;;  %v4387_v40 = vld [vmem:[#allocation14 + $0xe4] ss:$16 sps:$4 sm:$0xff]  }
 0x148   :  { %4354 = vmatmul.mubr.msk.bf16.vlgmr.msra.gmra.mxu1 %vm308_vm1, %v276_v48  ;;  %v3959_v48 = vcombine.high %v419_v41, %v423_v42  ;;  %v4390_v41 = vld [vmem:[#allocation14 + $0x2e4] ss:$16 sps:$4 sm:$0xff]   ;;  %v4385_v42 = vld [vmem:[#allocation14 + $0xe0] ss:$16 sps:$4 sm:$0xff]  }
 0x149   :  { %808 = vmatpush1.bf16.msra.mxu1 %v3962_v16  ;;  %v372_v16 = vld [vmem:[#allocation12 + $0x20] sm:$0xff]  ;;  %839 = vmatprep.mubr.bf16.mxu1 %v5110_v31 }
 0x14a   :  { %809 = vmatprep.subr.bf16.mxu1 %v3955_v49  ;;  %v3905_v18 = vcombine.high %v368_v15, %v372_v16  ;;  %v3904_v22 = vcombine.low %v368_v15, %v372_v16  ;;  %v410_v49 = vld [vmem:[#allocation12 + $0x150] sm:$0xff]  ;;  %v387_v15 = vld [vmem:[#allocation12 + $0x98] sm:$0xff] }
 0x14b   :  { %v3948_v0 = vcombine.low %v410_v49, %v414_v50  ;;  %v391_v16 = vld [vmem:[#allocation12 + $0xb8] sm:$0xff] }
 0x14c   :  { %768 = vmatprep.subr.bf16.mxu0 %v3905_v18  ;;  %v3934_v18 = vcombine.low %v395_v7, %v399_v8 }
 0x14d   :  { %810 = vmatpush1.bf16.msra.mxu1 %v3954_v52  ;;  %769 = vmatpush1.bf16.msra.mxu0 %v3904_v22  ;;  %v415_v52 = vld [vmem:[#allocation12 + $0x178] sm:$0xff]  ;;  %v382_v22 = vld [vmem:[#allocation12 + $0x70] sm:$0xff] }
 0x14e   :  { %811 = vmatprep.subr.bf16.mxu1 %v3947_v53  ;;  %860 = vmatprep.subr.bf16.mxu0 %v3965_v26  ;;  %v3951_v58 = vcombine.high %v411_v51, %v415_v52  ;;  %v3950_v1 = vcombine.low %v411_v51, %v415_v52  ;;  %v3926_v26 = vcombine.low %v387_v15, %v391_v16  ;;  %v4397_v51 = vld [vmem:[#allocation14 + $0xa0] ss:$16 sps:$4 sm:$0xff]  }
 0x14f   :  { %v4400_v52 = vld [vmem:[#allocation14 + $0x2a0] ss:$16 sps:$4 sm:$0xff]  }
 0x151   :  { %812 = vmatpush1.bf16.msra.mxu1 %v3946_v56 }
 0x152   :  { %813 = vmatprep.subr.bf16.mxu1 %v3939_v57  ;;  %v3949_v57 = vcombine.high %v410_v49, %v414_v50  ;;  %v4399_v49 = vld [vmem:[#allocation14 + $0xa4] ss:$16 sps:$4 sm:$0xff]  }
 0x153   :  { %v4402_v50 = vld [vmem:[#allocation14 + $0x2a4] ss:$16 sps:$4 sm:$0xff]  }
 0x155   :  { %814 = vmatpush1.bf16.msra.mxu1 %v3938_v60  ;;  %v406_v60 = vld [vmem:[#allocation12 + $0x130] sm:$0xff] }
 0x156   :  { %815 = vmatprep.subr.bf16.mxu1 %v3931_v61  ;;  %v403_v61 = vld [vmem:[#allocation12 + $0x118] sm:$0xff]  ;;  %v3941_v3 = vcombine.high %v402_v59, %v406_v60  ;;  %v3940_v9 = vcombine.low %v402_v59, %v406_v60  ;;  %v4417_v59 = vld [vmem:[#allocation14 + $0x44] ss:$16 sps:$4 sm:$0xff]   ;;  %v4415_v60 = vld [vmem:[#allocation14 + $0x40] ss:$16 sps:$4 sm:$0xff]  }
 0x159   :  { %816 = vmatpush1.bf16.msra.mxu1 %v3930_v62  ;;  %v407_v62 = vld [vmem:[#allocation12 + $0x138] sm:$0xff] }
 0x15a   :  { %817 = vmatprep.subr.bf16.mxu1 %v3923_v5  ;;  %v394_v5 = vld [vmem:[#allocation12 + $0xd0] sm:$0xff]  ;;  %v3942_v10 = vcombine.low %v403_v61, %v407_v62 }
 0x15b   :  { %v3933_v11 = vcombine.high %v394_v5, %v398_v6  ;;  %v3932_v17 = vcombine.low %v394_v5, %v398_v6  ;;  %v4432_v5 = vld [vmem:[#allocation14 + $0x204] ss:$16 sps:$4 sm:$0xff]   ;;  %v4430_v6 = vld [vmem:[#allocation14 + $0x200] ss:$16 sps:$4 sm:$0xff]  }
 0x15d   :  { %818 = vmatpush1.bf16.msra.mxu1 %v3922_v4  ;;  %v3943_v4 = vcombine.high %v403_v61, %v407_v62  ;;  %v4420_v61 = vld [vmem:[#allocation14 + $0x244] ss:$16 sps:$4 sm:$0xff]   ;;  %v4418_v62 = vld [vmem:[#allocation14 + $0x240] ss:$16 sps:$4 sm:$0xff]  }
 0x15e   :  { %819 = vmatprep.subr.bf16.mxu1 %v3915_v13  ;;  %v386_v13 = vld [vmem:[#allocation12 + $0x90] sm:$0xff] }
 0x15f   :  { %v3925_v19 = vcombine.high %v386_v13, %v390_v14  ;;  %v3924_v25 = vcombine.low %v386_v13, %v390_v14  ;;  %v4444_v13 = vld [vmem:[#allocation14 + $0x3c4] ss:$16 sps:$4 sm:$0xff]   ;;  %v4442_v14 = vld [vmem:[#allocation14 + $0x3c0] ss:$16 sps:$4 sm:$0xff]  }
 0x161   :  { %820 = vmatpush1.bf16.msra.mxu1 %v3914_v12  ;;  %v3935_v12 = vcombine.high %v395_v7, %v399_v8  ;;  %v4435_v7 = vld [vmem:[#allocation14 + $0x1e4] ss:$16 sps:$4 sm:$0xff]   ;;  %v4433_v8 = vld [vmem:[#allocation14 + $0x1e0] ss:$16 sps:$4 sm:$0xff]  }
 0x162   :  { %821 = vmatprep.subr.bf16.mxu1 %v3907_v21  ;;  %v378_v21 = vld [vmem:[#allocation12 + $0x50] sm:$0xff] }
 0x163   :  { %v3917_v27 = vcombine.high %v378_v21, %v382_v22 }
 0x165   :  { %822 = vmatpush1.bf16.msra.mxu1 %v3906_v20  ;;  %v3927_v20 = vcombine.high %v387_v15, %v391_v16  ;;  %v4447_v15 = vld [vmem:[#allocation14 + $0x1a4] ss:$16 sps:$4 sm:$0xff]   ;;  %v4445_v16 = vld [vmem:[#allocation14 + $0x1a0] ss:$16 sps:$4 sm:$0xff]  }
 0x166   :  { %913 = vmatprep.subr.bf16.mxu1 %v3967_v30  ;;  %v374_v30 = vld [vmem:[#allocation12 + $0x30] sm:$0xff] }
 0x208   :  { %v4355_v32 = vpop.f32.mrf.mxu1 }
 0x209   :  { %v358_v53 = vadd.f32 %v4355_v32, %v3897_v34  ;;  %v371_v32 = vld [vmem:[#allocation12 + $0x18] sm:$0xff] }
 0x20a   :  { %v349_v33 = vpop.f32.mrf.mxu1 }
 0x20b   :  { %v350_v36 = vadd.f32 %v3897_v34, %v349_v33  ;;  %v366_v63 = vmax.f32 %v358_v53, 0.0  ;;  %v375_v33 = vld [vmem:[#allocation12 + $0x38] sm:$0xff]  ;;  %v4405_v53 = vld [vmem:[#allocation14 + $0x84] ss:$16 sps:$4 sm:$0xff]  }
 0x20c   :  { %v4356_v35 = vpop.f32.mrf.mxu1  ;;  %v3910_v39 = vcombine.low %v371_v32, %v375_v33 }
 0x20d   :  { %v364_v43 = vmax.f32 %v350_v36, 0.0  ;;  %v361_v45 = vadd.f32 %v4356_v35, %v3897_v34  ;;  %v3918_v35 = vcombine.low %v379_v23, %v383_v24 }
 0x20e   :  { %v352_v37 = vpop.f32.mrf.mxu1 }
 0x20f   :  { %v353_v38 = vadd.f32 %v3897_v34, %v352_v37  ;;  %v367_v56 = vmax.f32 %v361_v45, 0.0  ;;  %v3916_v34 = vcombine.low %v378_v21, %v382_v22  ;;  %v3911_v37 = vcombine.high %v371_v32, %v375_v33  ;;  %v4396_v45 = vld [vmem:[#allocation14 + $0x2c4] ss:$16 sps:$4 sm:$0xff]   ;;  %v4454_v22 = vld [vmem:[#allocation14 + $0x380] ss:$16 sps:$4 sm:$0xff]  }
 0x210   :  { %v4456_v21 = vld [vmem:[#allocation14 + $0x384] ss:$16 sps:$4 sm:$0xff]   ;;  %v4469_v33 = vld [vmem:[#allocation14 + $0x120] ss:$16 sps:$4 sm:$0xff]  }
 0x211   :  { %v365_v44 = vmax.f32 %v353_v38, 0.0  ;;  %v5230_v2 = vpack.c.bf16 %v367_v56, %v366_v63  ;;  %v4411_v56 = vld [vmem:[#allocation14 + $0x64] ss:$16 sps:$4 sm:$0xff]  }
 0x212   :  { %v4423_v63 = vld [vmem:[#allocation14 + $0x24] ss:$16 sps:$4 sm:$0xff]  }
 0x213   :  { %v5224_v46 = vpack.c.bf16 %v365_v44, %v364_v43  ;;  %v4388_v43 = vld [vmem:[#allocation14 + $0x2e0] ss:$16 sps:$4 sm:$0xff]   ;;  %v4393_v44 = vld [vmem:[#allocation14 + $0xc4] ss:$16 sps:$4 sm:$0xff]  }
 0x214   :  { %v4471_v32 = vld [vmem:[#allocation14 + $0x124] ss:$16 sps:$4 sm:$0xff]  }
 0x215   :  { %787 = vmatmul.mubr.bf16.vlgmr.msra.gmra.mxu0 %v5224_v46  ;;  %840 = vmatmul.mubr.bf16.vlgmr.msra.gmra.mxu1 %v5224_v46 }
 0x216   :  { %861 = vmatpush1.bf16.msra.mxu0 %v3964_v28  ;;  %914 = vmatpush1.bf16.msra.mxu1 %v3966_v29  ;;  %v3919_v28 = vcombine.high %v379_v23, %v383_v24  ;;  %v370_v29 = vld [vmem:[#allocation12 + $0x10] sm:$0xff] }
 0x217   :  { %862 = vmatprep.subr.bf16.mxu0 %v3957_v47  ;;  %915 = vmatprep.subr.bf16.mxu1 %v3959_v48  ;;  %v3909_v36 = vcombine.high %v370_v29, %v374_v30  ;;  %v3908_v38 = vcombine.low %v370_v29, %v374_v30  ;;  %v4391_v47 = vld [vmem:[#allocation14 + $0xc0] ss:$16 sps:$4 sm:$0xff]   ;;  %v4459_v23 = vld [vmem:[#allocation14 + $0x164] ss:$16 sps:$4 sm:$0xff]  }
 0x218   :  { %796 = vmatprep.mubr.bf16.mxu0 %v5110_v31  ;;  %849 = vmatprep.mubr.bf16.mxu1 %v5110_v31  ;;  %v4394_v48 = vld [vmem:[#allocation14 + $0x2c0] ss:$16 sps:$4 sm:$0xff]   ;;  %v4468_v29 = vld [vmem:[#allocation14 + $0x344] ss:$16 sps:$4 sm:$0xff]  }
 0x219   :  { %v4457_v24 = vld [vmem:[#allocation14 + $0x160] ss:$16 sps:$4 sm:$0xff]  }
 0x21a   :  { %863 = vmatpush1.bf16.msra.mxu0 %v3956_v54  ;;  %916 = vmatpush1.bf16.msra.mxu1 %v3958_v55  ;;  %v4406_v54 = vld [vmem:[#allocation14 + $0x280] ss:$16 sps:$4 sm:$0xff]  }
 0x21b   :  { %864 = vmatprep.subr.bf16.mxu0 %v3949_v57  ;;  %917 = vmatprep.subr.bf16.mxu1 %v3951_v58  ;;  %v4409_v55 = vld [vmem:[#allocation14 + $0x60] ss:$16 sps:$4 sm:$0xff]   ;;  %v4414_v58 = vld [vmem:[#allocation14 + $0x264] ss:$16 sps:$4 sm:$0xff]  }
 0x21c   :  { %v4412_v57 = vld [vmem:[#allocation14 + $0x260] ss:$16 sps:$4 sm:$0xff]  }
 0x21d   :  { %797 = vmatmul.mubr.bf16.gmra.mxu0 %v5230_v2  ;;  %850 = vmatmul.mubr.bf16.gmra.mxu1 %v5230_v2  ;;  %v4466_v30 = vld [vmem:[#allocation14 + $0x340] ss:$16 sps:$4 sm:$0xff]  }
 0x21e   :  { %865 = vmatpush1.bf16.msra.mxu0 %v3948_v0  ;;  %918 = vmatpush1.bf16.msra.mxu1 %v3950_v1  ;;  %v4421_v0 = vld [vmem:[#allocation14 + $0x20] ss:$16 sps:$4 sm:$0xff]   ;;  %v4426_v1 = vld [vmem:[#allocation14 + $0x224] ss:$16 sps:$4 sm:$0xff]  }
 0x21f   :  { %866 = vmatprep.subr.bf16.mxu0 %v3941_v3  ;;  %919 = vmatprep.subr.bf16.mxu1 %v3943_v4  ;;  %v4429_v3 = vld [vmem:[#allocation14 + $0x4] ss:$16 sps:$4 sm:$0xff]   ;;  %v4427_v4 = vld [vmem:[#allocation14] ss:$16 sps:$4 sm:$0xff]  }
 0x220   :  { %892 = vmatprep.mubr.bf16.mxu0 %v5110_v31  ;;  %945 = vmatprep.mubr.bf16.mxu1 %v5110_v31 }
 0x222   :  { %867 = vmatpush1.bf16.msra.mxu0 %v3940_v9  ;;  %920 = vmatpush1.bf16.msra.mxu1 %v3942_v10  ;;  %v4438_v9 = vld [vmem:[#allocation14 + $0x3e4] ss:$16 sps:$4 sm:$0xff]   ;;  %v4436_v10 = vld [vmem:[#allocation14 + $0x3e0] ss:$16 sps:$4 sm:$0xff]  }
 0x223   :  { %868 = vmatprep.subr.bf16.mxu0 %v3933_v11  ;;  %921 = vmatprep.subr.bf16.mxu1 %v3935_v12  ;;  %v4441_v11 = vld [vmem:[#allocation14 + $0x1c4] ss:$16 sps:$4 sm:$0xff]   ;;  %v4439_v12 = vld [vmem:[#allocation14 + $0x1c0] ss:$16 sps:$4 sm:$0xff]  }
 0x226   :  { %869 = vmatpush1.bf16.msra.mxu0 %v3932_v17  ;;  %922 = vmatpush1.bf16.msra.mxu1 %v3934_v18  ;;  %v4450_v17 = vld [vmem:[#allocation14 + $0x3a4] ss:$16 sps:$4 sm:$0xff]   ;;  %v4448_v18 = vld [vmem:[#allocation14 + $0x3a0] ss:$16 sps:$4 sm:$0xff]  }
 0x227   :  { %870 = vmatprep.subr.bf16.mxu0 %v3925_v19  ;;  %923 = vmatprep.subr.bf16.mxu1 %v3927_v20  ;;  %v4453_v19 = vld [vmem:[#allocation14 + $0x184] ss:$16 sps:$4 sm:$0xff]   ;;  %v4451_v20 = vld [vmem:[#allocation14 + $0x180] ss:$16 sps:$4 sm:$0xff]  }
 0x22a   :  { %871 = vmatpush1.bf16.msra.mxu0 %v3924_v25  ;;  %924 = vmatpush1.bf16.msra.mxu1 %v3926_v26  ;;  %v4462_v25 = vld [vmem:[#allocation14 + $0x364] ss:$16 sps:$4 sm:$0xff]   ;;  %v4460_v26 = vld [vmem:[#allocation14 + $0x360] ss:$16 sps:$4 sm:$0xff]  }
 0x22b   :  { %872 = vmatprep.subr.bf16.mxu0 %v3917_v27  ;;  %925 = vmatprep.subr.bf16.mxu1 %v3919_v28  ;;  %v4465_v27 = vld [vmem:[#allocation14 + $0x144] ss:$16 sps:$4 sm:$0xff]   ;;  %v4463_v28 = vld [vmem:[#allocation14 + $0x140] ss:$16 sps:$4 sm:$0xff]  }
 0x22e   :  { %873 = vmatpush1.bf16.msra.mxu0 %v3916_v34  ;;  %926 = vmatpush1.bf16.msra.mxu1 %v3918_v35  ;;  %v4474_v34 = vld [vmem:[#allocation14 + $0x324] ss:$16 sps:$4 sm:$0xff]   ;;  %v4472_v35 = vld [vmem:[#allocation14 + $0x320] ss:$16 sps:$4 sm:$0xff]  }
 0x22f   :  { %874 = vmatprep.subr.bf16.mxu0 %v3909_v36  ;;  %927 = vmatprep.subr.bf16.mxu1 %v3911_v37  ;;  %v4477_v36 = vld [vmem:[#allocation14 + $0x104] ss:$16 sps:$4 sm:$0xff]   ;;  %v4475_v37 = vld [vmem:[#allocation14 + $0x100] ss:$16 sps:$4 sm:$0xff]  }
 0x232   :  { %875 = vmatpush1.bf16.msra.mxu0 %v3908_v38  ;;  %928 = vmatpush1.bf16.msra.mxu1 %v3910_v39  ;;  %v4480_v38 = vld [vmem:[#allocation14 + $0x304] ss:$16 sps:$4 sm:$0xff]   ;;  %v4478_v39 = vld [vmem:[#allocation14 + $0x300] ss:$16 sps:$4 sm:$0xff]  }
 0x233   :  { %2877 = vmatprep.subr.bf16.mxu0 %v4387_v40  ;;  %2918 = vmatprep.subr.bf16.mxu1 %v4390_v41  ;;  %v4483_v40 = vld [vmem:[#allocation14 + $0x4e4] ss:$16 sps:$4 sm:$0xff]  }
 0x234   :  { %v4486_v41 = vld [vmem:[#allocation14 + $0x6e4] ss:$16 sps:$4 sm:$0xff]  }
 0x235   :  { %893 = vmatmul.mubr.bf16.vlgmr.msra.gmra.mxu0 %v5224_v46  ;;  %946 = vmatmul.mubr.bf16.vlgmr.msra.gmra.mxu1 %v5224_v46  ;;  %v4408_v46 = vld [vmem:[#allocation14 + $0x284] ss:$16 sps:$4 sm:$0xff]  }
 0x236   :  { %902 = vmatprep.mubr.bf16.mxu0 %v5110_v31  ;;  %955 = vmatprep.mubr.bf16.mxu1 %v5110_v31  ;;  %v4403_v31 = vld [vmem:[#allocation14 + $0x80] ss:$16 sps:$4 sm:$0xff]  }
 0x237   :  { %2878 = vmatpush1.bf16.msra.mxu0 %v4385_v42  ;;  %2919 = vmatpush1.bf16.msra.mxu1 %v4388_v43 }
 0x238   :  { %2879 = vmatprep.subr.bf16.mxu0 %v4393_v44  ;;  %2920 = vmatprep.subr.bf16.mxu1 %v4396_v45 }
 0x23b   :  { %2880 = vmatpush1.bf16.msra.mxu0 %v4391_v47  ;;  %2921 = vmatpush1.bf16.msra.mxu1 %v4394_v48 }
 0x23c   :  { %2881 = vmatprep.subr.bf16.mxu0 %v4399_v49  ;;  %2922 = vmatprep.subr.bf16.mxu1 %v4402_v50 }
 0x23d   :  { %903 = vmatmul.mubr.bf16.gmra.mxu0 %v5230_v2  ;;  %956 = vmatmul.mubr.bf16.gmra.mxu1 %v5230_v2  ;;  %v4424_v2 = vld [vmem:[#allocation14 + $0x220] ss:$16 sps:$4 sm:$0xff]  }
 0x23f   :  { %2882 = vmatpush1.bf16.msra.mxu0 %v4397_v51  ;;  %2923 = vmatpush1.bf16.msra.mxu1 %v4400_v52 }
 0x240   :  { %2883 = vmatprep.subr.bf16.mxu0 %v4405_v53  ;;  %2924 = vmatprep.subr.bf16.mxu1 %v4408_v46 }
 0x243   :  { %2884 = vmatpush1.bf16.msra.mxu0 %v4403_v31  ;;  %2925 = vmatpush1.bf16.msra.mxu1 %v4406_v54 }
 0x244   :  { %2885 = vmatprep.subr.bf16.mxu0 %v4411_v56  ;;  %2926 = vmatprep.subr.bf16.mxu1 %v4414_v58 }
 0x247   :  { %2886 = vmatpush1.bf16.msra.mxu0 %v4409_v55  ;;  %2927 = vmatpush1.bf16.msra.mxu1 %v4412_v57 }
 0x248   :  { %2887 = vmatprep.subr.bf16.mxu0 %v4417_v59  ;;  %2928 = vmatprep.subr.bf16.mxu1 %v4420_v61 }
 0x24b   :  { %2888 = vmatpush1.bf16.msra.mxu0 %v4415_v60  ;;  %2929 = vmatpush1.bf16.msra.mxu1 %v4418_v62 }
 0x24c   :  { %2889 = vmatprep.subr.bf16.mxu0 %v4423_v63  ;;  %2930 = vmatprep.subr.bf16.mxu1 %v4426_v1 }
 0x24f   :  { %2890 = vmatpush1.bf16.msra.mxu0 %v4421_v0  ;;  %2931 = vmatpush1.bf16.msra.mxu1 %v4424_v2 }
 0x250   :  { %2891 = vmatprep.subr.bf16.mxu0 %v4429_v3  ;;  %2932 = vmatprep.subr.bf16.mxu1 %v4432_v5 }
 0x253   :  { %2892 = vmatpush1.bf16.msra.mxu0 %v4427_v4  ;;  %2933 = vmatpush1.bf16.msra.mxu1 %v4430_v6 }
 0x254   :  { %2893 = vmatprep.subr.bf16.mxu0 %v4435_v7  ;;  %2934 = vmatprep.subr.bf16.mxu1 %v4438_v9 }
 0x257   :  { %2894 = vmatpush2.bf16.msra.mxu0 %v4433_v8  ;;  %2935 = vmatpush2.bf16.msra.mxu1 %v4436_v10 }
 0x258   :  { %2895 = vmatprep.subr.bf16.mxu0 %v4441_v11  ;;  %2936 = vmatprep.subr.bf16.mxu1 %v4444_v13 }
 0x25b   :  { %2896 = vmatpush2.bf16.msra.mxu0 %v4439_v12  ;;  %2937 = vmatpush2.bf16.msra.mxu1 %v4442_v14 }
 0x25c   :  { %2897 = vmatprep.subr.bf16.mxu0 %v4447_v15  ;;  %2938 = vmatprep.subr.bf16.mxu1 %v4450_v17 }
 0x25f   :  { %2898 = vmatpush2.bf16.msra.mxu0 %v4445_v16  ;;  %2939 = vmatpush2.bf16.msra.mxu1 %v4448_v18 }
 0x260   :  { %2899 = vmatprep.subr.bf16.mxu0 %v4453_v19  ;;  %2940 = vmatprep.subr.bf16.mxu1 %v4456_v21 }
 0x263   :  { %2900 = vmatpush2.bf16.msra.mxu0 %v4451_v20  ;;  %2941 = vmatpush2.bf16.msra.mxu1 %v4454_v22 }
 0x264   :  { %2901 = vmatprep.subr.bf16.mxu0 %v4459_v23  ;;  %2942 = vmatprep.subr.bf16.mxu1 %v4462_v25 }
 0x267   :  { %2902 = vmatpush2.bf16.msra.mxu0 %v4457_v24  ;;  %2943 = vmatpush2.bf16.msra.mxu1 %v4460_v26  ;;  %v5111_v24 = vmov 1983009808   ;;  %v1101_v26 = vlaneseq }
 0x268   :  { %2903 = vmatprep.subr.bf16.mxu0 %v4465_v27  ;;  %2944 = vmatprep.subr.bf16.mxu1 %v4468_v29  ;;  %v1099_v25 = vunpack.c.l.s4 %v5111_v24 }
 0x26b   :  { %2904 = vmatpush2.bf16.msra.mxu0 %v4463_v28  ;;  %2945 = vmatpush2.bf16.msra.mxu1 %v4466_v30 }
 0x26c   :  { %2905 = vmatprep.subr.bf16.mxu0 %v4471_v32  ;;  %2946 = vmatprep.subr.bf16.mxu1 %v4474_v34 }
 0x26f   :  { %2906 = vmatpush2.bf16.msra.mxu0 %v4469_v33  ;;  %2947 = vmatpush2.bf16.msra.mxu1 %v4472_v35 }
 0x270   :  { %2907 = vmatprep.subr.bf16.mxu0 %v4477_v36  ;;  %2948 = vmatprep.subr.bf16.mxu1 %v4480_v38 }
 0x273   :  { %2908 = vmatpush2.bf16.msra.mxu0 %v4475_v37  ;;  %2949 = vmatpush2.bf16.msra.mxu1 %v4478_v39 }
 0x274   :  { %2959 = vmatprep.subr.bf16.mxu0 %v4483_v40  ;;  %3000 = vmatprep.subr.bf16.mxu1 %v4486_v41  ;;  %v1100_v40 = vunpack.c.0.s8 %v1099_v25  ;;  %v5242_v41 = vshrl.u32 %v1101_v26, 7 }
 0x2d5   :  { %v788_v42 = vpop.f32.mrf.mxu0  ;;  %v841_v43 = vpop.f32.mrf.mxu1 }
 0x2d7   :  { %v790_v44 = vpop.f32.mrf.mxu0  ;;  %v843_v45 = vpop.f32.mrf.mxu1 }
 0x2d9   :  { %v792_v47 = vpop.f32.mrf.mxu0  ;;  %v845_v48 = vpop.f32.mrf.mxu1 }
 0x2da   :  { %v968_v49 = vmax.f32 %v788_v42, %v792_v47  ;;  %v982_v50 = vmax.f32 %v841_v43, %v845_v48 }
 0x2db   :  { %v794_v51 = vpop.f32.mrf.mxu0  ;;  %v847_v52 = vpop.f32.mrf.mxu1 }
 0x2dc   :  { %v969_v53 = vrot.slane %v968_v49, 4  ;;  %v983_v46 = vrot.slane %v982_v50, 4  ;;  %v975_v31 = vmax.f32 %v790_v44, %v794_v51  ;;  %v989_v54 = vmax.f32 %v843_v45, %v847_v52 }
 0x2dd   :  { %v798_v55 = vpop.f32.mrf.mxu0  ;;  %v851_v56 = vpop.f32.mrf.mxu1  ;;  %v5248_v51 = vsub.s32 1, %v5242_v41 }
 0x2de   :  { %v970_v57 = vmax.f32 %v968_v49, %v969_v53  ;;  %v984_v58 = vmax.f32 %v982_v50, %v983_v46  ;;  %v976_v59 = vrot.slane %v975_v31, 4  ;;  %v990_v60 = vrot.slane %v989_v54, 4  ;;  %v5253_v46 = vld [vmem:[%s5393_s6] sm:$0xff] }
 0x2df   :  { %v800_v61 = vpop.f32.mrf.mxu0  ;;  %v853_v62 = vpop.f32.mrf.mxu1  ;;  %v5245_v50 = vsub.s32 0, %v5242_v41 }
 0x2e0   :  { %v977_v63 = vmax.f32 %v975_v31, %v976_v59  ;;  %v991_v0 = vmax.f32 %v989_v54, %v990_v60  ;;  %v971_v3 = vrot.slane %v970_v57, 2  ;;  %v985_v4 = vrot.slane %v984_v58, 2 }
 0x2e1   :  { %v802_v1 = vpop.f32.mrf.mxu0  ;;  %v855_v2 = vpop.f32.mrf.mxu1  ;;  %v1207_v31 = vsub.s32 2, %v5242_v41  ;;  %v1211_v54 = vsub.s32 3, %v5242_v41 }
 0x2e2   :  { %v978_v5 = vrot.slane %v977_v63, 2  ;;  %v992_v6 = vrot.slane %v991_v0, 2  ;;  %v1024_v7 = vmax.f32 %v798_v55, %v802_v1  ;;  %v1038_v8 = vmax.f32 %v851_v56, %v855_v2 }
 0x2e3   :  { %v804_v9 = vpop.f32.mrf.mxu0  ;;  %v857_v10 = vpop.f32.mrf.mxu1  ;;  %v972_v17 = vmax.f32 %v970_v57, %v971_v3  ;;  %v986_v18 = vmax.f32 %v984_v58, %v985_v4  ;;  %v5258_v56 = vsub.s32 %v1100_v40, %v5242_v41  ;;  %v1208_v2 = vrot.slane %v5253_v46, %v1207_v31 }
 0x2e4   :  { %v979_v11 = vmax.f32 %v977_v63, %v978_v5  ;;  %v993_v12 = vmax.f32 %v991_v0, %v992_v6  ;;  %v1025_v13 = vrot.slane %v1024_v7, 4  ;;  %v1039_v14 = vrot.slane %v1038_v8, 4 }
 0x2e5   :  { %v1031_v15 = vmax.f32 %v800_v61, %v804_v9  ;;  %v1045_v16 = vmax.f32 %v853_v62, %v857_v10  ;;  %v973_v33 = vrot.slane %v972_v17, 1  ;;  %v987_v34 = vrot.slane %v986_v18, 1 }
 0x2e6   :  { %v1026_v19 = vmax.f32 %v1024_v7, %v1025_v13  ;;  %v1040_v20 = vmax.f32 %v1038_v8, %v1039_v14  ;;  %v980_v23 = vrot.slane %v979_v11, 1  ;;  %v994_v27 = vrot.slane %v993_v12, 1 }
 0x2e7   :  { %v1032_v21 = vrot.slane %v1031_v15, 4  ;;  %v1046_v22 = vrot.slane %v1045_v16, 4  ;;  %v974_v48 = vmax.f32 %v972_v17, %v973_v33  ;;  %v988_v49 = vmax.f32 %v986_v18, %v987_v34 }
 0x2e8   :  { %v1027_v28 = vrot.slane %v1026_v19, 2  ;;  %v1041_v29 = vrot.slane %v1040_v20, 2  ;;  %v981_v39 = vmax.f32 %v979_v11, %v980_v23  ;;  %v995_v42 = vmax.f32 %v993_v12, %v994_v27 }
 0x2e9   :  { %v1033_v30 = vmax.f32 %v1031_v15, %v1032_v21  ;;  %v1047_v32 = vmax.f32 %v1045_v16, %v1046_v22  ;;  %v1200_v62 = vrot.slane %v5253_v46, %v5245_v50  ;;  %v1204_v63 = vrot.slane %v5253_v46, %v5248_v51 }
 0x2ea   :  { %v1028_v35 = vmax.f32 %v1026_v19, %v1027_v28  ;;  %v1042_v36 = vmax.f32 %v1040_v20, %v1041_v29  ;;  %v1096_v55 = vcombine.low %v974_v48, %v981_v39  ;;  %v1097_v57 = vcombine.low %v988_v49, %v995_v42 }
 0x2eb   :  { %v1034_v37 = vrot.slane %v1033_v30, 2  ;;  %v1048_v38 = vrot.slane %v1047_v32, 2  ;;  %v1212_v3 = vrot.slane %v5253_v46, %v1211_v54  ;;  %v1229_v13 = vcombine.low %v1200_v62, %v1204_v63 }
 0x2ec   :  { %v1029_v43 = vrot.slane %v1028_v35, 1  ;;  %v1043_v44 = vrot.slane %v1042_v36, 1  ;;  %v1104_v4 = vrot.slane %v1096_v55, %v5258_v56  ;;  %v1111_v5 = vrot.slane %v1097_v57, %v5258_v56 }
 0x2ed   :  { %v1035_v45 = vmax.f32 %v1033_v30, %v1034_v37  ;;  %v1049_v47 = vmax.f32 %v1047_v32, %v1048_v38  ;;  %v1230_v14 = vcombine.low %v1208_v2, %v1212_v3  ;;  %v1237_v24 = vrot.slane %v1229_v13, %v5258_v56 }
 0x2ee   :  { %v1030_v58 = vmax.f32 %v1028_v35, %v1029_v43  ;;  %v1044_v59 = vmax.f32 %v1042_v36, %v1043_v44  ;;  %v1112_v15 = vcombine.low %v1104_v4, %v1111_v5  ;;  %v1219_v62 = vsub.s32 5, %v5242_v41 }
 0x2ef   :  { %v1036_v52 = vrot.slane %v1035_v45, 1  ;;  %v1050_v53 = vrot.slane %v1049_v47, 1  ;;  %v1244_v25 = vrot.slane %v1230_v14, %v5258_v56  ;;  %v1223_v2 = vsub.s32 6, %v5242_v41 }
 0x2f1   :  { %v1037_v60 = vmax.f32 %v1035_v45, %v1036_v52  ;;  %v1051_v61 = vmax.f32 %v1049_v47, %v1050_v53  ;;  %v1245_v44 = vcombine.low %v1237_v24, %v1244_v25 }
 0x2f3   :  { %v1130_v0 = vcombine.low %v1030_v58, %v1037_v60  ;;  %v1131_v1 = vcombine.low %v1044_v59, %v1051_v61  ;;  %v1215_v61 = vsub.s32 4, %v5242_v41 }
 0x2f5   :  { %v1138_v6 = vrot.slane %v1130_v0, %v5258_v56  ;;  %v1145_v7 = vrot.slane %v1131_v1, %v5258_v56  ;;  %v894_v8 = vpop.f32.mrf.mxu0  ;;  %v947_v9 = vpop.f32.mrf.mxu1 }
 0x2f7   :  { %v1146_v10 = vcombine.low %v1138_v6, %v1145_v7  ;;  %v896_v11 = vpop.f32.mrf.mxu0  ;;  %v949_v12 = vpop.f32.mrf.mxu1 }
 0x2f9   :  { %v1168_v16 = vrot.slane %v1146_v10, 7  ;;  %v898_v17 = vpop.f32.mrf.mxu0  ;;  %v951_v18 = vpop.f32.mrf.mxu1  ;;  %v1227_v10 = vsub.s32 7, %v5242_v41 }
 0x2fa   :  { %v996_v19 = vmax.f32 %v894_v8, %v898_v17  ;;  %v1010_v20 = vmax.f32 %v947_v9, %v951_v18  ;;  %v5286_v18 = vrot.slane %v5253_v46, %v1215_v61  ;;  %v4487_v61 = vld [vmem:[#allocation14 + $0x4c0] ss:$16 sps:$4 sm:$0xff]  }
 0x2fb   :  { %v900_v21 = vpop.f32.mrf.mxu0  ;;  %v953_v22 = vpop.f32.mrf.mxu1  ;;  %v1170_v23 = vsel %vm1169_vm2, %v1168_v16, %v1112_v15 }
 0x2fc   :  { %v997_v26 = vrot.slane %v996_v19, 4  ;;  %v1011_v27 = vrot.slane %v1010_v20, 4  ;;  %v1003_v28 = vmax.f32 %v896_v11, %v900_v21  ;;  %v1017_v29 = vmax.f32 %v949_v12, %v953_v22 }
 0x2fd   :  { %v904_v30 = vpop.f32.mrf.mxu0  ;;  %v957_v32 = vpop.f32.mrf.mxu1  ;;  %v1172_v33 = vsel %vm1171_vm3, %v1168_v16, %v1170_v23 }
 0x2fe   :  { %v998_v34 = vmax.f32 %v996_v19, %v997_v26  ;;  %v1012_v35 = vmax.f32 %v1010_v20, %v1011_v27  ;;  %v1004_v36 = vrot.slane %v1003_v28, 4  ;;  %v1018_v37 = vrot.slane %v1017_v29, 4 }
 0x2ff   :  { %v906_v38 = vpop.f32.mrf.mxu0  ;;  %v959_v39 = vpop.f32.mrf.mxu1  ;;  %v1174_v40 = vsel %vm1173_vm4, %v1168_v16, %v1172_v33 }
 0x300   :  { %v1005_v42 = vmax.f32 %v1003_v28, %v1004_v36  ;;  %v1019_v43 = vmax.f32 %v1017_v29, %v1018_v37  ;;  %v1176_v48 = vsel %vm1175_vm5, %v1168_v16, %v1174_v40  ;;  %v999_v49 = vrot.slane %v998_v34, 2 }
 0x301   :  { %v908_v45 = vpop.f32.mrf.mxu0  ;;  %v961_v47 = vpop.f32.mrf.mxu1  ;;  %v1013_v52 = vrot.slane %v1012_v35, 2  ;;  %v1265_v1 = vadd.f32 %v1245_v44, %v1176_v48 }
 0x302   :  { %v1006_v53 = vrot.slane %v1005_v42, 2  ;;  %v1020_v55 = vrot.slane %v1019_v43, 2  ;;  %v1052_v57 = vmax.f32 %v904_v30, %v908_v45  ;;  %v1066_v58 = vmax.f32 %v957_v32, %v961_v47 }
 0x303   :  { %v910_v59 = vpop.f32.mrf.mxu0  ;;  %v963_v60 = vpop.f32.mrf.mxu1  ;;  %v1000_v7 = vmax.f32 %v998_v34, %v999_v49  ;;  %v1014_v8 = vmax.f32 %v1012_v35, %v1013_v52  ;;  %v1532_v16 = vrot.slane %v1265_v1, %v5258_v56  ;;  %v1525_v17 = vcombine.high %v1265_v1, %v1265_v1  ;;  %v4481_v35 = vld [vmem:[#allocation14 + $0x4e0] ss:$16 sps:$4 sm:$0xff]  }
 0x304   :  { %v1007_v63 = vmax.f32 %v1005_v42, %v1006_v53  ;;  %v1021_v0 = vmax.f32 %v1019_v43, %v1020_v55  ;;  %v1053_v3 = vrot.slane %v1052_v57, 4  ;;  %v1067_v4 = vrot.slane %v1066_v58, 4  ;;  %v4489_v42 = vld [vmem:[#allocation14 + $0x4c4] ss:$16 sps:$4 sm:$0xff]  }
 0x305   :  { %v1059_v5 = vmax.f32 %v906_v38, %v910_v59  ;;  %v1073_v6 = vmax.f32 %v959_v39, %v963_v60  ;;  %v1001_v23 = vrot.slane %v1000_v7, 1  ;;  %v1015_v24 = vrot.slane %v1014_v8, 1  ;;  %v4484_v60 = vld [vmem:[#allocation14 + $0x6e0] ss:$16 sps:$4 sm:$0xff]  }
 0x306   :  { %v1008_v9 = vrot.slane %v1007_v63, 1  ;;  %v1054_v11 = vmax.f32 %v1052_v57, %v1053_v3  ;;  %v1068_v12 = vmax.f32 %v1066_v58, %v1067_v4  ;;  %v1022_v15 = vrot.slane %v1021_v0, 1  ;;  %v4492_v3 = vld [vmem:[#allocation14 + $0x6c4] ss:$16 sps:$4 sm:$0xff]  }
 0x307   :  { %v1060_v13 = vrot.slane %v1059_v5, 4  ;;  %v1074_v14 = vrot.slane %v1073_v6, 4  ;;  %v1540_v26 = vcombine.high %v1532_v16, %v1532_v16  ;;  %v5288_v33 = vpack.c.bf16 %v1532_v16, %v1532_v16  ;;  %v4495_v4 = vld [vmem:[#allocation14 + $0x4a4] ss:$16 sps:$4 sm:$0xff]  }
 0x308   :  { %v1055_v19 = vrot.slane %v1054_v11, 2  ;;  %v1069_v20 = vrot.slane %v1068_v12, 2  ;;  %v1009_v25 = vmax.f32 %v1007_v63, %v1008_v9  ;;  %v1023_v32 = vmax.f32 %v1021_v0, %v1022_v15  ;;  %v4493_v9 = vld [vmem:[#allocation14 + $0x4a0] ss:$16 sps:$4 sm:$0xff]  }
 0x309   :  { %v1061_v21 = vmax.f32 %v1059_v5, %v1060_v13  ;;  %v1075_v22 = vmax.f32 %v1073_v6, %v1074_v14  ;;  %v5290_v34 = vpack.c.bf16 %v1540_v26, %v1540_v26  ;;  %v1539_v36 = vrot.slane %v1525_v17, %v5258_v56  ;;  %v4498_v13 = vld [vmem:[#allocation14 + $0x6a4] ss:$16 sps:$4 sm:$0xff]   ;;  %v4502_v26 = vld [vmem:[#allocation14 + $0x680] ss:$16 sps:$4 sm:$0xff]  }
 0x30a   :  { %v1056_v27 = vmax.f32 %v1054_v11, %v1055_v19  ;;  %v1070_v28 = vmax.f32 %v1068_v12, %v1069_v20  ;;  %v1002_v43 = vmax.f32 %v1000_v7, %v1001_v23  ;;  %v1016_v44 = vmax.f32 %v1014_v8, %v1015_v24  ;;  %v4490_v8 = vld [vmem:[#allocation14 + $0x6c0] ss:$16 sps:$4 sm:$0xff]   ;;  %v4501_v14 = vld [vmem:[#allocation14 + $0x484] ss:$16 sps:$4 sm:$0xff]  }
 0x30b   :  { %v1062_v29 = vrot.slane %v1061_v21, 2  ;;  %v1076_v30 = vrot.slane %v1075_v22, 2  ;;  %2909 = vmatprep.mubr.bf16.mxu0 %v5290_v34  ;;  %v1541_v45 = vcombine.high %v1539_v36, %v1539_v36  ;;  %v1220_v47 = vrot.slane %v5253_v46, %v1219_v62  ;;  %v4499_v19 = vld [vmem:[#allocation14 + $0x480] ss:$16 sps:$4 sm:$0xff]   ;;  %v4507_v23 = vld [vmem:[#allocation14 + $0x464] ss:$16 sps:$4 sm:$0xff]  }
 0x30c   :  { %v1057_v37 = vrot.slane %v1056_v27, 1  ;;  %v1071_v38 = vrot.slane %v1070_v28, 1  ;;  %2910 = vmatmul.mubr.bf16.vlgmr.msra.gmra.mxu0 %v5288_v33  ;;  %v1224_v52 = vrot.slane %v5253_v46, %v1223_v2  ;;  %v1228_v53 = vrot.slane %v5253_v46, %v1227_v10 }
 0x30d   :  { %v1063_v39 = vmax.f32 %v1061_v21, %v1062_v29  ;;  %v1077_v40 = vmax.f32 %v1075_v22, %v1076_v30  ;;  %v1113_v55 = vcombine.low %v1002_v43, %v1009_v25  ;;  %v1114_v57 = vcombine.low %v1016_v44, %v1023_v32  ;;  %2960 = vmatpush1.bf16.msra.mxu0 %v4481_v35  ;;  %v4504_v22 = vld [vmem:[#allocation14 + $0x684] ss:$16 sps:$4 sm:$0xff]  }
 0x30e   :  { %v5298_v58 = vpack.c.bf16 %v1539_v36, %v1539_v36  ;;  %v5300_v59 = vpack.c.bf16 %v1541_v45, %v1541_v45  ;;  %v1058_v63 = vmax.f32 %v1056_v27, %v1057_v37  ;;  %v1072_v0 = vmax.f32 %v1070_v28, %v1071_v38  ;;  %2961 = vmatprep.subr.bf16.mxu0 %v4489_v42  ;;  %v4505_v27 = vld [vmem:[#allocation14 + $0x460] ss:$16 sps:$4 sm:$0xff]   ;;  %v4510_v29 = vld [vmem:[#allocation14 + $0x664] ss:$16 sps:$4 sm:$0xff]  }
 0x30f   :  { %v1064_v48 = vrot.slane %v1063_v39, 1  ;;  %v1078_v49 = vrot.slane %v1077_v40, 1  ;;  %v1246_v5 = vcombine.low %v5286_v18, %v1220_v47  ;;  %v1247_v6 = vcombine.low %v1224_v52, %v1228_v53  ;;  %v4496_v18 = vld [vmem:[#allocation14 + $0x6a0] ss:$16 sps:$4 sm:$0xff]   ;;  %v4513_v30 = vld [vmem:[#allocation14 + $0x444] ss:$16 sps:$4 sm:$0xff]  }
 0x310   :  { %2950 = vmatprep.mubr.bf16.mxu1 %v5300_v59  ;;  %v1121_v7 = vrot.slane %v1113_v55, %v5258_v56  ;;  %v1128_v10 = vrot.slane %v1114_v57, %v5258_v56  ;;  %v4508_v37 = vld [vmem:[#allocation14 + $0x660] ss:$16 sps:$4 sm:$0xff]   ;;  %v4525_v52 = vld [vmem:[#allocation14 + $0x404] ss:$16 sps:$4 sm:$0xff]  }
 0x311   :  { %v1065_v62 = vmax.f32 %v1063_v39, %v1064_v48  ;;  %v1079_v1 = vmax.f32 %v1077_v40, %v1078_v49  ;;  %2951 = vmatmul.mubr.bf16.vlgmr.msra.gmra.mxu1 %v5298_v58  ;;  %2962 = vmatpush1.bf16.msra.mxu0 %v4487_v61  ;;  %v1254_v16 = vrot.slane %v1246_v5, %v5258_v56  ;;  %v4511_v38 = vld [vmem:[#allocation14 + $0x440] ss:$16 sps:$4 sm:$0xff]   ;;  %v4516_v39 = vld [vmem:[#allocation14 + $0x644] ss:$16 sps:$4 sm:$0xff]  }
 0x312   :  { %3001 = vmatpush1.bf16.msra.mxu1 %v4484_v60  ;;  %2963 = vmatprep.subr.bf16.mxu0 %v4495_v4  ;;  %v1261_v17 = vrot.slane %v1247_v6, %v5258_v56  ;;  %v1129_v20 = vcombine.low %v1121_v7, %v1128_v10  ;;  %v4519_v40 = vld [vmem:[#allocation14 + $0x424] ss:$16 sps:$4 sm:$0xff]   ;;  %v4514_v47 = vld [vmem:[#allocation14 + $0x640] ss:$16 sps:$4 sm:$0xff]  }
 0x313   :  { %v1147_v2 = vcombine.low %v1058_v63, %v1065_v62  ;;  %v1148_v46 = vcombine.low %v1072_v0, %v1079_v1  ;;  %3002 = vmatprep.subr.bf16.mxu1 %v4492_v3  ;;  %v4517_v48 = vld [vmem:[#allocation14 + $0x420] ss:$16 sps:$4 sm:$0xff]   ;;  %v4522_v49 = vld [vmem:[#allocation14 + $0x624] ss:$16 sps:$4 sm:$0xff]  }
 0x314   :  { %v1262_v25 = vcombine.low %v1254_v16, %v1261_v17  ;;  %v4523_v60 = vld [vmem:[#allocation14 + $0x400] ss:$16 sps:$4 sm:$0xff]   ;;  %v4528_v61 = vld [vmem:[#allocation14 + $0x604] ss:$16 sps:$4 sm:$0xff]  }
 0x315   :  { %v1155_v11 = vrot.slane %v1147_v2, %v5258_v56  ;;  %v1162_v12 = vrot.slane %v1148_v46, %v5258_v56  ;;  %2964 = vmatpush1.bf16.msra.mxu0 %v4493_v9  ;;  %v4531_v63 = vld [vmem:[#allocation14 + $0x5e4] ss:$16 sps:$4 sm:$0xff]   ;;  %v4526_v0 = vld [vmem:[#allocation14 + $0x600] ss:$16 sps:$4 sm:$0xff]  }
 0x316   :  { %3003 = vmatpush1.bf16.msra.mxu1 %v4490_v8  ;;  %2965 = vmatprep.subr.bf16.mxu0 %v4501_v14  ;;  %v4529_v62 = vld [vmem:[#allocation14 + $0x5e0] ss:$16 sps:$4 sm:$0xff]   ;;  %v4534_v1 = vld [vmem:[#allocation14 + $0x7e4] ss:$16 sps:$4 sm:$0xff]  }
 0x317   :  { %v1163_v15 = vcombine.low %v1155_v11, %v1162_v12  ;;  %3004 = vmatprep.subr.bf16.mxu1 %v4498_v13  ;;  %v4537_v3 = vld [vmem:[#allocation14 + $0x5c4] ss:$16 sps:$4 sm:$0xff]   ;;  %v4532_v4 = vld [vmem:[#allocation14 + $0x7e0] ss:$16 sps:$4 sm:$0xff]  }
 0x318   :  { %v4535_v2 = vld [vmem:[#allocation14 + $0x5c0] ss:$16 sps:$4 sm:$0xff]   ;;  %v4540_v46 = vld [vmem:[#allocation14 + $0x7c4] ss:$16 sps:$4 sm:$0xff]  }
 0x319   :  { %v1179_v21 = vrot.slane %v1163_v15, 7  ;;  %2966 = vmatpush1.bf16.msra.mxu0 %v4499_v19  ;;  %v4543_v5 = vld [vmem:[#allocation14 + $0x5a4] ss:$16 sps:$4 sm:$0xff]   ;;  %v4538_v6 = vld [vmem:[#allocation14 + $0x7c0] ss:$16 sps:$4 sm:$0xff]  }
 0x31a   :  { %3005 = vmatpush1.bf16.msra.mxu1 %v4496_v18  ;;  %2967 = vmatprep.subr.bf16.mxu0 %v4507_v23  ;;  %v4541_v7 = vld [vmem:[#allocation14 + $0x5a0] ss:$16 sps:$4 sm:$0xff]   ;;  %v4546_v8 = vld [vmem:[#allocation14 + $0x7a4] ss:$16 sps:$4 sm:$0xff]  }
 0x31b   :  { %v1180_v24 = vsel %vm1169_vm2, %v1179_v21, %v1129_v20  ;;  %3006 = vmatprep.subr.bf16.mxu1 %v4504_v22  ;;  %v4549_v9 = vld [vmem:[#allocation14 + $0x584] ss:$16 sps:$4 sm:$0xff]   ;;  %v4544_v10 = vld [vmem:[#allocation14 + $0x7a0] ss:$16 sps:$4 sm:$0xff]  }
 0x31c   :  { %v1181_v28 = vsel %vm1171_vm3, %v1179_v21, %v1180_v24  ;;  %v4547_v11 = vld [vmem:[#allocation14 + $0x580] ss:$16 sps:$4 sm:$0xff]   ;;  %v4552_v12 = vld [vmem:[#allocation14 + $0x784] ss:$16 sps:$4 sm:$0xff]  }
 0x31d   :  { %v1182_v32 = vsel %vm1173_vm4, %v1179_v21, %v1181_v28  ;;  %2968 = vmatpush1.bf16.msra.mxu0 %v4505_v27  ;;  %v4555_v13 = vld [vmem:[#allocation14 + $0x564] ss:$16 sps:$4 sm:$0xff]   ;;  %v4550_v14 = vld [vmem:[#allocation14 + $0x780] ss:$16 sps:$4 sm:$0xff]  }
 0x31e   :  { %v1183_v35 = vsel %vm1175_vm5, %v1179_v21, %v1182_v32  ;;  %3007 = vmatpush1.bf16.msra.mxu1 %v4502_v26  ;;  %2969 = vmatprep.subr.bf16.mxu0 %v4513_v30  ;;  %v4553_v15 = vld [vmem:[#allocation14 + $0x560] ss:$16 sps:$4 sm:$0xff]   ;;  %v4558_v16 = vld [vmem:[#allocation14 + $0x764] ss:$16 sps:$4 sm:$0xff]   ;;  %v4577_v32 = vld [vmem:[#allocation14 + $0xe8] ss:$16 sps:$4 sm:$0xff]  }
 0x31f   :  { %v1266_v36 = vadd.f32 %v1262_v25, %v1183_v35  ;;  %3008 = vmatprep.subr.bf16.mxu1 %v4510_v29  ;;  %v4561_v17 = vld [vmem:[#allocation14 + $0x544] ss:$16 sps:$4 sm:$0xff]   ;;  %v4556_v18 = vld [vmem:[#allocation14 + $0x760] ss:$16 sps:$4 sm:$0xff]   ;;  %v4579_v29 = vld [vmem:[#allocation14 + $0xec] ss:$16 sps:$4 sm:$0xff]  }
 0x320   :  { %v4559_v19 = vld [vmem:[#allocation14 + $0x540] ss:$16 sps:$4 sm:$0xff]   ;;  %v4564_v20 = vld [vmem:[#allocation14 + $0x744] ss:$16 sps:$4 sm:$0xff]  }
 0x321   :  { %v5316_v42 = vrot.slane %v1266_v36, %v5258_v56  ;;  %v1542_v43 = vcombine.high %v1266_v36, %v1266_v36  ;;  %2970 = vmatpush1.bf16.msra.mxu0 %v4511_v38  ;;  %v4567_v21 = vld [vmem:[#allocation14 + $0x524] ss:$16 sps:$4 sm:$0xff]   ;;  %v4562_v22 = vld [vmem:[#allocation14 + $0x740] ss:$16 sps:$4 sm:$0xff]   ;;  %v4582_v36 = vld [vmem:[#allocation14 + $0x2ec] ss:$16 sps:$4 sm:$0xff]  }
 0x322   :  { %3009 = vmatpush1.bf16.msra.mxu1 %v4508_v37  ;;  %2971 = vmatprep.subr.bf16.mxu0 %v4519_v40  ;;  %v4565_v23 = vld [vmem:[#allocation14 + $0x520] ss:$16 sps:$4 sm:$0xff]   ;;  %v4570_v24 = vld [vmem:[#allocation14 + $0x724] ss:$16 sps:$4 sm:$0xff]   ;;  %v4585_v37 = vld [vmem:[#allocation14 + $0xcc] ss:$16 sps:$4 sm:$0xff]  }
 0x323   :  { %v1557_v44 = vcombine.high %v5316_v42, %v5316_v42  ;;  %v5321_v45 = vrot.slane %v1542_v43, %v5258_v56  ;;  %3010 = vmatprep.subr.bf16.mxu1 %v4516_v39  ;;  %v4520_v56 = vld [vmem:[#allocation14 + $0x620] ss:$16 sps:$4 sm:$0xff]   ;;  %v4573_v25 = vld [vmem:[#allocation14 + $0x504] ss:$16 sps:$4 sm:$0xff]   ;;  %v5333_v35 = vpack.c.bf16 %v5316_v42, %v5316_v42  ;;  %v4580_v38 = vld [vmem:[#allocation14 + $0x2e8] ss:$16 sps:$4 sm:$0xff]  }
 0x324   :  { %v4568_v26 = vld [vmem:[#allocation14 + $0x720] ss:$16 sps:$4 sm:$0xff]   ;;  %v4576_v28 = vld [vmem:[#allocation14 + $0x704] ss:$16 sps:$4 sm:$0xff]   ;;  %v4583_v40 = vld [vmem:[#allocation14 + $0xc8] ss:$16 sps:$4 sm:$0xff]  }
 0x325   :  { %v5323_v53 = vpack.c.bf16 %v1557_v44, %v1557_v44  ;;  %v1558_v55 = vcombine.high %v5321_v45, %v5321_v45  ;;  %2972 = vmatpush1.bf16.msra.mxu0 %v4517_v48  ;;  %v4571_v27 = vld [vmem:[#allocation14 + $0x500] ss:$16 sps:$4 sm:$0xff]   ;;  %v5339_v39 = vpack.c.bf16 %v5321_v45, %v5321_v45  ;;  %v4588_v43 = vld [vmem:[#allocation14 + $0x2cc] ss:$16 sps:$4 sm:$0xff]   ;;  %v4586_v44 = vld [vmem:[#allocation14 + $0x2c8] ss:$16 sps:$4 sm:$0xff]  }
 0x326   :  { %3011 = vmatpush1.bf16.msra.mxu1 %v4514_v47  ;;  %2973 = vmatprep.subr.bf16.mxu0 %v4525_v52  ;;  %v4574_v30 = vld [vmem:[#allocation14 + $0x700] ss:$16 sps:$4 sm:$0xff]   ;;  %v4591_v42 = vld [vmem:[#allocation14 + $0xac] ss:$16 sps:$4 sm:$0xff]   ;;  %v4589_v47 = vld [vmem:[#allocation14 + $0xa8] ss:$16 sps:$4 sm:$0xff]  }
 0x327   :  { %2991 = vmatprep.mubr.bf16.mxu0 %v5323_v53  ;;  %v5328_v57 = vpack.c.bf16 %v1558_v55, %v1558_v55  ;;  %3012 = vmatprep.subr.bf16.mxu1 %v4522_v49  ;;  %v4594_v48 = vld [vmem:[#allocation14 + $0x2ac] ss:$16 sps:$4 sm:$0xff]   ;;  %v4592_v45 = vld [vmem:[#allocation14 + $0x2a8] ss:$16 sps:$4 sm:$0xff]  }
 0x328   :  { %v4595_v49 = vld [vmem:[#allocation14 + $0x88] ss:$16 sps:$4 sm:$0xff]   ;;  %v4600_v52 = vld [vmem:[#allocation14 + $0x28c] ss:$16 sps:$4 sm:$0xff]  }
 0x329   :  { %3032 = vmatprep.mubr.bf16.mxu1 %v5328_v57  ;;  %2974 = vmatpush1.bf16.msra.mxu0 %v4523_v60  ;;  %v4603_v55 = vld [vmem:[#allocation14 + $0x6c] ss:$16 sps:$4 sm:$0xff]  }
 0x32a   :  { %3013 = vmatpush1.bf16.msra.mxu1 %v4520_v56  ;;  %2975 = vmatprep.subr.bf16.mxu0 %v4531_v63  ;;  %v4598_v56 = vld [vmem:[#allocation14 + $0x288] ss:$16 sps:$4 sm:$0xff]   ;;  %v4606_v60 = vld [vmem:[#allocation14 + $0x26c] ss:$16 sps:$4 sm:$0xff]  }
 0x32b   :  { %3014 = vmatprep.subr.bf16.mxu1 %v4528_v61  ;;  %v4609_v61 = vld [vmem:[#allocation14 + $0x4c] ss:$16 sps:$4 sm:$0xff]   ;;  %v4604_v63 = vld [vmem:[#allocation14 + $0x268] ss:$16 sps:$4 sm:$0xff]  }
 0x32d   :  { %2976 = vmatpush2.bf16.msra.mxu0 %v4529_v62  ;;  %v4612_v62 = vld [vmem:[#allocation14 + $0x24c] ss:$16 sps:$4 sm:$0xff]  }
 0x32e   :  { %3015 = vmatpush1.bf16.msra.mxu1 %v4526_v0  ;;  %2977 = vmatprep.subr.bf16.mxu0 %v4537_v3  ;;  %v4607_v0 = vld [vmem:[#allocation14 + $0x48] ss:$16 sps:$4 sm:$0xff]  }
 0x32f   :  { %3016 = vmatprep.subr.bf16.mxu1 %v4534_v1  ;;  %v4615_v1 = vld [vmem:[#allocation14 + $0x2c] ss:$16 sps:$4 sm:$0xff]   ;;  %v4610_v3 = vld [vmem:[#allocation14 + $0x248] ss:$16 sps:$4 sm:$0xff]  }
 0x331   :  { %2978 = vmatpush2.bf16.msra.mxu0 %v4535_v2  ;;  %v4618_v2 = vld [vmem:[#allocation14 + $0x22c] ss:$16 sps:$4 sm:$0xff]  }
 0x332   :  { %3017 = vmatpush2.bf16.msra.mxu1 %v4532_v4  ;;  %2979 = vmatprep.subr.bf16.mxu0 %v4543_v5  ;;  %v4613_v4 = vld [vmem:[#allocation14 + $0x28] ss:$16 sps:$4 sm:$0xff]  }
 0x333   :  { %3018 = vmatprep.subr.bf16.mxu1 %v4540_v46  ;;  %v4621_v46 = vld [vmem:[#allocation14 + $0xc] ss:$16 sps:$4 sm:$0xff]   ;;  %v4616_v5 = vld [vmem:[#allocation14 + $0x228] ss:$16 sps:$4 sm:$0xff]  }
 0x335   :  { %2980 = vmatpush2.bf16.msra.mxu0 %v4541_v7  ;;  %v4624_v7 = vld [vmem:[#allocation14 + $0x20c] ss:$16 sps:$4 sm:$0xff]  }
 0x336   :  { %3019 = vmatpush2.bf16.msra.mxu1 %v4538_v6  ;;  %2981 = vmatprep.subr.bf16.mxu0 %v4549_v9  ;;  %v4619_v6 = vld [vmem:[#allocation14 + $0x8] ss:$16 sps:$4 sm:$0xff]  }
 0x337   :  { %3020 = vmatprep.subr.bf16.mxu1 %v4546_v8  ;;  %v4627_v8 = vld [vmem:[#allocation14 + $0x1ec] ss:$16 sps:$4 sm:$0xff]   ;;  %v4622_v9 = vld [vmem:[#allocation14 + $0x208] ss:$16 sps:$4 sm:$0xff]  }
 0x339   :  { %2982 = vmatpush2.bf16.msra.mxu0 %v4547_v11  ;;  %v4630_v11 = vld [vmem:[#allocation14 + $0x3ec] ss:$16 sps:$4 sm:$0xff]  }
 0x33a   :  { %3021 = vmatpush2.bf16.msra.mxu1 %v4544_v10  ;;  %2983 = vmatprep.subr.bf16.mxu0 %v4555_v13  ;;  %v4625_v10 = vld [vmem:[#allocation14 + $0x1e8] ss:$16 sps:$4 sm:$0xff]  }
 0x33b   :  { %3022 = vmatprep.subr.bf16.mxu1 %v4552_v12  ;;  %v4633_v12 = vld [vmem:[#allocation14 + $0x1cc] ss:$16 sps:$4 sm:$0xff]   ;;  %v4628_v13 = vld [vmem:[#allocation14 + $0x3e8] ss:$16 sps:$4 sm:$0xff]  }
 0x33d   :  { %2984 = vmatpush2.bf16.msra.mxu0 %v4553_v15  ;;  %v4636_v15 = vld [vmem:[#allocation14 + $0x3cc] ss:$16 sps:$4 sm:$0xff]  }
 0x33e   :  { %3023 = vmatpush2.bf16.msra.mxu1 %v4550_v14  ;;  %2985 = vmatprep.subr.bf16.mxu0 %v4561_v17  ;;  %v4631_v14 = vld [vmem:[#allocation14 + $0x1c8] ss:$16 sps:$4 sm:$0xff]  }
 0x33f   :  { %3024 = vmatprep.subr.bf16.mxu1 %v4558_v16  ;;  %v4639_v16 = vld [vmem:[#allocation14 + $0x1ac] ss:$16 sps:$4 sm:$0xff]   ;;  %v4634_v17 = vld [vmem:[#allocation14 + $0x3c8] ss:$16 sps:$4 sm:$0xff]  }
 0x341   :  { %2986 = vmatpush2.bf16.msra.mxu0 %v4559_v19  ;;  %v4642_v19 = vld [vmem:[#allocation14 + $0x3ac] ss:$16 sps:$4 sm:$0xff]  }
 0x342   :  { %3025 = vmatpush2.bf16.msra.mxu1 %v4556_v18  ;;  %2987 = vmatprep.subr.bf16.mxu0 %v4567_v21  ;;  %v4637_v18 = vld [vmem:[#allocation14 + $0x1a8] ss:$16 sps:$4 sm:$0xff]  }
 0x343   :  { %3026 = vmatprep.subr.bf16.mxu1 %v4564_v20  ;;  %v4645_v20 = vld [vmem:[#allocation14 + $0x18c] ss:$16 sps:$4 sm:$0xff]   ;;  %v4640_v21 = vld [vmem:[#allocation14 + $0x3a8] ss:$16 sps:$4 sm:$0xff]  }
 0x345   :  { %2988 = vmatpush2.bf16.msra.mxu0 %v4565_v23  ;;  %v4648_v23 = vld [vmem:[#allocation14 + $0x38c] ss:$16 sps:$4 sm:$0xff]  }
 0x346   :  { %3027 = vmatpush2.bf16.msra.mxu1 %v4562_v22  ;;  %2989 = vmatprep.subr.bf16.mxu0 %v4573_v25  ;;  %v4643_v22 = vld [vmem:[#allocation14 + $0x188] ss:$16 sps:$4 sm:$0xff]  }
 0x347   :  { %3028 = vmatprep.subr.bf16.mxu1 %v4570_v24  ;;  %v4651_v24 = vld [vmem:[#allocation14 + $0x16c] ss:$16 sps:$4 sm:$0xff]   ;;  %v4646_v25 = vld [vmem:[#allocation14 + $0x388] ss:$16 sps:$4 sm:$0xff]  }
 0x349   :  { %2990 = vmatpush2.bf16.msra.mxu0 %v4571_v27  ;;  %v4654_v27 = vld [vmem:[#allocation14 + $0x36c] ss:$16 sps:$4 sm:$0xff]  }
 0x34a   :  { %3029 = vmatpush2.bf16.msra.mxu1 %v4568_v26  ;;  %3041 = vmatprep.subr.bf16.mxu0 %v4579_v29  ;;  %v4649_v26 = vld [vmem:[#allocation14 + $0x168] ss:$16 sps:$4 sm:$0xff]  }
 0x34b   :  { %3030 = vmatprep.subr.bf16.mxu1 %v4576_v28  ;;  %v4657_v28 = vld [vmem:[#allocation14 + $0x14c] ss:$16 sps:$4 sm:$0xff]   ;;  %v4652_v29 = vld [vmem:[#allocation14 + $0x368] ss:$16 sps:$4 sm:$0xff]  }
 0x34c   :  { %2992 = vmatmul.mubr.bf16.vlgmr.msra.gmra.mxu0 %v5333_v35 }
 0x34d   :  { %3042 = vmatpush1.bf16.msra.mxu0 %v4577_v32  ;;  %3073 = vmatprep.mubr.bf16.mxu0 %v5290_v34  ;;  %v4597_v34 = vld [vmem:[#allocation14 + $0x8c] ss:$16 sps:$4 sm:$0xff]  }
 0x34e   :  { %3031 = vmatpush2.bf16.msra.mxu1 %v4574_v30  ;;  %3043 = vmatprep.subr.bf16.mxu0 %v4585_v37  ;;  %v4655_v30 = vld [vmem:[#allocation14 + $0x148] ss:$16 sps:$4 sm:$0xff]   ;;  %v4660_v32 = vld [vmem:[#allocation14 + $0x34c] ss:$16 sps:$4 sm:$0xff]  }
 0x34f   :  { %3082 = vmatprep.subr.bf16.mxu1 %v4582_v36  ;;  %v4663_v36 = vld [vmem:[#allocation14 + $0x12c] ss:$16 sps:$4 sm:$0xff]   ;;  %v4658_v37 = vld [vmem:[#allocation14 + $0x348] ss:$16 sps:$4 sm:$0xff]  }
 0x351   :  { %3033 = vmatmul.mubr.bf16.vlgmr.msra.gmra.mxu1 %v5339_v39  ;;  %3044 = vmatpush1.bf16.msra.mxu0 %v4583_v40  ;;  %v4666_v40 = vld [vmem:[#allocation14 + $0x32c] ss:$16 sps:$4 sm:$0xff]  }
 0x352   :  { %3083 = vmatpush1.bf16.msra.mxu1 %v4580_v38  ;;  %3114 = vmatprep.mubr.bf16.mxu1 %v5300_v59  ;;  %v4601_v59 = vld [vmem:[#allocation14 + $0x68] ss:$16 sps:$4 sm:$0xff]  }
 0x353   :  { %3084 = vmatprep.subr.bf16.mxu1 %v4588_v43  ;;  %3045 = vmatprep.subr.bf16.mxu0 %v4591_v42  ;;  %v4661_v38 = vld [vmem:[#allocation14 + $0x128] ss:$16 sps:$4 sm:$0xff]   ;;  %v4669_v43 = vld [vmem:[#allocation14 + $0x10c] ss:$16 sps:$4 sm:$0xff]  }
 0x354   :  { %v4664_v42 = vld [vmem:[#allocation14 + $0x328] ss:$16 sps:$4 sm:$0xff]  }
 0x355   :  { %3046 = vmatpush1.bf16.msra.mxu0 %v4589_v47  ;;  %v4672_v47 = vld [vmem:[#allocation14 + $0x30c] ss:$16 sps:$4 sm:$0xff]  }
 0x356   :  { %3085 = vmatpush1.bf16.msra.mxu1 %v4586_v44  ;;  %3047 = vmatprep.subr.bf16.mxu0 %v4597_v34  ;;  %v4667_v44 = vld [vmem:[#allocation14 + $0x108] ss:$16 sps:$4 sm:$0xff]  }
 0x357   :  { %3086 = vmatprep.subr.bf16.mxu1 %v4594_v48  ;;  %v4675_v48 = vld [vmem:[#allocation14 + $0x4ec] ss:$16 sps:$4 sm:$0xff]   ;;  %v4670_v34 = vld [vmem:[#allocation14 + $0x308] ss:$16 sps:$4 sm:$0xff]  }
 0x359   :  { %3048 = vmatpush1.bf16.msra.mxu0 %v4595_v49  ;;  %v4678_v49 = vld [vmem:[#allocation14 + $0x6ec] ss:$16 sps:$4 sm:$0xff]  }
 0x35a   :  { %3087 = vmatpush1.bf16.msra.mxu1 %v4592_v45  ;;  %3049 = vmatprep.subr.bf16.mxu0 %v4603_v55  ;;  %v4673_v45 = vld [vmem:[#allocation14 + $0x4e8] ss:$16 sps:$4 sm:$0xff]  }
 0x35b   :  { %3088 = vmatprep.subr.bf16.mxu1 %v4600_v52  ;;  %v4681_v52 = vld [vmem:[#allocation14 + $0x4cc] ss:$16 sps:$4 sm:$0xff]   ;;  %v4676_v55 = vld [vmem:[#allocation14 + $0x6e8] ss:$16 sps:$4 sm:$0xff]  }
 0x35d   :  { %3050 = vmatpush1.bf16.msra.mxu0 %v4601_v59  ;;  %v4684_v59 = vld [vmem:[#allocation14 + $0x6cc] ss:$16 sps:$4 sm:$0xff]  }
 0x35e   :  { %3089 = vmatpush1.bf16.msra.mxu1 %v4598_v56  ;;  %3051 = vmatprep.subr.bf16.mxu0 %v4609_v61  ;;  %v4679_v56 = vld [vmem:[#allocation14 + $0x4c8] ss:$16 sps:$4 sm:$0xff]  }
 0x35f   :  { %3090 = vmatprep.subr.bf16.mxu1 %v4606_v60  ;;  %v4687_v60 = vld [vmem:[#allocation14 + $0x4ac] ss:$16 sps:$4 sm:$0xff]   ;;  %v4682_v61 = vld [vmem:[#allocation14 + $0x6c8] ss:$16 sps:$4 sm:$0xff]  }
 0x361   :  { %3052 = vmatpush1.bf16.msra.mxu0 %v4607_v0  ;;  %v4690_v0 = vld [vmem:[#allocation14 + $0x6ac] ss:$16 sps:$4 sm:$0xff]  }
 0x362   :  { %3091 = vmatpush1.bf16.msra.mxu1 %v4604_v63  ;;  %3053 = vmatprep.subr.bf16.mxu0 %v4615_v1  ;;  %v4685_v63 = vld [vmem:[#allocation14 + $0x4a8] ss:$16 sps:$4 sm:$0xff]   ;;  %v4696_v1 = vld [vmem:[#allocation14 + $0x68c] ss:$16 sps:$4 sm:$0xff]  }
 0x363   :  { %3092 = vmatprep.subr.bf16.mxu1 %v4612_v62  ;;  %v4688_v62 = vld [vmem:[#allocation14 + $0x6a8] ss:$16 sps:$4 sm:$0xff]  }
 0x365   :  { %3054 = vmatpush1.bf16.msra.mxu0 %v4613_v4  ;;  %v4702_v4 = vld [vmem:[#allocation14 + $0x66c] ss:$16 sps:$4 sm:$0xff]  }
 0x366   :  { %3093 = vmatpush1.bf16.msra.mxu1 %v4610_v3  ;;  %3055 = vmatprep.subr.bf16.mxu0 %v4621_v46  ;;  %v4699_v3 = vld [vmem:[#allocation14 + $0x46c] ss:$16 sps:$4 sm:$0xff]   ;;  %v4700_v46 = vld [vmem:[#allocation14 + $0x668] ss:$16 sps:$4 sm:$0xff]  }
 0x367   :  { %3094 = vmatprep.subr.bf16.mxu1 %v4618_v2  ;;  %v4705_v2 = vld [vmem:[#allocation14 + $0x44c] ss:$16 sps:$4 sm:$0xff]  }
 0x369   :  { %3056 = vmatpush1.bf16.msra.mxu0 %v4619_v6  ;;  %v4708_v6 = vld [vmem:[#allocation14 + $0x64c] ss:$16 sps:$4 sm:$0xff]  }
 0x36a   :  { %3095 = vmatpush1.bf16.msra.mxu1 %v4616_v5  ;;  %3057 = vmatprep.subr.bf16.mxu0 %v4627_v8  ;;  %v4703_v5 = vld [vmem:[#allocation14 + $0x448] ss:$16 sps:$4 sm:$0xff]  }
 0x36b   :  { %3096 = vmatprep.subr.bf16.mxu1 %v4624_v7  ;;  %v4711_v7 = vld [vmem:[#allocation14 + $0x42c] ss:$16 sps:$4 sm:$0xff]   ;;  %v4706_v8 = vld [vmem:[#allocation14 + $0x648] ss:$16 sps:$4 sm:$0xff]  }
 0x36d   :  { %3058 = vmatpush2.bf16.msra.mxu0 %v4625_v10  ;;  %v4714_v10 = vld [vmem:[#allocation14 + $0x62c] ss:$16 sps:$4 sm:$0xff]  }
 0x36e   :  { %3097 = vmatpush1.bf16.msra.mxu1 %v4622_v9  ;;  %3059 = vmatprep.subr.bf16.mxu0 %v4633_v12  ;;  %v4709_v9 = vld [vmem:[#allocation14 + $0x428] ss:$16 sps:$4 sm:$0xff]  }
 0x36f   :  { %3098 = vmatprep.subr.bf16.mxu1 %v4630_v11  ;;  %v4717_v11 = vld [vmem:[#allocation14 + $0x40c] ss:$16 sps:$4 sm:$0xff]   ;;  %v4712_v12 = vld [vmem:[#allocation14 + $0x628] ss:$16 sps:$4 sm:$0xff]  }
 0x371   :  { %3060 = vmatpush2.bf16.msra.mxu0 %v4631_v14  ;;  %v4720_v14 = vld [vmem:[#allocation14 + $0x60c] ss:$16 sps:$4 sm:$0xff]  }
 0x372   :  { %3099 = vmatpush2.bf16.msra.mxu1 %v4628_v13  ;;  %3061 = vmatprep.subr.bf16.mxu0 %v4639_v16  ;;  %v4715_v13 = vld [vmem:[#allocation14 + $0x408] ss:$16 sps:$4 sm:$0xff]  }
 0x373   :  { %3100 = vmatprep.subr.bf16.mxu1 %v4636_v15  ;;  %v4723_v15 = vld [vmem:[#allocation14 + $0x5ec] ss:$16 sps:$4 sm:$0xff]   ;;  %v4718_v16 = vld [vmem:[#allocation14 + $0x608] ss:$16 sps:$4 sm:$0xff]  }
 0x375   :  { %3062 = vmatpush2.bf16.msra.mxu0 %v4637_v18  ;;  %v4726_v18 = vld [vmem:[#allocation14 + $0x7ec] ss:$16 sps:$4 sm:$0xff]  }
 0x376   :  { %3101 = vmatpush2.bf16.msra.mxu1 %v4634_v17  ;;  %3063 = vmatprep.subr.bf16.mxu0 %v4645_v20  ;;  %v4721_v17 = vld [vmem:[#allocation14 + $0x5e8] ss:$16 sps:$4 sm:$0xff]  }
 0x377   :  { %3102 = vmatprep.subr.bf16.mxu1 %v4642_v19  ;;  %v4729_v19 = vld [vmem:[#allocation14 + $0x5cc] ss:$16 sps:$4 sm:$0xff]   ;;  %v4724_v20 = vld [vmem:[#allocation14 + $0x7e8] ss:$16 sps:$4 sm:$0xff]  }
 0x379   :  { %3064 = vmatpush2.bf16.msra.mxu0 %v4643_v22  ;;  %v4732_v22 = vld [vmem:[#allocation14 + $0x7cc] ss:$16 sps:$4 sm:$0xff]  }
 0x37a   :  { %3103 = vmatpush2.bf16.msra.mxu1 %v4640_v21  ;;  %3065 = vmatprep.subr.bf16.mxu0 %v4651_v24  ;;  %v4727_v21 = vld [vmem:[#allocation14 + $0x5c8] ss:$16 sps:$4 sm:$0xff]  }
 0x37b   :  { %3104 = vmatprep.subr.bf16.mxu1 %v4648_v23  ;;  %v4735_v23 = vld [vmem:[#allocation14 + $0x5ac] ss:$16 sps:$4 sm:$0xff]   ;;  %v4730_v24 = vld [vmem:[#allocation14 + $0x7c8] ss:$16 sps:$4 sm:$0xff]  }
 0x37d   :  { %3066 = vmatpush2.bf16.msra.mxu0 %v4649_v26  ;;  %v4738_v26 = vld [vmem:[#allocation14 + $0x7ac] ss:$16 sps:$4 sm:$0xff]  }
 0x37e   :  { %3105 = vmatpush2.bf16.msra.mxu1 %v4646_v25  ;;  %3067 = vmatprep.subr.bf16.mxu0 %v4657_v28  ;;  %v4733_v25 = vld [vmem:[#allocation14 + $0x5a8] ss:$16 sps:$4 sm:$0xff]  }
 0x37f   :  { %3106 = vmatprep.subr.bf16.mxu1 %v4654_v27  ;;  %v4741_v27 = vld [vmem:[#allocation14 + $0x58c] ss:$16 sps:$4 sm:$0xff]   ;;  %v4736_v28 = vld [vmem:[#allocation14 + $0x7a8] ss:$16 sps:$4 sm:$0xff]  }
 0x381   :  { %3068 = vmatpush2.bf16.msra.mxu0 %v4655_v30  ;;  %v4744_v30 = vld [vmem:[#allocation14 + $0x78c] ss:$16 sps:$4 sm:$0xff]  }
 0x382   :  { %3107 = vmatpush2.bf16.msra.mxu1 %v4652_v29  ;;  %3069 = vmatprep.subr.bf16.mxu0 %v4663_v36  ;;  %v4739_v29 = vld [vmem:[#allocation14 + $0x588] ss:$16 sps:$4 sm:$0xff]  }
 0x383   :  { %3108 = vmatprep.subr.bf16.mxu1 %v4660_v32  ;;  %v4747_v32 = vld [vmem:[#allocation14 + $0x56c] ss:$16 sps:$4 sm:$0xff]   ;;  %v4742_v36 = vld [vmem:[#allocation14 + $0x788] ss:$16 sps:$4 sm:$0xff]  }
 0x385   :  { %3070 = vmatpush2.bf16.msra.mxu0 %v4661_v38  ;;  %v4750_v38 = vld [vmem:[#allocation14 + $0x76c] ss:$16 sps:$4 sm:$0xff]  }
 0x386   :  { %3109 = vmatpush2.bf16.msra.mxu1 %v4658_v37  ;;  %3071 = vmatprep.subr.bf16.mxu0 %v4669_v43  ;;  %v4745_v37 = vld [vmem:[#allocation14 + $0x568] ss:$16 sps:$4 sm:$0xff]  }
 0x387   :  { %3110 = vmatprep.subr.bf16.mxu1 %v4666_v40  ;;  %v4753_v40 = vld [vmem:[#allocation14 + $0x54c] ss:$16 sps:$4 sm:$0xff]   ;;  %v4748_v43 = vld [vmem:[#allocation14 + $0x768] ss:$16 sps:$4 sm:$0xff]  }
 0x389   :  { %3072 = vmatpush2.bf16.msra.mxu0 %v4667_v44  ;;  %v4756_v44 = vld [vmem:[#allocation14 + $0x74c] ss:$16 sps:$4 sm:$0xff]  }
 0x38a   :  { %3111 = vmatpush2.bf16.msra.mxu1 %v4664_v42  ;;  %3123 = vmatprep.subr.bf16.mxu0 %v4675_v48  ;;  %v4751_v42 = vld [vmem:[#allocation14 + $0x548] ss:$16 sps:$4 sm:$0xff]  }
 0x38b   :  { %3112 = vmatprep.subr.bf16.mxu1 %v4672_v47  ;;  %v4759_v47 = vld [vmem:[#allocation14 + $0x52c] ss:$16 sps:$4 sm:$0xff]   ;;  %v4754_v48 = vld [vmem:[#allocation14 + $0x748] ss:$16 sps:$4 sm:$0xff]  }
 0x38c   :  { %3074 = vmatmul.mubr.bf16.vlgmr.msra.gmra.mxu0 %v5288_v33  ;;  %v4693_v33 = vld [vmem:[#allocation14 + $0x48c] ss:$16 sps:$4 sm:$0xff]  }
 0x38d   :  { %3124 = vmatpush1.bf16.msra.mxu0 %v4673_v45  ;;  %3155 = vmatprep.mubr.bf16.mxu0 %v5323_v53  ;;  %v4691_v53 = vld [vmem:[#allocation14 + $0x488] ss:$16 sps:$4 sm:$0xff]   ;;  %v4762_v45 = vld [vmem:[#allocation14 + $0x72c] ss:$16 sps:$4 sm:$0xff]  }
 0x38e   :  { %3113 = vmatpush2.bf16.msra.mxu1 %v4670_v34  ;;  %3125 = vmatprep.subr.bf16.mxu0 %v4681_v52  ;;  %v4757_v34 = vld [vmem:[#allocation14 + $0x528] ss:$16 sps:$4 sm:$0xff]  }
 0x38f   :  { %3164 = vmatprep.subr.bf16.mxu1 %v4678_v49  ;;  %v4765_v49 = vld [vmem:[#allocation14 + $0x50c] ss:$16 sps:$4 sm:$0xff]   ;;  %v4760_v52 = vld [vmem:[#allocation14 + $0x728] ss:$16 sps:$4 sm:$0xff]  }
 0x391   :  { %3115 = vmatmul.mubr.bf16.vlgmr.msra.gmra.mxu1 %v5298_v58  ;;  %3126 = vmatpush1.bf16.msra.mxu0 %v4679_v56  ;;  %v4694_v58 = vld [vmem:[#allocation14 + $0x688] ss:$16 sps:$4 sm:$0xff]   ;;  %v4768_v56 = vld [vmem:[#allocation14 + $0x70c] ss:$16 sps:$4 sm:$0xff]  }
 0x392   :  { %3165 = vmatpush1.bf16.msra.mxu1 %v4676_v55  ;;  %3196 = vmatprep.mubr.bf16.mxu1 %v5328_v57  ;;  %v4697_v57 = vld [vmem:[#allocation14 + $0x468] ss:$16 sps:$4 sm:$0xff]  }
 0x393   :  { %3166 = vmatprep.subr.bf16.mxu1 %v4684_v59  ;;  %3127 = vmatprep.subr.bf16.mxu0 %v4687_v60  ;;  %v4763_v55 = vld [vmem:[#allocation14 + $0x508] ss:$16 sps:$4 sm:$0xff]   ;;  %v4771_v59 = vld [vmem:[#allocation15 + $0x74] ss:$8 sps:$4 sm:$0xff]  }
 0x394   :  { %v4766_v60 = vld [vmem:[#allocation14 + $0x708] ss:$16 sps:$4 sm:$0xff]  }
 0x395   :  { %3128 = vmatpush1.bf16.msra.mxu0 %v4685_v63  ;;  %v4774_v63 = vld [vmem:[#allocation15 + $0x64] ss:$8 sps:$4 sm:$0xff]  }
 0x396   :  { %3167 = vmatpush1.bf16.msra.mxu1 %v4682_v61  ;;  %3129 = vmatprep.subr.bf16.mxu0 %v4693_v33  ;;  %v4769_v61 = vld [vmem:[#allocation15 + $0x70] ss:$8 sps:$4 sm:$0xff]  }
 0x397   :  { %3168 = vmatprep.subr.bf16.mxu1 %v4690_v0 }
 0x399   :  { %3130 = vmatpush1.bf16.msra.mxu0 %v4691_v53  ;;  %v4777_v53 = vld [vmem:[#allocation15 + $0x54] ss:$8 sps:$4 sm:$0xff]  }
 0x39a   :  { %3169 = vmatpush1.bf16.msra.mxu1 %v4688_v62  ;;  %3131 = vmatprep.subr.bf16.mxu0 %v4699_v3  ;;  %v4772_v62 = vld [vmem:[#allocation15 + $0x60] ss:$8 sps:$4 sm:$0xff]  }
 0x39b   :  { %3170 = vmatprep.subr.bf16.mxu1 %v4696_v1 }
 0x39d   :  { %3132 = vmatpush1.bf16.msra.mxu0 %v4697_v57 }
 0x39e   :  { %3171 = vmatpush1.bf16.msra.mxu1 %v4694_v58  ;;  %3133 = vmatprep.subr.bf16.mxu0 %v4705_v2  ;;  %v4780_v2 = vld [vmem:[#allocation15 + $0x44] ss:$8 sps:$4 sm:$0xff]  }
 0x39f   :  { %3172 = vmatprep.subr.bf16.mxu1 %v4702_v4  ;;  %v4775_v4 = vld [vmem:[#allocation15 + $0x50] ss:$8 sps:$4 sm:$0xff]  }
 0x3a1   :  { %3134 = vmatpush1.bf16.msra.mxu0 %v4703_v5  ;;  %v4778_v5 = vld [vmem:[#allocation15 + $0x40] ss:$8 sps:$4 sm:$0xff]  }
 0x3a2   :  { %3173 = vmatpush1.bf16.msra.mxu1 %v4700_v46  ;;  %3135 = vmatprep.subr.bf16.mxu0 %v4711_v7  ;;  %v4819_v7 = vld [vmem:[#allocation15 + $0x174] ss:$8 sps:$4 sm:$0xff]  }
 0x3a3   :  { %3174 = vmatprep.subr.bf16.mxu1 %v4708_v6  ;;  %v4817_v6 = vld [vmem:[#allocation15 + $0x170] ss:$8 sps:$4 sm:$0xff]  }
 0x3a5   :  { %3136 = vmatpush1.bf16.msra.mxu0 %v4709_v9  ;;  %v4822_v9 = vld [vmem:[#allocation15 + $0x164] ss:$8 sps:$4 sm:$0xff]  }
 0x3a6   :  { %3175 = vmatpush1.bf16.msra.mxu1 %v4706_v8  ;;  %3137 = vmatprep.subr.bf16.mxu0 %v4717_v11  ;;  %v4783_v8 = vld [vmem:[#allocation15 + $0x34] ss:$8 sps:$4 sm:$0xff]  }
 0x3a7   :  { %3176 = vmatprep.subr.bf16.mxu1 %v4714_v10  ;;  %v4781_v10 = vld [vmem:[#allocation15 + $0x30] ss:$8 sps:$4 sm:$0xff]   ;;  %v4825_v11 = vld [vmem:[#allocation15 + $0x154] ss:$8 sps:$4 sm:$0xff]  }
 0x3a9   :  { %3138 = vmatpush1.bf16.msra.mxu0 %v4715_v13  ;;  %v4823_v13 = vld [vmem:[#allocation15 + $0x150] ss:$8 sps:$4 sm:$0xff]  }
 0x3aa   :  { %3177 = vmatpush1.bf16.msra.mxu1 %v4712_v12  ;;  %3139 = vmatprep.subr.bf16.mxu0 %v4723_v15  ;;  %v4786_v12 = vld [vmem:[#allocation15 + $0x24] ss:$8 sps:$4 sm:$0xff]  }
 0x3ab   :  { %3178 = vmatprep.subr.bf16.mxu1 %v4720_v14  ;;  %v4784_v14 = vld [vmem:[#allocation15 + $0x20] ss:$8 sps:$4 sm:$0xff]   ;;  %v4828_v15 = vld [vmem:[#allocation15 + $0x144] ss:$8 sps:$4 sm:$0xff]  }
 0x3ad   :  { %3140 = vmatpush2.bf16.msra.mxu0 %v4721_v17  ;;  %v4826_v17 = vld [vmem:[#allocation15 + $0x140] ss:$8 sps:$4 sm:$0xff]  }
 0x3ae   :  { %3179 = vmatpush1.bf16.msra.mxu1 %v4718_v16  ;;  %3141 = vmatprep.subr.bf16.mxu0 %v4729_v19  ;;  %v4789_v16 = vld [vmem:[#allocation15 + $0x14] ss:$8 sps:$4 sm:$0xff]  }
 0x3af   :  { %3180 = vmatprep.subr.bf16.mxu1 %v4726_v18  ;;  %v4787_v18 = vld [vmem:[#allocation15 + $0x10] ss:$8 sps:$4 sm:$0xff]   ;;  %v4831_v19 = vld [vmem:[#allocation15 + $0x134] ss:$8 sps:$4 sm:$0xff]  }
 0x3b1   :  { %3142 = vmatpush2.bf16.msra.mxu0 %v4727_v21  ;;  %v4829_v21 = vld [vmem:[#allocation15 + $0x130] ss:$8 sps:$4 sm:$0xff]  }
 0x3b2   :  { %3181 = vmatpush2.bf16.msra.mxu1 %v4724_v20  ;;  %3143 = vmatprep.subr.bf16.mxu0 %v4735_v23  ;;  %v4792_v20 = vld [vmem:[#allocation15 + $0x4] ss:$8 sps:$4 sm:$0xff]  }
 0x3b3   :  { %3182 = vmatprep.subr.bf16.mxu1 %v4732_v22  ;;  %v4790_v22 = vld [vmem:[#allocation15] ss:$8 sps:$4 sm:$0xff]   ;;  %v4834_v23 = vld [vmem:[#allocation15 + $0x124] ss:$8 sps:$4 sm:$0xff]  }
 0x3b5   :  { %3144 = vmatpush2.bf16.msra.mxu0 %v4733_v25  ;;  %v4832_v25 = vld [vmem:[#allocation15 + $0x120] ss:$8 sps:$4 sm:$0xff]  }
 0x3b6   :  { %3183 = vmatpush2.bf16.msra.mxu1 %v4730_v24  ;;  %3145 = vmatprep.subr.bf16.mxu0 %v4741_v27  ;;  %v4795_v24 = vld [vmem:[#allocation15 + $0xf4] ss:$8 sps:$4 sm:$0xff]  }
 0x3b7   :  { %3184 = vmatprep.subr.bf16.mxu1 %v4738_v26  ;;  %v4793_v26 = vld [vmem:[#allocation15 + $0xf0] ss:$8 sps:$4 sm:$0xff]   ;;  %v4837_v27 = vld [vmem:[#allocation15 + $0x114] ss:$8 sps:$4 sm:$0xff]  }
 0x3b9   :  { %3146 = vmatpush2.bf16.msra.mxu0 %v4739_v29  ;;  %v4835_v29 = vld [vmem:[#allocation15 + $0x110] ss:$8 sps:$4 sm:$0xff]  }
 0x3ba   :  { %3185 = vmatpush2.bf16.msra.mxu1 %v4736_v28  ;;  %3147 = vmatprep.subr.bf16.mxu0 %v4747_v32  ;;  %v4798_v28 = vld [vmem:[#allocation15 + $0xe4] ss:$8 sps:$4 sm:$0xff]  }
 0x3bb   :  { %3186 = vmatprep.subr.bf16.mxu1 %v4744_v30  ;;  %v4796_v30 = vld [vmem:[#allocation15 + $0xe0] ss:$8 sps:$4 sm:$0xff]   ;;  %v4840_v32 = vld [vmem:[#allocation15 + $0x104] ss:$8 sps:$4 sm:$0xff]  }
 0x3bd   :  { %3148 = vmatpush2.bf16.msra.mxu0 %v4745_v37  ;;  %v4838_v37 = vld [vmem:[#allocation15 + $0x100] ss:$8 sps:$4 sm:$0xff]  }
 0x3be   :  { %3187 = vmatpush2.bf16.msra.mxu1 %v4742_v36  ;;  %3149 = vmatprep.subr.bf16.mxu0 %v4753_v40  ;;  %v4801_v36 = vld [vmem:[#allocation15 + $0xd4] ss:$8 sps:$4 sm:$0xff]  }
 0x3bf   :  { %3188 = vmatprep.subr.bf16.mxu1 %v4750_v38  ;;  %v4799_v38 = vld [vmem:[#allocation15 + $0xd0] ss:$8 sps:$4 sm:$0xff]   ;;  %v4843_v40 = vld [vmem:[#allocation15 + $0x1f4] ss:$8 sps:$4 sm:$0xff]  }
 0x3c1   :  { %3150 = vmatpush2.bf16.msra.mxu0 %v4751_v42  ;;  %v4841_v42 = vld [vmem:[#allocation15 + $0x1f0] ss:$8 sps:$4 sm:$0xff]  }
 0x3c2   :  { %3189 = vmatpush2.bf16.msra.mxu1 %v4748_v43  ;;  %3151 = vmatprep.subr.bf16.mxu0 %v4759_v47  ;;  %v4804_v43 = vld [vmem:[#allocation15 + $0xc4] ss:$8 sps:$4 sm:$0xff]  }
 0x3c3   :  { %3190 = vmatprep.subr.bf16.mxu1 %v4756_v44  ;;  %v4802_v44 = vld [vmem:[#allocation15 + $0xc0] ss:$8 sps:$4 sm:$0xff]   ;;  %v4846_v47 = vld [vmem:[#allocation15 + $0x1e4] ss:$8 sps:$4 sm:$0xff]  }
 0x3c5   :  { %3152 = vmatpush2.bf16.msra.mxu0 %v4757_v34  ;;  %v4844_v34 = vld [vmem:[#allocation15 + $0x1e0] ss:$8 sps:$4 sm:$0xff]  }
 0x3c6   :  { %3191 = vmatpush2.bf16.msra.mxu1 %v4754_v48  ;;  %3153 = vmatprep.subr.bf16.mxu0 %v4765_v49  ;;  %v4807_v48 = vld [vmem:[#allocation15 + $0xb4] ss:$8 sps:$4 sm:$0xff]  }
 0x3c7   :  { %3192 = vmatprep.subr.bf16.mxu1 %v4762_v45  ;;  %v4805_v45 = vld [vmem:[#allocation15 + $0xb0] ss:$8 sps:$4 sm:$0xff]   ;;  %v4849_v49 = vld [vmem:[#allocation15 + $0x1d4] ss:$8 sps:$4 sm:$0xff]  }
 0x3c9   :  { %3154 = vmatpush2.bf16.msra.mxu0 %v4763_v55  ;;  %v4847_v55 = vld [vmem:[#allocation15 + $0x1d0] ss:$8 sps:$4 sm:$0xff]  }
 0x3ca   :  { %3193 = vmatpush2.bf16.msra.mxu1 %v4760_v52  ;;  %3609 = vmatprep.subr.bf16.mxu0 %v4771_v59  ;;  %v4810_v52 = vld [vmem:[#allocation15 + $0xa4] ss:$8 sps:$4 sm:$0xff]  }
 0x3cb   :  { %3194 = vmatprep.subr.bf16.mxu1 %v4768_v56  ;;  %v4808_v56 = vld [vmem:[#allocation15 + $0xa0] ss:$8 sps:$4 sm:$0xff]   ;;  %v4852_v59 = vld [vmem:[#allocation15 + $0x1c4] ss:$8 sps:$4 sm:$0xff]  }
 0x3cc   :  { %v5347_v0 = vpop.f32.mrf.mxu0  ;;  %3156 = vmatmul.mubr.bf16.vlgmr.msra.gmra.mxu0 %v5333_v35 }
 0x3cd   :  { %3610 = vmatpush1.bf16.msra.mxu0 %v4769_v61  ;;  %v5360_v61 = vld [vmem:[%s5395_s8] sm:$0xf] }
 0x3ce   :  { %3195 = vmatpush2.bf16.msra.mxu1 %v4766_v60  ;;  %v5350_v33 = vpop.f32.mrf.mxu0  ;;  %3611 = vmatprep.subr.bf16.mxu0 %v4774_v63  ;;  %v4813_v60 = vld [vmem:[#allocation15 + $0x94] ss:$8 sps:$4 sm:$0xff]   ;;  %v4850_v63 = vld [vmem:[#allocation15 + $0x1c0] ss:$8 sps:$4 sm:$0xff]  }
 0x3cf   :  { %3650 = vmatprep.subr.bf16.mxu1 %v4819_v7 }
 0x3d0   :  { %v2915_v3 = vpop.f32.mrf.mxu0 }
 0x3d1   :  { %3197 = vmatmul.mubr.bf16.vlgmr.msra.gmra.mxu1 %v5339_v39  ;;  %v5353_v1 = vpop.f32.mrf.mxu1  ;;  %3612 = vmatpush1.bf16.msra.mxu0 %v4772_v62  ;;  %v4820_v39 = vld [vmem:[#allocation15 + $0x160] ss:$8 sps:$4 sm:$0xff]   ;;  %v4811_v62 = vld [vmem:[#allocation15 + $0x90] ss:$8 sps:$4 sm:$0xff]   ;;  %v1580_v3 = vrot.slane %v5360_v61, %v5245_v50 }
 0x3d2   :  { %v2916_v57 = vpop.f32.mrf.mxu0  ;;  %3613 = vmatprep.subr.bf16.mxu0 %v4777_v53  ;;  %3651 = vmatpush1.bf16.msra.mxu1 %v4817_v6  ;;  %v4855_v53 = vld [vmem:[#allocation15 + $0x1b4] ss:$8 sps:$4 sm:$0xff]  }
 0x3d3   :  { %v5355_v58 = vpop.f32.mrf.mxu1  ;;  %3652 = vmatprep.subr.bf16.mxu1 %v4822_v9  ;;  %v4816_v57 = vld [vmem:[#allocation15 + $0x84] ss:$8 sps:$4 sm:$0xff]  }
 0x3d5   :  { %v2956_v46 = vpop.f32.mrf.mxu1  ;;  %3614 = vmatpush1.bf16.msra.mxu0 %v4775_v4  ;;  %v1584_v4 = vrot.slane %v5360_v61, %v5248_v51 }
 0x3d6   :  { %3615 = vmatprep.subr.bf16.mxu0 %v4780_v2  ;;  %3653 = vmatpush1.bf16.msra.mxu1 %v4820_v39  ;;  %v4853_v2 = vld [vmem:[#allocation15 + $0x1b0] ss:$8 sps:$4 sm:$0xff]   ;;  %v4814_v46 = vld [vmem:[#allocation15 + $0x80] ss:$8 sps:$4 sm:$0xff]  }
 0x3d7   :  { %v2957_v35 = vpop.f32.mrf.mxu1  ;;  %3654 = vmatprep.subr.bf16.mxu1 %v4825_v11 }
 0x3d8   :  { %v2912_v35 = vadd.f32 %v5347_v0, %v1580_v3  ;;  %v4861_v0 = vld [vmem:[#allocation15 + $0x194] ss:$8 sps:$4 sm:$0xff]  }
 0x3d9   :  { %3616 = vmatpush1.bf16.msra.mxu0 %v4778_v5  ;;  %v2914_v5 = vadd.f32 %v5350_v33, %v1584_v4 }
 0x3da   :  { %3617 = vmatprep.subr.bf16.mxu0 %v4783_v8  ;;  %3655 = vmatpush1.bf16.msra.mxu1 %v4823_v13  ;;  %v2953_v6 = vadd.f32 %v5353_v1, %v2912_v35  ;;  %v4858_v8 = vld [vmem:[#allocation15 + $0x1a4] ss:$8 sps:$4 sm:$0xff]  }
 0x3db   :  { %3656 = vmatprep.subr.bf16.mxu1 %v4828_v15  ;;  %v2955_v9 = vadd.f32 %v5355_v58, %v2914_v5 }
 0x3dd   :  { %3618 = vmatpush1.bf16.msra.mxu0 %v4781_v10  ;;  %v4856_v10 = vld [vmem:[#allocation15 + $0x1a0] ss:$8 sps:$4 sm:$0xff]  }
 0x3de   :  { %3619 = vmatprep.subr.bf16.mxu0 %v4786_v12  ;;  %3657 = vmatpush1.bf16.msra.mxu1 %v4826_v17 }
 0x3df   :  { %3658 = vmatprep.subr.bf16.mxu1 %v4831_v19 }
 0x3e1   :  { %3620 = vmatpush1.bf16.msra.mxu0 %v4784_v14 }
 0x3e2   :  { %3621 = vmatprep.subr.bf16.mxu0 %v4789_v16  ;;  %3659 = vmatpush1.bf16.msra.mxu1 %v4829_v21  ;;  %v4859_v16 = vld [vmem:[#allocation15 + $0x190] ss:$8 sps:$4 sm:$0xff]   ;;  %v4862_v21 = vld [vmem:[#allocation15 + $0x180] ss:$8 sps:$4 sm:$0xff]  }
 0x3e3   :  { %3660 = vmatprep.subr.bf16.mxu1 %v4834_v23 }
 0x3e5   :  { %3622 = vmatpush1.bf16.msra.mxu0 %v4787_v18 }
 0x3e6   :  { %3623 = vmatprep.subr.bf16.mxu0 %v4792_v20  ;;  %3661 = vmatpush1.bf16.msra.mxu1 %v4832_v25  ;;  %v4864_v20 = vld [vmem:[#allocation15 + $0x184] ss:$8 sps:$4 sm:$0xff]  }
 0x3e7   :  { %3662 = vmatprep.subr.bf16.mxu1 %v4837_v27 }
 0x3e9   :  { %3624 = vmatpush1.bf16.msra.mxu0 %v4790_v22 }
 0x3ea   :  { %3625 = vmatprep.subr.bf16.mxu0 %v4795_v24  ;;  %3663 = vmatpush1.bf16.msra.mxu1 %v4835_v29 }
 0x3eb   :  { %3664 = vmatprep.subr.bf16.mxu1 %v4840_v32 }
 0x3ed   :  { %3626 = vmatpush2.bf16.msra.mxu0 %v4793_v26 }
 0x3ee   :  { %3627 = vmatprep.subr.bf16.mxu0 %v4798_v28  ;;  %3665 = vmatpush1.bf16.msra.mxu1 %v4838_v37  ;;  %v4865_v37 = vld [vmem:[#allocation17 + $0x78] sm:$0xff]  }
 0x3ef   :  { %3666 = vmatprep.subr.bf16.mxu1 %v4843_v40  ;;  %v4867_v40 = vld [vmem:[#allocation17 + $0x70] sm:$0xff]  }
 0x3f1   :  { %3628 = vmatpush2.bf16.msra.mxu0 %v4796_v30 }
 0x3f2   :  { %3629 = vmatprep.subr.bf16.mxu0 %v4801_v36  ;;  %3667 = vmatpush2.bf16.msra.mxu1 %v4841_v42  ;;  %v4869_v42 = vld [vmem:[#allocation17 + $0x68] sm:$0xff]  }
 0x3f3   :  { %3668 = vmatprep.subr.bf16.mxu1 %v4846_v47  ;;  %v4871_v47 = vld [vmem:[#allocation17 + $0x60] sm:$0xff]  }
 0x3f5   :  { %3630 = vmatpush2.bf16.msra.mxu0 %v4799_v38  ;;  %v4866_v38 = vld [vmem:[#allocation17 + $0x38] sm:$0xff]  }
 0x3f6   :  { %3631 = vmatprep.subr.bf16.mxu0 %v4804_v43  ;;  %3669 = vmatpush2.bf16.msra.mxu1 %v4844_v34  ;;  %v4868_v43 = vld [vmem:[#allocation17 + $0x30] sm:$0xff]   ;;  %v4873_v34 = vld [vmem:[#allocation17 + $0x58] sm:$0xff]  }
 0x3f7   :  { %3670 = vmatprep.subr.bf16.mxu1 %v4849_v49  ;;  %v4875_v49 = vld [vmem:[#allocation17 + $0x50] sm:$0xff]  }
 0x3f9   :  { %3632 = vmatpush2.bf16.msra.mxu0 %v4802_v44  ;;  %v4870_v44 = vld [vmem:[#allocation17 + $0x28] sm:$0xff]  }
 0x3fa   :  { %3633 = vmatprep.subr.bf16.mxu0 %v4807_v48  ;;  %3671 = vmatpush2.bf16.msra.mxu1 %v4847_v55  ;;  %v4872_v48 = vld [vmem:[#allocation17 + $0x20] sm:$0xff]   ;;  %v1588_v55 = vrot.slane %v5360_v61, %v1207_v31 }
 0x3fb   :  { %3672 = vmatprep.subr.bf16.mxu1 %v4852_v59 }
 0x3fd   :  { %3634 = vmatpush2.bf16.msra.mxu0 %v4805_v45  ;;  %v4874_v45 = vld [vmem:[#allocation17 + $0x18] sm:$0xff]  }
 0x3fe   :  { %3635 = vmatprep.subr.bf16.mxu0 %v4810_v52  ;;  %3673 = vmatpush2.bf16.msra.mxu1 %v4850_v63  ;;  %v4876_v52 = vld [vmem:[#allocation17 + $0x10] sm:$0xff]  }
 0x3ff   :  { %3674 = vmatprep.subr.bf16.mxu1 %v4855_v53 }
 0x401   :  { %3636 = vmatpush2.bf16.msra.mxu0 %v4808_v56  ;;  %v1592_v56 = vrot.slane %v5360_v61, %v1211_v54 }
 0x402   :  { %3637 = vmatprep.subr.bf16.mxu0 %v4813_v60  ;;  %3675 = vmatpush2.bf16.msra.mxu1 %v4853_v2 }
 0x403   :  { %3676 = vmatprep.subr.bf16.mxu1 %v4858_v8 }
 0x405   :  { %3638 = vmatpush2.bf16.msra.mxu0 %v4811_v62 }
 0x406   :  { %3639 = vmatprep.subr.bf16.mxu0 %v4816_v57  ;;  %3677 = vmatpush2.bf16.msra.mxu1 %v4856_v10  ;;  %v4877_v10 = vld [vmem:[#allocation17 + $0x48] sm:$0xff]  }
 0x407   :  { %3678 = vmatprep.subr.bf16.mxu1 %v4861_v0  ;;  %v4880_v0 = vld [vmem:[#allocation17] sm:$0xff]  }
 0x409   :  { %3640 = vmatpush2.bf16.msra.mxu0 %v4814_v46 }
 0x40a   :  { %3679 = vmatpush2.bf16.msra.mxu1 %v4859_v16  ;;  %4315 = vmatprep.subr.bf16.mxu0 %v4865_v37  ;;  %v3277_v16 = vld [vmem:[%s5397_s10] sm:$0x3] }
 0x40b   :  { %3680 = vmatprep.subr.bf16.mxu1 %v4864_v20 }
 0x40c   :  { %v2993_v7 = vpop.f32.mrf.mxu0 }
 0x40d   :  { %v2994_v39 = vadd.f32 %v2993_v7, %v2953_v6 }
 0x40e   :  { %v2995_v11 = vpop.f32.mrf.mxu0  ;;  %3681 = vmatpush2.bf16.msra.mxu1 %v4862_v21 }
 0x40f   :  { %v2996_v12 = vadd.f32 %v2995_v11, %v2955_v9  ;;  %v4878_v11 = vld [vmem:[#allocation17 + $0x8] sm:$0xff]  }
 0x410   :  { %v2997_v14 = vpop.f32.mrf.mxu0 }
 0x411   :  { %v3034_v13 = vpop.f32.mrf.mxu1  ;;  %v4879_v14 = vld [vmem:[#allocation17 + $0x40] sm:$0xff]  }
 0x412   :  { %v3035_v15 = vadd.f32 %v3034_v13, %v2994_v39  ;;  %v2998_v17 = vpop.f32.mrf.mxu0 }
 0x413   :  { %v3036_v33 = vpop.f32.mrf.mxu1  ;;  %v3286_v17 = vrot.slane %v3277_v16, %v5248_v51 }
 0x414   :  { %v3037_v18 = vadd.f32 %v3036_v33, %v2996_v12  ;;  %v3205_v1 = vmax.f32 %v3035_v15, 0.0  ;;  %v3282_v33 = vrot.slane %v3277_v16, %v5245_v50  ;;  %v4288_v50 = vld [vmem:[%s5399_s12] ss:$0 sm:$0xff] }
 0x415   :  { %v3038_v19 = vpop.f32.mrf.mxu1 }
 0x416   :  { %v3206_v58 = vmax.f32 %v3037_v18, 0.0  ;;  %v3273_v24 = vpack.c.bf16 %v3205_v1, %v3205_v1 }
 0x417   :  { %v3039_v22 = vpop.f32.mrf.mxu1 }
 0x418   :  { %v3274_v23 = vpack.c.bf16 %v3206_v58, %v3206_v58 }
 0x41a   :  { %3641 = vmatprep.mubr.bf16.mxu0 %v3274_v23 }
 0x41b   :  { %3642 = vmatmul.mubr.bf16.vlgmr.msra.gmra.mxu0 %v3273_v24 }
 0x41c   :  { %4316 = vmatpush3.bf16.msra.mxu0 %v4866_v38 }
 0x41d   :  { %4317 = vmatprep.subr.bf16.mxu0 %v4867_v40 }
 0x420   :  { %4318 = vmatpush3.bf16.msra.mxu0 %v4868_v43 }
 0x421   :  { %4319 = vmatprep.subr.bf16.mxu0 %v4869_v42 }
 0x424   :  { %4320 = vmatpush3.bf16.msra.mxu0 %v4870_v44 }
 0x425   :  { %4321 = vmatprep.subr.bf16.mxu0 %v4871_v47 }
 0x428   :  { %4322 = vmatpush3.bf16.msra.mxu0 %v4872_v48 }
 0x429   :  { %4323 = vmatprep.subr.bf16.mxu0 %v4873_v34 }
 0x42c   :  { %4324 = vmatpush3.bf16.msra.mxu0 %v4874_v45 }
 0x42d   :  { %4325 = vmatprep.subr.bf16.mxu0 %v4875_v49 }
 0x430   :  { %4326 = vmatpush3.bf16.msra.mxu0 %v4876_v52 }
 0x431   :  { %4327 = vmatprep.subr.bf16.mxu0 %v4877_v10 }
 0x434   :  { %4328 = vmatpush3.bf16.msra.mxu0 %v4878_v11 }
 0x435   :  { %4329 = vmatprep.subr.bf16.mxu0 %v4879_v14 }
 0x438   :  { %4330 = vmatpush3.bf16.msra.mxu0 %v4880_v0 }
 0x44c   :  { %v3075_v25 = vpop.f32.mrf.mxu0 }
 0x44d   :  { %v3076_v59 = vadd.f32 %v3075_v25, %v1588_v55 }
 0x44e   :  { %v3077_v26 = vpop.f32.mrf.mxu0 }
 0x44f   :  { %v3078_v60 = vadd.f32 %v3077_v26, %v1592_v56 }
 0x450   :  { %v3079_v28 = vpop.f32.mrf.mxu0 }
 0x451   :  { %v3116_v27 = vpop.f32.mrf.mxu1 }
 0x452   :  { %v3080_v30 = vpop.f32.mrf.mxu0  ;;  %v3117_v63 = vadd.f32 %v3116_v27, %v3076_v59 }
 0x453   :  { %v3118_v29 = vpop.f32.mrf.mxu1 }
 0x454   :  { %v3119_v53 = vadd.f32 %v3118_v29, %v3078_v60 }
 0x455   :  { %v3120_v32 = vpop.f32.mrf.mxu1 }
 0x457   :  { %v3121_v36 = vpop.f32.mrf.mxu1 }
 0x48c   :  { %v3157_v62 = vpop.f32.mrf.mxu0 }
 0x48d   :  { %v3158_v3 = vadd.f32 %v3157_v62, %v3117_v63 }
 0x48e   :  { %v3159_v57 = vpop.f32.mrf.mxu0 }
 0x48f   :  { %v3160_v4 = vadd.f32 %v3159_v57, %v3119_v53 }
 0x490   :  { %v3161_v35 = vpop.f32.mrf.mxu0 }
 0x491   :  { %v3198_v2 = vpop.f32.mrf.mxu1 }
 0x492   :  { %v3199_v46 = vadd.f32 %v3198_v2, %v3158_v3  ;;  %v3162_v7 = vpop.f32.mrf.mxu0 }
 0x493   :  { %v3200_v5 = vpop.f32.mrf.mxu1 }
 0x494   :  { %v3201_v6 = vadd.f32 %v3200_v5, %v3160_v4  ;;  %v3207_v8 = vmax.f32 %v3199_v46, 0.0 }
 0x495   :  { %v3202_v31 = vpop.f32.mrf.mxu1 }
 0x496   :  { %v3208_v9 = vmax.f32 %v3201_v6, 0.0  ;;  %v3275_v54 = vpack.c.bf16 %v3207_v8, %v3207_v8 }
 0x497   :  { %v3203_v41 = vpop.f32.mrf.mxu1 }
 0x498   :  { %v3276_v39 = vpack.c.bf16 %v3208_v9, %v3208_v9 }
 0x49a   :  { %3682 = vmatprep.mubr.bf16.mxu1 %v3276_v39 }
 0x49b   :  { %3683 = vmatmul.mubr.bf16.vlgmr.msra.gmra.mxu1 %v3275_v54 }
 0x4db   :  { %v3643_v61 = vpop.f32.mrf.mxu0 }
 0x4dc   :  { %v3644_v18 = vadd.f32 %v3643_v61, %v3282_v33 }
 0x4dd   :  { %v3645_v12 = vpop.f32.mrf.mxu0 }
 0x4de   :  { %v3646_v19 = vadd.f32 %v3645_v12, %v3286_v17 }
 0x4df   :  { %v3647_v13 = vpop.f32.mrf.mxu0 }
 0x4e1   :  { %v3648_v15 = vpop.f32.mrf.mxu0 }
 0x55b   :  { %v3684_v1 = vpop.f32.mrf.mxu1 }
 0x55c   :  { %v3685_v20 = vadd.f32 %v3684_v1, %v3644_v18 }
 0x55d   :  { %v3686_v58 = vpop.f32.mrf.mxu1 }
 0x55e   :  { %v3687_v21 = vadd.f32 %v3686_v58, %v3646_v19  ;;  %v3691_v22 = vmax.f32 %v3685_v20, 0.0 }
 0x55f   :  { %v3688_v23 = vpop.f32.mrf.mxu1 }
 0x560   :  { %v3692_v24 = vmax.f32 %v3687_v21, 0.0  ;;  %v3725_v27 = vpack.c.bf16 %v3691_v22, %v3691_v22 }
 0x561   :  { %v3689_v25 = vpop.f32.mrf.mxu1 }
 0x562   :  { %v3726_v26 = vpack.c.bf16 %v3692_v24, %v3692_v24 }
 0x564   :  { %3862 = vmatprep.mubr.bf16.mxu0 %v3726_v26 }
 0x565   :  { %3863 = vmatmul.mubr.bf16.vlgmr.msra.gmra.mxu0 %v3725_v27 }
 0x625   :  { %v4331_v28 = vpop.f32.mrf.mxu0 }
 0x627   :  { %v4332_v51 = vpop.f32.mrf.mxu0 }
 0x628   :  { %v4333_v29 = vadd.f32 %v4332_v51, %v4331_v28 }
 0x629   :  { %v4334_v30 = vpop.f32.mrf.mxu0 }
 0x62a   :  { %v3865_v32 = vadd.f32 %v4333_v29, %v4288_v50 }
 0x62b   :  { %v4335_v36 = vpop.f32.mrf.mxu0 }
 0x62c   :  { %3870 = vst [vmem:[#allocation18] sm:$0x3] %v3865_v32 }
 0x62d   :  { %5072 = shalt.err (!%p5069_p7)
}
 0x62e   :  { %3880 = dma.vmem_to_hbm [thread:$0]  %s3878_s23, 32, %s5400_s13, [#allocation5]  }
 0x62f   :  { %5091 = dma.done.wait [#allocation5], 32  }
 0x630   :  { %5092 = vsyncadd [#allocation5], 4294967264 }
 0x631   :  { %3884 = vsyncpa [#allocation4], 1 }
 0x632   :  { %3885 = vsyncpa [#allocation7], 1 }
 0x633   :  { %3886 = vsyncpa [#allocation10], 1 }
 0x634   :  { %3887 = vsyncpa [#allocation13], 1 }
 0x635   :  { %3888 = vsyncpa [#allocation16], 1 }
 0x636   :  { %3889 = vsyncpa [#allocation5], 1 }

</bundles_post_ra>
